<compile_context>
chip_gen: v5e
topology: v5e:2x2
jax: 0.10.0
libtpu: 0.0.40
codegen_flags: <defaults>
</compile_context>

<pallas_src>
import functools

import numpy as np
import jax
import jax.numpy as jnp
from jax.experimental import pallas as pl
from jax.experimental.pallas import tpu as pltpu

F32 = jnp.float32
BF16 = jnp.bfloat16

# ----------------------------------------------------------------------------
# Consolidated bias operand layout: one (1, _BIAS_TOTAL) f32 row, every
# segment starting on a 128-lane boundary so in-kernel static slices are
# lane-aligned.  Widths are the activation widths each bias is added to.
# ----------------------------------------------------------------------------
_BIAS_SEGMENTS = [
    ("bc2", 512), ("bfcc", 256), ("b2j", 256), ("bw1", 256),
    ("bw2", 128), ("bfcw", 256), ("bcam1", 128), ("bjnt1", 64),
    ("bway1", 64), ("bf1", 128), ("bf2", 32), ("b3", 1),
]
_BIAS_LAYOUT = {}
_off = 0
for _name, _w in _BIAS_SEGMENTS:
    _BIAS_LAYOUT[_name] = (_off, _w)
    _off += -(-_w // 128) * 128
_BIAS_TOTAL = _off            # 2432


# ----------------------------------------------------------------------------
# Pallas kernel: fused forward for one batch tile (B_tile samples).
# Activations are (B_tile, channels*positions) with channels/positions on the
# lane axis, so the whole network is a chain of lane-dense 2-D matmuls.
# ----------------------------------------------------------------------------
def hazard_kernel(
    # batched data (one tile per grid step)
    cj_ref, way_ref,
    # bf16 constant matrices
    mc1_ref, mc2_ref, mgap_ref, wfcc_ref,
    w1j_ref, w2j_ref,
    mw1e_ref, mw1o_ref, mw2e_ref, mw2o_ref, wfcw_ref,
    wcam1_ref, wjnt1_ref, wway1_ref,
    wf1c_ref, wf1j_ref, wf1w_ref,
    # f32 head + consolidated biases
    wf2_ref, w3_ref, bias_ref,
    # output
    out_ref,
):
    relu = lambda z: jnp.maximum(z, 0.0)
    dot = functools.partial(jnp.dot, preferred_element_type=F32)

    def bias(name):
        off, width = _BIAS_LAYOUT[name]
        return bias_ref[:, off:off + width]

    # bf16 inputs to the MXU, f32 accumulation everywhere.
    cj = cj_ref[...].astype(BF16)      # (Bt, 56): camera(48) | joint(7) | 1
    way = way_ref[...].astype(BF16)    # (Bt, 448)

    # ---------------- Camera branch ----------------
    # conv1 (bias folded via the ones column) -> relu -> conv2 -> relu -> GAP -> fc
    c1 = relu(dot(cj, mc1_ref[...]))                                   # (Bt, 256)
    c2 = relu(dot(c1.astype(BF16), mc2_ref[...]) + bias("bc2"))        # (Bt, 512)
    pooled = dot(c2.astype(BF16), mgap_ref[...])                       # (Bt, 32)
    cam_feat = dot(pooled.astype(BF16), wfcc_ref[...]) + bias("bfcc")  # (Bt, 256)

    # ---------------- Joint branch ----------------
    j1 = relu(dot(cj, w1j_ref[...]))                                   # (Bt, 128)
    jnt_feat = relu(dot(j1.astype(BF16), w2j_ref[...]) + bias("b2j"))  # (Bt, 256)

    # ---------------- Waypoint branch (CnnModel, BN folded) ---------------
    # stage 1: conv1(k7,s2,p1)+bn1 even/odd pooled positions; relu/max commute
    u_e = dot(way, mw1e_ref[...])                                      # (Bt, 256)
    u_o = dot(way, mw1o_ref[...])
    p1 = relu(jnp.maximum(u_e, u_o) + bias("bw1")).astype(BF16)
    # stage 2: conv2(k3,s2,p1)+bn2 even/odd pooled positions
    v_e = dot(p1, mw2e_ref[...])                                       # (Bt, 128)
    v_o = dot(p1, mw2o_ref[...])
    p2 = relu(jnp.maximum(v_e, v_o) + bias("bw2"))
    way_feat = dot(p2.astype(BF16), wfcw_ref[...]) + bias("bfcw")      # (Bt, 256)

    # ---------------- Fusion head (dropout = identity in eval mode) -------
    camf = relu(dot(cam_feat.astype(BF16), wcam1_ref[...]) + bias("bcam1"))
    jntf = relu(dot(jnt_feat.astype(BF16), wjnt1_ref[...]) + bias("bjnt1"))
    wayf = relu(dot(way_feat.astype(BF16), wway1_ref[...]) + bias("bway1"))
    # concat(camera, joint, waypoint) @ W  ==  split-weight sum (no concat)
    fused = relu(dot(camf.astype(BF16), wf1c_ref[...])
                 + dot(jntf.astype(BF16), wf1j_ref[...])
                 + dot(wayf.astype(BF16), wf1w_ref[...]) + bias("bf1"))  # (Bt,128)
    fused2 = relu(dot(fused, wf2_ref[...]) + bias("bf2"))              # f32 head

    # Final 32->1 layer computed transposed so the store is lane-dense (1, Bt).
    logit = jax.lax.dot_general(
        w3_ref[...], fused2,
        dimension_numbers=(((1,), (1,)), ((), ())),
        preferred_element_type=F32) + bias("b3")                       # (1, Bt)
    out_ref[...] = jax.nn.sigmoid(logit)


# ----------------------------------------------------------------------------
# Host-side construction of the constant matrices (done once, outside jit).
# ----------------------------------------------------------------------------
def _conv_matrix(w, l_in, stride, pad, in_lane, out_lane, n_in, n_out,
                 out_positions):
    """Dense matrix applying a 1-D conv in lane layout (no bias)."""
    c_out, c_in, k_sz = w.shape
    m = np.zeros((n_in, n_out), np.float32)
    for j, lo in enumerate(out_positions):
        for co in range(c_out):
            col = out_lane(co, j)
            for k in range(k_sz):
                li = stride * lo + k - pad
                if 0 <= li < l_in:
                    for ci in range(c_in):
                        m[in_lane(ci, li), col] = w[co, ci, k]
    return m


def prepare_params(p):
    """Fold BN (eval), absorb conv/pool/flatten structure into constant
    matrices, consolidate biases, and cast big matrices to bf16.  Returns
    device arrays in kernel operand order (after the 2 data operands)."""
    eps = 1e-5
    f = lambda x: np.asarray(x, np.float32)

    # ---- camera branch (rows 0..47 of cj are camera, 48..54 joint, 55 ones) --
    w1c, b1c = f(p["cam_conv1_w"]), f(p["cam_conv1_b"])     # (16,3,3), (16,)
    w2c, b2c = f(p["cam_conv2_w"]), f(p["cam_conv2_b"])     # (32,16,3), (32,)
    lc = 16
    mc1_core = _conv_matrix(w1c, lc, 1, 1,
                            in_lane=lambda ci, li: li * 3 + ci,
                            out_lane=lambda co, j: co * lc + j,
                            n_in=3 * lc, n_out=16 * lc,
                            out_positions=range(lc))                  # (48, 256)
    mc1 = np.zeros((56, 256), np.float32)
    mc1[:48] = mc1_core
    mc1[55] = np.repeat(b1c, lc)           # conv1 bias folded via ones column
    mc2 = _conv_matrix(w2c, lc, 1, 1,
                       in_lane=lambda ci, li: ci * lc + li,
                       out_lane=lambda co, j: co * lc + j,
                       n_in=16 * lc, n_out=32 * lc,
                       out_positions=range(lc))                       # (256, 512)
    mgap = np.kron(np.eye(32, dtype=np.float32),
                   np.full((lc, 1), 1.0 / lc, np.float32))            # (512, 32)
    wfcc = f(p["cam_fc_w"]).T                                         # (32, 256)

    # ---- joint branch (fc1 bias folded via ones column of cj) ----
    w1j = np.zeros((56, 128), np.float32)
    w1j[48:55] = f(p["jnt_fc1_w"]).T
    w1j[55] = f(p["jnt_fc1_b"])
    w2j = f(p["jnt_fc2_w"]).T                                         # (128, 256)

    # ---- waypoint branch (BN folded, eval mode) ----
    sc1 = f(p["bn1_g"]) / np.sqrt(f(p["bn1_v"]) + eps)
    w1w = f(p["way_conv1_w"]) * sc1[:, None, None]
    b1w = (f(p["way_conv1_b"]) - f(p["bn1_m"])) * sc1 + f(p["bn1_b"])
    sc2 = f(p["bn2_g"]) / np.sqrt(f(p["bn2_v"]) + eps)
    w2w = f(p["way_conv2_w"]) * sc2[:, None, None]
    b2w = (f(p["way_conv2_b"]) - f(p["bn2_m"])) * sc2 + f(p["bn2_b"])

    lw, l1, l2 = 64, 15, 4   # input len, post-pool1 len, post-pool2 len
    mk1 = lambda par: _conv_matrix(
        w1w, lw, 2, 1,
        in_lane=lambda ci, li: li * 7 + ci,
        out_lane=lambda co, j: co * l1 + j,
        n_in=7 * lw, n_out=16 * l1,
        out_positions=[2 * m + par for m in range(l1)])               # (448, 240)
    mk2 = lambda par: _conv_matrix(
        w2w, l1, 2, 1,
        in_lane=lambda ci, li: ci * l1 + li,
        out_lane=lambda co, j: co * l2 + j,
        n_in=16 * l1, n_out=32 * l2,
        out_positions=[2 * t + par for t in range(l2)])               # (240, 128)
    # lane-pad 240 -> 256 so stage-1/2 activations are full 128-lane multiples
    mw1e = np.zeros((448, 256), np.float32); mw1e[:, :240] = mk1(0)
    mw1o = np.zeros((448, 256), np.float32); mw1o[:, :240] = mk1(1)
    mw2e = np.zeros((256, 128), np.float32); mw2e[:240, :] = mk2(0)
    mw2o = np.zeros((256, 128), np.float32); mw2o[:240, :] = mk2(1)
    wfcw = f(p["way_fc_w"]).T                                         # (128, 256)

    # ---- fusion head ----
    wcam1 = f(p["camera_L1_w"]).T                                     # (256, 128)
    wjnt1 = f(p["joint_L1_w"]).T                                      # (256, 64)
    wway1 = f(p["waypoint_L1_w"]).T                                   # (256, 64)
    wf1 = f(p["fc1_w"]).T                                             # (256, 128)
    wf1c, wf1j, wf1w = wf1[0:128], wf1[128:192], wf1[192:256]
    wf2 = f(p["fc2_w"]).T                                             # (128, 32)
    w3 = f(p["fc3_w"])                                                # (1, 32)

    # ---- consolidated bias row (lane-aligned segments) ----
    bias_vec = np.zeros((1, _BIAS_TOTAL), np.float32)

    def put(name, v):
        off, _ = _BIAS_LAYOUT[name]
        v = np.asarray(v, np.float32).ravel()
        bias_vec[0, off:off + v.size] = v

    put("bc2", np.repeat(b2c, lc))
    put("bfcc", f(p["cam_fc_b"]))
    put("b2j", f(p["jnt_fc2_b"]))
    put("bw1", np.repeat(b1w, l1))          # 240 real values, 16 zero pad lanes
    put("bw2", np.repeat(b2w, l2))
    put("bfcw", f(p["way_fc_b"]))
    put("bcam1", f(p["camera_L1_b"]))
    put("bjnt1", f(p["joint_L1_b"]))
    put("bway1", f(p["waypoint_L1_b"]))
    put("bf1", f(p["fc1_b"]))
    put("bf2", f(p["fc2_b"]))
    put("b3", f(p["fc3_b"]))

    bf16_mats = [mc1, mc2, mgap, wfcc, w1j, w2j,
                 mw1e, mw1o, mw2e, mw2o, wfcw,
                 wcam1, wjnt1, wway1, wf1c, wf1j, wf1w]
    f32_mats = [wf2, w3, bias_vec]          # small f32 head + biases
    return tuple([jnp.asarray(m, BF16) for m in bf16_mats]
                 + [jnp.asarray(m, F32) for m in f32_mats])


# ----------------------------------------------------------------------------
# Forward wrapper (jit this): data re-layout + pallas_call.
# ----------------------------------------------------------------------------
def _choose_b_tile(b):
    r8 = lambda x: max(8, -(-x // 8) * 8)
    if b <= 128:
        return r8(b)                  # one block
    if b <= 1024:
        return r8((b + 1) // 2)       # >= 2 blocks keeps both v7x TCs busy
    return 512                        # big batches: 512-row MXU-filling tiles


def hazard_forward_pallas(prepped, camera, joint, waypoint):
    b = camera.shape[0]
    b_tile = _choose_b_tile(b)
    n_blocks = -(-b // b_tile)
    b_pad = n_blocks * b_tile

    # camera(48) | joint(7) | ones(1)  ->  one (B, 56) operand; first-layer
    # biases (camera conv1, joint fc1) are folded via the ones column.
    cj = jnp.concatenate(
        [camera.reshape(b, -1).astype(F32),
         joint.astype(F32),
         jnp.ones((b, 1), F32)], axis=1)                       # (B, 56)
    # waypoint is a free reshape (no ones-column rebuild of the big input).
    way = waypoint.reshape(b, -1).astype(F32)                  # (B, 448)

    if b_pad != b:
        # Only unaligned batches pay a pad copy (aligned batches: zero copies
        # for the big operand).
        pad = ((0, b_pad - b), (0, 0))
        cj = jnp.pad(cj, pad)
        way = jnp.pad(way, pad)

    def data_spec(a):
        return pl.BlockSpec((b_tile, a.shape[1]), lambda g: (g, 0))

    def const_spec(a):
        return pl.BlockSpec(a.shape, lambda g: (0, 0))

    in_specs = ([data_spec(cj), data_spec(way)]
                + [const_spec(a) for a in prepped])

    cost = pl.CostEstimate(flops=1_280_000 * b,
                           transcendentals=b,
                           bytes_accessed=2_020 * b + 1_400_000)

    out = pl.pallas_call(
        hazard_kernel,
        out_shape=jax.ShapeDtypeStruct((n_blocks, b_tile), F32),
        grid=(n_blocks,),
        in_specs=in_specs,
        out_specs=pl.BlockSpec((1, b_tile), lambda g: (g, 0)),
        compiler_params=pltpu.CompilerParams(
            dimension_semantics=("parallel",),
            vmem_limit_bytes=(48 * 1024 * 1024) if b_tile >= 128 else None),
        cost_estimate=cost,
    )(cj, way, *prepped)
    return out.reshape(-1)[:b].reshape(b, 1)


# ----------------------------------------------------------------------------
# Pure-JAX reference (mirrors the PyTorch forward, eval mode) for validation.
# ----------------------------------------------------------------------------
def reference_forward(p, camera, joint, waypoint):
    relu = lambda z: jnp.maximum(z, 0.0)

    def conv1d(x, w, b, stride, pad):
        y = jax.lax.conv_general_dilated(
            x, w, window_strides=(stride,), padding=[(pad, pad)],
            dimension_numbers=("NCH", "OIH", "NCH"))
        return y + b[None, :, None]

    def bn_eval(x, g, bt, m, v, eps=1e-5):
        return (x - m[None, :, None]) * (g / jnp.sqrt(v + eps))[None, :, None] + bt[None, :, None]

    def lin(x, w, b):
        return x @ w.T + b[None, :]

    def maxpool2(x):
        b_, c, l = x.shape
        return jnp.max(x.reshape(b_, c, l // 2, 2), axis=-1)

    xc = jnp.transpose(camera, (0, 2, 1))
    xc = relu(conv1d(xc, p["cam_conv1_w"], p["cam_conv1_b"], 1, 1))
    xc = relu(conv1d(xc, p["cam_conv2_w"], p["cam_conv2_b"], 1, 1))
    cam = lin(jnp.mean(xc, axis=-1), p["cam_fc_w"], p["cam_fc_b"])

    j = relu(lin(joint, p["jnt_fc1_w"], p["jnt_fc1_b"]))
    jnt = relu(lin(j, p["jnt_fc2_w"], p["jnt_fc2_b"]))

    xw = jnp.transpose(waypoint, (0, 2, 1))
    xw = maxpool2(relu(bn_eval(conv1d(xw, p["way_conv1_w"], p["way_conv1_b"], 2, 1),
                               p["bn1_g"], p["bn1_b"], p["bn1_m"], p["bn1_v"])))
    xw = maxpool2(relu(bn_eval(conv1d(xw, p["way_conv2_w"], p["way_conv2_b"], 2, 1),
                               p["bn2_g"], p["bn2_b"], p["bn2_m"], p["bn2_v"])))
    way = lin(xw.reshape(xw.shape[0], -1), p["way_fc_w"], p["way_fc_b"])

    camf = relu(lin(cam, p["camera_L1_w"], p["camera_L1_b"]))
    jntf = relu(lin(jnt, p["joint_L1_w"], p["joint_L1_b"]))
    wayf = relu(lin(way, p["waypoint_L1_w"], p["waypoint_L1_b"]))
    cat = jnp.concatenate([camf, jntf, wayf], axis=1)
    h = relu(lin(cat, p["fc1_w"], p["fc1_b"]))
    h = relu(lin(h, p["fc2_w"], p["fc2_b"]))
    return jax.nn.sigmoid(lin(h, p["fc3_w"], p["fc3_b"]))


# ----------------------------------------------------------------------------
# Deterministic parameter init (synthetic weights, PyTorch module shapes).
# ----------------------------------------------------------------------------
def make_params(key):
    ks = iter(jax.random.split(key, 64))

    def rnd(shape, scale=0.1):
        return scale * jax.random.normal(next(ks), shape, dtype=F32)

    p = {}
    p["cam_conv1_w"] = rnd((16, 3, 3));  p["cam_conv1_b"] = rnd((16,))
    p["cam_conv2_w"] = rnd((32, 16, 3)); p["cam_conv2_b"] = rnd((32,))
    p["cam_fc_w"] = rnd((256, 32));      p["cam_fc_b"] = rnd((256,))
    p["jnt_fc1_w"] = rnd((128, 7));      p["jnt_fc1_b"] = rnd((128,))
    p["jnt_fc2_w"] = rnd((256, 128));    p["jnt_fc2_b"] = rnd((256,))
    p["way_conv1_w"] = rnd((16, 7, 7));  p["way_conv1_b"] = rnd((16,))
    p["bn1_g"] = 1.0 + rnd((16,));       p["bn1_b"] = rnd((16,))
    p["bn1_m"] = rnd((16,));             p["bn1_v"] = 1.0 + jnp.abs(rnd((16,)))
    p["way_conv2_w"] = rnd((32, 16, 3)); p["way_conv2_b"] = rnd((32,))
    p["bn2_g"] = 1.0 + rnd((32,));       p["bn2_b"] = rnd((32,))
    p["bn2_m"] = rnd((32,));             p["bn2_v"] = 1.0 + jnp.abs(rnd((32,)))
    p["way_fc_w"] = rnd((256, 128));     p["way_fc_b"] = rnd((256,))
    p["camera_L1_w"] = rnd((128, 256));  p["camera_L1_b"] = rnd((128,))
    p["joint_L1_w"] = rnd((64, 256));    p["joint_L1_b"] = rnd((64,))
    p["waypoint_L1_w"] = rnd((64, 256)); p["waypoint_L1_b"] = rnd((64,))
    p["fc1_w"] = rnd((128, 256));        p["fc1_b"] = rnd((128,))
    p["fc2_w"] = rnd((32, 128));         p["fc2_b"] = rnd((32,))
    p["fc3_w"] = rnd((1, 32));           p["fc3_b"] = rnd((1,))
    return p


if __name__ == "__main__":
    params = make_params(jax.random.PRNGKey(42))
    prepped = prepare_params(params)      # one-time weight re-layout (hoisted)

    k0 = jax.random.PRNGKey(0)
    kc, kj, kw = jax.random.split(k0, 3)
    B = 2
    camera = jax.random.normal(kc, (B, 16, 3), dtype=F32)     # (B, L_cam, 3)
    joint = jax.random.normal(kj, (B, 7), dtype=F32)          # (B, 7)
    waypoint = jax.random.normal(kw, (B, 64, 7), dtype=F32)   # (B, 64, 7)

    forward = jax.jit(hazard_forward_pallas)
    pred = jax.block_until_ready(forward(prepped, camera, joint, waypoint))

    ref = reference_forward(params, camera, joint, waypoint)
    assert pred.shape == (B, 1)
    # bf16 MXU path vs f32 reference: loose tolerance (head kept in f32).
    assert jnp.allclose(pred, ref, atol=3e-2, rtol=3e-2), (pred, ref)
    print("KERNEL_OK")
</pallas_src>

<mosaic_0001>
module attributes {stable_mosaic.version = 11 : i64} {
  func.func @hazard_kernel(%arg0: i32, %arg1: memref<8x56xf32, #tpu.memory_space<vmem>>, %arg2: memref<8x448xf32, #tpu.memory_space<vmem>>, %arg3: memref<56x256xbf16, #tpu.memory_space<vmem>>, %arg4: memref<256x512xbf16, #tpu.memory_space<vmem>>, %arg5: memref<512x32xbf16, #tpu.memory_space<vmem>>, %arg6: memref<32x256xbf16, #tpu.memory_space<vmem>>, %arg7: memref<56x128xbf16, #tpu.memory_space<vmem>>, %arg8: memref<128x256xbf16, #tpu.memory_space<vmem>>, %arg9: memref<448x256xbf16, #tpu.memory_space<vmem>>, %arg10: memref<448x256xbf16, #tpu.memory_space<vmem>>, %arg11: memref<256x128xbf16, #tpu.memory_space<vmem>>, %arg12: memref<256x128xbf16, #tpu.memory_space<vmem>>, %arg13: memref<128x256xbf16, #tpu.memory_space<vmem>>, %arg14: memref<256x128xbf16, #tpu.memory_space<vmem>>, %arg15: memref<256x64xbf16, #tpu.memory_space<vmem>>, %arg16: memref<256x64xbf16, #tpu.memory_space<vmem>>, %arg17: memref<128x128xbf16, #tpu.memory_space<vmem>>, %arg18: memref<64x128xbf16, #tpu.memory_space<vmem>>, %arg19: memref<64x128xbf16, #tpu.memory_space<vmem>>, %arg20: memref<128x32xf32, #tpu.memory_space<vmem>>, %arg21: memref<1x32xf32, #tpu.memory_space<vmem>>, %arg22: memref<1x2432xf32, #tpu.memory_space<vmem>>, %arg23: memref<1x8xf32, #tpu.memory_space<vmem>>) attributes {dimension_semantics = [#tpu.dimension_semantics<parallel>], iteration_bounds = array<i64: 1>, scalar_prefetch = 0 : i64, scratch_operands = 0 : i64, tpu.core_type = #tpu.core_type<tc>, window_params = [{transform_indices = @transform_0, window_bounds = array<i64: 8, 56>}, {transform_indices = @transform_1, window_bounds = array<i64: 8, 448>}, {pipeline_mode = #tpu.pipeline_mode<synchronous>, transform_indices = @transform_2, window_bounds = array<i64: 56, 256>}, {pipeline_mode = #tpu.pipeline_mode<synchronous>, transform_indices = @transform_3, window_bounds = array<i64: 256, 512>}, {pipeline_mode = #tpu.pipeline_mode<synchronous>, transform_indices = @transform_4, window_bounds = array<i64: 512, 32>}, {pipeline_mode = #tpu.pipeline_mode<synchronous>, transform_indices = @transform_5, window_bounds = array<i64: 32, 256>}, {pipeline_mode = #tpu.pipeline_mode<synchronous>, transform_indices = @transform_6, window_bounds = array<i64: 56, 128>}, {pipeline_mode = #tpu.pipeline_mode<synchronous>, transform_indices = @transform_7, window_bounds = array<i64: 128, 256>}, {pipeline_mode = #tpu.pipeline_mode<synchronous>, transform_indices = @transform_8, window_bounds = array<i64: 448, 256>}, {pipeline_mode = #tpu.pipeline_mode<synchronous>, transform_indices = @transform_9, window_bounds = array<i64: 448, 256>}, {pipeline_mode = #tpu.pipeline_mode<synchronous>, transform_indices = @transform_10, window_bounds = array<i64: 256, 128>}, {pipeline_mode = #tpu.pipeline_mode<synchronous>, transform_indices = @transform_11, window_bounds = array<i64: 256, 128>}, {pipeline_mode = #tpu.pipeline_mode<synchronous>, transform_indices = @transform_12, window_bounds = array<i64: 128, 256>}, {pipeline_mode = #tpu.pipeline_mode<synchronous>, transform_indices = @transform_13, window_bounds = array<i64: 256, 128>}, {pipeline_mode = #tpu.pipeline_mode<synchronous>, transform_indices = @transform_14, window_bounds = array<i64: 256, 64>}, {pipeline_mode = #tpu.pipeline_mode<synchronous>, transform_indices = @transform_15, window_bounds = array<i64: 256, 64>}, {pipeline_mode = #tpu.pipeline_mode<synchronous>, transform_indices = @transform_16, window_bounds = array<i64: 128, 128>}, {pipeline_mode = #tpu.pipeline_mode<synchronous>, transform_indices = @transform_17, window_bounds = array<i64: 64, 128>}, {pipeline_mode = #tpu.pipeline_mode<synchronous>, transform_indices = @transform_18, window_bounds = array<i64: 64, 128>}, {pipeline_mode = #tpu.pipeline_mode<synchronous>, transform_indices = @transform_19, window_bounds = array<i64: 128, 32>}, {pipeline_mode = #tpu.pipeline_mode<synchronous>, transform_indices = @transform_20, window_bounds = array<i64: 1, 32>}, {pipeline_mode = #tpu.pipeline_mode<synchronous>, transform_indices = @transform_21, window_bounds = array<i64: 1, 2432>}, {transform_indices = @transform_22, window_bounds = array<i64: 1, 8>}]} {
    %c0 = arith.constant 0 : index
    %c0_0 = arith.constant 0 : index
    %0 = vector.load %arg1[%c0, %c0_0] : memref<8x56xf32, #tpu.memory_space<vmem>>, vector<8x56xf32>
    %1 = arith.truncf %0 : vector<8x56xf32> to vector<8x56xbf16>
    %c0_1 = arith.constant 0 : index
    %c0_2 = arith.constant 0 : index
    %2 = vector.load %arg2[%c0_1, %c0_2] : memref<8x448xf32, #tpu.memory_space<vmem>>, vector<8x448xf32>
    %3 = arith.truncf %2 : vector<8x448xf32> to vector<8x448xbf16>
    %c0_3 = arith.constant 0 : index
    %c0_4 = arith.constant 0 : index
    %4 = vector.load %arg3[%c0_3, %c0_4] : memref<56x256xbf16, #tpu.memory_space<vmem>>, vector<56x256xbf16>
    %cst = arith.constant dense<0.000000e+00> : vector<8x256xf32>
    %5 = tpu.matmul %1, %4, %cst {dimension_numbers = #tpu.dot_dimension_numbers<[1], [0], [0], [1], [0, 0, 1, 1], [], []>} : vector<8x56xbf16>, vector<56x256xbf16>, vector<8x256xf32> -> vector<8x256xf32>
    %cst_5 = arith.constant 0.000000e+00 : f32
    %6 = vector.broadcast %cst_5 : f32 to vector<8x256xf32>
    %7 = arith.maximumf %5, %6 : vector<8x256xf32>
    %8 = arith.truncf %7 : vector<8x256xf32> to vector<8x256xbf16>
    %c0_6 = arith.constant 0 : index
    %c0_7 = arith.constant 0 : index
    %9 = vector.load %arg4[%c0_6, %c0_7] : memref<256x512xbf16, #tpu.memory_space<vmem>>, vector<256x512xbf16>
    %cst_8 = arith.constant dense<0.000000e+00> : vector<8x512xf32>
    %10 = tpu.matmul %8, %9, %cst_8 {dimension_numbers = #tpu.dot_dimension_numbers<[1], [0], [0], [1], [0, 0, 1, 1], [], []>} : vector<8x256xbf16>, vector<256x512xbf16>, vector<8x512xf32> -> vector<8x512xf32>
    %c0_9 = arith.constant 0 : index
    %c0_10 = arith.constant 0 : index
    %11 = vector.load %arg22[%c0_9, %c0_10] : memref<1x2432xf32, #tpu.memory_space<vmem>>, vector<1x512xf32>
    %12 = vector.broadcast %11 : vector<1x512xf32> to vector<8x512xf32>
    %13 = arith.addf %10, %12 : vector<8x512xf32>
    %cst_11 = arith.constant 0.000000e+00 : f32
    %14 = vector.broadcast %cst_11 : f32 to vector<8x512xf32>
    %15 = arith.maximumf %13, %14 : vector<8x512xf32>
    %16 = arith.truncf %15 : vector<8x512xf32> to vector<8x512xbf16>
    %c0_12 = arith.constant 0 : index
    %c0_13 = arith.constant 0 : index
    %17 = vector.load %arg5[%c0_12, %c0_13] : memref<512x32xbf16, #tpu.memory_space<vmem>>, vector<512x32xbf16>
    %cst_14 = arith.constant dense<0.000000e+00> : vector<8x32xf32>
    %18 = tpu.matmul %16, %17, %cst_14 {dimension_numbers = #tpu.dot_dimension_numbers<[1], [0], [0], [1], [0, 0, 1, 1], [], []>} : vector<8x512xbf16>, vector<512x32xbf16>, vector<8x32xf32> -> vector<8x32xf32>
    %19 = arith.truncf %18 : vector<8x32xf32> to vector<8x32xbf16>
    %c0_15 = arith.constant 0 : index
    %c0_16 = arith.constant 0 : index
    %20 = vector.load %arg6[%c0_15, %c0_16] : memref<32x256xbf16, #tpu.memory_space<vmem>>, vector<32x256xbf16>
    %cst_17 = arith.constant dense<0.000000e+00> : vector<8x256xf32>
    %21 = tpu.matmul %19, %20, %cst_17 {dimension_numbers = #tpu.dot_dimension_numbers<[1], [0], [0], [1], [0, 0, 1, 1], [], []>} : vector<8x32xbf16>, vector<32x256xbf16>, vector<8x256xf32> -> vector<8x256xf32>
    %c0_18 = arith.constant 0 : index
    %c512 = arith.constant 512 : index
    %22 = vector.load %arg22[%c0_18, %c512] : memref<1x2432xf32, #tpu.memory_space<vmem>>, vector<1x256xf32>
    %23 = vector.broadcast %22 : vector<1x256xf32> to vector<8x256xf32>
    %24 = arith.addf %21, %23 : vector<8x256xf32>
    %c0_19 = arith.constant 0 : index
    %c0_20 = arith.constant 0 : index
    %25 = vector.load %arg7[%c0_19, %c0_20] : memref<56x128xbf16, #tpu.memory_space<vmem>>, vector<56x128xbf16>
    %cst_21 = arith.constant dense<0.000000e+00> : vector<8x128xf32>
    %26 = tpu.matmul %1, %25, %cst_21 {dimension_numbers = #tpu.dot_dimension_numbers<[1], [0], [0], [1], [0, 0, 1, 1], [], []>} : vector<8x56xbf16>, vector<56x128xbf16>, vector<8x128xf32> -> vector<8x128xf32>
    %cst_22 = arith.constant 0.000000e+00 : f32
    %27 = vector.broadcast %cst_22 : f32 to vector<8x128xf32>
    %28 = arith.maximumf %26, %27 : vector<8x128xf32>
    %29 = arith.truncf %28 : vector<8x128xf32> to vector<8x128xbf16>
    %c0_23 = arith.constant 0 : index
    %c0_24 = arith.constant 0 : index
    %30 = vector.load %arg8[%c0_23, %c0_24] : memref<128x256xbf16, #tpu.memory_space<vmem>>, vector<128x256xbf16>
    %cst_25 = arith.constant dense<0.000000e+00> : vector<8x256xf32>
    %31 = tpu.matmul %29, %30, %cst_25 {dimension_numbers = #tpu.dot_dimension_numbers<[1], [0], [0], [1], [0, 0, 1, 1], [], []>} : vector<8x128xbf16>, vector<128x256xbf16>, vector<8x256xf32> -> vector<8x256xf32>
    %c0_26 = arith.constant 0 : index
    %c768 = arith.constant 768 : index
    %32 = vector.load %arg22[%c0_26, %c768] : memref<1x2432xf32, #tpu.memory_space<vmem>>, vector<1x256xf32>
    %33 = vector.broadcast %32 : vector<1x256xf32> to vector<8x256xf32>
    %34 = arith.addf %31, %33 : vector<8x256xf32>
    %cst_27 = arith.constant 0.000000e+00 : f32
    %35 = vector.broadcast %cst_27 : f32 to vector<8x256xf32>
    %36 = arith.maximumf %34, %35 : vector<8x256xf32>
    %c0_28 = arith.constant 0 : index
    %c0_29 = arith.constant 0 : index
    %37 = vector.load %arg9[%c0_28, %c0_29] : memref<448x256xbf16, #tpu.memory_space<vmem>>, vector<448x256xbf16>
    %cst_30 = arith.constant dense<0.000000e+00> : vector<8x256xf32>
    %38 = tpu.matmul %3, %37, %cst_30 {dimension_numbers = #tpu.dot_dimension_numbers<[1], [0], [0], [1], [0, 0, 1, 1], [], []>} : vector<8x448xbf16>, vector<448x256xbf16>, vector<8x256xf32> -> vector<8x256xf32>
    %c0_31 = arith.constant 0 : index
    %c0_32 = arith.constant 0 : index
    %39 = vector.load %arg10[%c0_31, %c0_32] : memref<448x256xbf16, #tpu.memory_space<vmem>>, vector<448x256xbf16>
    %cst_33 = arith.constant dense<0.000000e+00> : vector<8x256xf32>
    %40 = tpu.matmul %3, %39, %cst_33 {dimension_numbers = #tpu.dot_dimension_numbers<[1], [0], [0], [1], [0, 0, 1, 1], [], []>} : vector<8x448xbf16>, vector<448x256xbf16>, vector<8x256xf32> -> vector<8x256xf32>
    %41 = arith.maximumf %38, %40 : vector<8x256xf32>
    %c0_34 = arith.constant 0 : index
    %c1024 = arith.constant 1024 : index
    %42 = vector.load %arg22[%c0_34, %c1024] : memref<1x2432xf32, #tpu.memory_space<vmem>>, vector<1x256xf32>
    %43 = vector.broadcast %42 : vector<1x256xf32> to vector<8x256xf32>
    %44 = arith.addf %41, %43 : vector<8x256xf32>
    %cst_35 = arith.constant 0.000000e+00 : f32
    %45 = vector.broadcast %cst_35 : f32 to vector<8x256xf32>
    %46 = arith.maximumf %44, %45 : vector<8x256xf32>
    %47 = arith.truncf %46 : vector<8x256xf32> to vector<8x256xbf16>
    %c0_36 = arith.constant 0 : index
    %c0_37 = arith.constant 0 : index
    %48 = vector.load %arg11[%c0_36, %c0_37] : memref<256x128xbf16, #tpu.memory_space<vmem>>, vector<256x128xbf16>
    %cst_38 = arith.constant dense<0.000000e+00> : vector<8x128xf32>
    %49 = tpu.matmul %47, %48, %cst_38 {dimension_numbers = #tpu.dot_dimension_numbers<[1], [0], [0], [1], [0, 0, 1, 1], [], []>} : vector<8x256xbf16>, vector<256x128xbf16>, vector<8x128xf32> -> vector<8x128xf32>
    %c0_39 = arith.constant 0 : index
    %c0_40 = arith.constant 0 : index
    %50 = vector.load %arg12[%c0_39, %c0_40] : memref<256x128xbf16, #tpu.memory_space<vmem>>, vector<256x128xbf16>
    %cst_41 = arith.constant dense<0.000000e+00> : vector<8x128xf32>
    %51 = tpu.matmul %47, %50, %cst_41 {dimension_numbers = #tpu.dot_dimension_numbers<[1], [0], [0], [1], [0, 0, 1, 1], [], []>} : vector<8x256xbf16>, vector<256x128xbf16>, vector<8x128xf32> -> vector<8x128xf32>
    %52 = arith.maximumf %49, %51 : vector<8x128xf32>
    %c0_42 = arith.constant 0 : index
    %c1280 = arith.constant 1280 : index
    %53 = vector.load %arg22[%c0_42, %c1280] : memref<1x2432xf32, #tpu.memory_space<vmem>>, vector<1x128xf32>
    %54 = vector.broadcast %53 : vector<1x128xf32> to vector<8x128xf32>
    %55 = arith.addf %52, %54 : vector<8x128xf32>
    %cst_43 = arith.constant 0.000000e+00 : f32
    %56 = vector.broadcast %cst_43 : f32 to vector<8x128xf32>
    %57 = arith.maximumf %55, %56 : vector<8x128xf32>
    %58 = arith.truncf %57 : vector<8x128xf32> to vector<8x128xbf16>
    %c0_44 = arith.constant 0 : index
    %c0_45 = arith.constant 0 : index
    %59 = vector.load %arg13[%c0_44, %c0_45] : memref<128x256xbf16, #tpu.memory_space<vmem>>, vector<128x256xbf16>
    %cst_46 = arith.constant dense<0.000000e+00> : vector<8x256xf32>
    %60 = tpu.matmul %58, %59, %cst_46 {dimension_numbers = #tpu.dot_dimension_numbers<[1], [0], [0], [1], [0, 0, 1, 1], [], []>} : vector<8x128xbf16>, vector<128x256xbf16>, vector<8x256xf32> -> vector<8x256xf32>
    %c0_47 = arith.constant 0 : index
    %c1408 = arith.constant 1408 : index
    %61 = vector.load %arg22[%c0_47, %c1408] : memref<1x2432xf32, #tpu.memory_space<vmem>>, vector<1x256xf32>
    %62 = vector.broadcast %61 : vector<1x256xf32> to vector<8x256xf32>
    %63 = arith.addf %60, %62 : vector<8x256xf32>
    %64 = arith.truncf %24 : vector<8x256xf32> to vector<8x256xbf16>
    %c0_48 = arith.constant 0 : index
    %c0_49 = arith.constant 0 : index
    %65 = vector.load %arg14[%c0_48, %c0_49] : memref<256x128xbf16, #tpu.memory_space<vmem>>, vector<256x128xbf16>
    %cst_50 = arith.constant dense<0.000000e+00> : vector<8x128xf32>
    %66 = tpu.matmul %64, %65, %cst_50 {dimension_numbers = #tpu.dot_dimension_numbers<[1], [0], [0], [1], [0, 0, 1, 1], [], []>} : vector<8x256xbf16>, vector<256x128xbf16>, vector<8x128xf32> -> vector<8x128xf32>
    %c0_51 = arith.constant 0 : index
    %c1664 = arith.constant 1664 : index
    %67 = vector.load %arg22[%c0_51, %c1664] : memref<1x2432xf32, #tpu.memory_space<vmem>>, vector<1x128xf32>
    %68 = vector.broadcast %67 : vector<1x128xf32> to vector<8x128xf32>
    %69 = arith.addf %66, %68 : vector<8x128xf32>
    %cst_52 = arith.constant 0.000000e+00 : f32
    %70 = vector.broadcast %cst_52 : f32 to vector<8x128xf32>
    %71 = arith.maximumf %69, %70 : vector<8x128xf32>
    %72 = arith.truncf %36 : vector<8x256xf32> to vector<8x256xbf16>
    %c0_53 = arith.constant 0 : index
    %c0_54 = arith.constant 0 : index
    %73 = vector.load %arg15[%c0_53, %c0_54] : memref<256x64xbf16, #tpu.memory_space<vmem>>, vector<256x64xbf16>
    %cst_55 = arith.constant dense<0.000000e+00> : vector<8x64xf32>
    %74 = tpu.matmul %72, %73, %cst_55 {dimension_numbers = #tpu.dot_dimension_numbers<[1], [0], [0], [1], [0, 0, 1, 1], [], []>} : vector<8x256xbf16>, vector<256x64xbf16>, vector<8x64xf32> -> vector<8x64xf32>
    %c0_56 = arith.constant 0 : index
    %c1792 = arith.constant 1792 : index
    %75 = vector.load %arg22[%c0_56, %c1792] : memref<1x2432xf32, #tpu.memory_space<vmem>>, vector<1x64xf32>
    %76 = vector.broadcast %75 : vector<1x64xf32> to vector<8x64xf32>
    %77 = arith.addf %74, %76 : vector<8x64xf32>
    %cst_57 = arith.constant 0.000000e+00 : f32
    %78 = vector.broadcast %cst_57 : f32 to vector<8x64xf32>
    %79 = arith.maximumf %77, %78 : vector<8x64xf32>
    %80 = arith.truncf %63 : vector<8x256xf32> to vector<8x256xbf16>
    %c0_58 = arith.constant 0 : index
    %c0_59 = arith.constant 0 : index
    %81 = vector.load %arg16[%c0_58, %c0_59] : memref<256x64xbf16, #tpu.memory_space<vmem>>, vector<256x64xbf16>
    %cst_60 = arith.constant dense<0.000000e+00> : vector<8x64xf32>
    %82 = tpu.matmul %80, %81, %cst_60 {dimension_numbers = #tpu.dot_dimension_numbers<[1], [0], [0], [1], [0, 0, 1, 1], [], []>} : vector<8x256xbf16>, vector<256x64xbf16>, vector<8x64xf32> -> vector<8x64xf32>
    %c0_61 = arith.constant 0 : index
    %c1920 = arith.constant 1920 : index
    %83 = vector.load %arg22[%c0_61, %c1920] : memref<1x2432xf32, #tpu.memory_space<vmem>>, vector<1x64xf32>
    %84 = vector.broadcast %83 : vector<1x64xf32> to vector<8x64xf32>
    %85 = arith.addf %82, %84 : vector<8x64xf32>
    %cst_62 = arith.constant 0.000000e+00 : f32
    %86 = vector.broadcast %cst_62 : f32 to vector<8x64xf32>
    %87 = arith.maximumf %85, %86 : vector<8x64xf32>
    %88 = arith.truncf %71 : vector<8x128xf32> to vector<8x128xbf16>
    %c0_63 = arith.constant 0 : index
    %c0_64 = arith.constant 0 : index
    %89 = vector.load %arg17[%c0_63, %c0_64] : memref<128x128xbf16, #tpu.memory_space<vmem>>, vector<128x128xbf16>
    %cst_65 = arith.constant dense<0.000000e+00> : vector<8x128xf32>
    %90 = tpu.matmul %88, %89, %cst_65 {dimension_numbers = #tpu.dot_dimension_numbers<[1], [0], [0], [1], [0, 0, 1, 1], [], []>} : vector<8x128xbf16>, vector<128x128xbf16>, vector<8x128xf32> -> vector<8x128xf32>
    %91 = arith.truncf %79 : vector<8x64xf32> to vector<8x64xbf16>
    %c0_66 = arith.constant 0 : index
    %c0_67 = arith.constant 0 : index
    %92 = vector.load %arg18[%c0_66, %c0_67] : memref<64x128xbf16, #tpu.memory_space<vmem>>, vector<64x128xbf16>
    %cst_68 = arith.constant dense<0.000000e+00> : vector<8x128xf32>
    %93 = tpu.matmul %91, %92, %cst_68 {dimension_numbers = #tpu.dot_dimension_numbers<[1], [0], [0], [1], [0, 0, 1, 1], [], []>} : vector<8x64xbf16>, vector<64x128xbf16>, vector<8x128xf32> -> vector<8x128xf32>
    %94 = arith.addf %90, %93 : vector<8x128xf32>
    %95 = arith.truncf %87 : vector<8x64xf32> to vector<8x64xbf16>
    %c0_69 = arith.constant 0 : index
    %c0_70 = arith.constant 0 : index
    %96 = vector.load %arg19[%c0_69, %c0_70] : memref<64x128xbf16, #tpu.memory_space<vmem>>, vector<64x128xbf16>
    %cst_71 = arith.constant dense<0.000000e+00> : vector<8x128xf32>
    %97 = tpu.matmul %95, %96, %cst_71 {dimension_numbers = #tpu.dot_dimension_numbers<[1], [0], [0], [1], [0, 0, 1, 1], [], []>} : vector<8x64xbf16>, vector<64x128xbf16>, vector<8x128xf32> -> vector<8x128xf32>
    %98 = arith.addf %94, %97 : vector<8x128xf32>
    %c0_72 = arith.constant 0 : index
    %c2048 = arith.constant 2048 : index
    %99 = vector.load %arg22[%c0_72, %c2048] : memref<1x2432xf32, #tpu.memory_space<vmem>>, vector<1x128xf32>
    %100 = vector.broadcast %99 : vector<1x128xf32> to vector<8x128xf32>
    %101 = arith.addf %98, %100 : vector<8x128xf32>
    %cst_73 = arith.constant 0.000000e+00 : f32
    %102 = vector.broadcast %cst_73 : f32 to vector<8x128xf32>
    %103 = arith.maximumf %101, %102 : vector<8x128xf32>
    %c0_74 = arith.constant 0 : index
    %c0_75 = arith.constant 0 : index
    %104 = vector.load %arg20[%c0_74, %c0_75] : memref<128x32xf32, #tpu.memory_space<vmem>>, vector<128x32xf32>
    %cst_76 = arith.constant dense<0.000000e+00> : vector<8x32xf32>
    %105 = tpu.matmul %103, %104, %cst_76 {dimension_numbers = #tpu.dot_dimension_numbers<[1], [0], [0], [1], [0, 0, 1, 1], [], []>} : vector<8x128xf32>, vector<128x32xf32>, vector<8x32xf32> -> vector<8x32xf32>
    %c0_77 = arith.constant 0 : index
    %c2176 = arith.constant 2176 : index
    %106 = vector.load %arg22[%c0_77, %c2176] : memref<1x2432xf32, #tpu.memory_space<vmem>>, vector<1x32xf32>
    %107 = vector.broadcast %106 : vector<1x32xf32> to vector<8x32xf32>
    %108 = arith.addf %105, %107 : vector<8x32xf32>
    %cst_78 = arith.constant 0.000000e+00 : f32
    %109 = vector.broadcast %cst_78 : f32 to vector<8x32xf32>
    %110 = arith.maximumf %108, %109 : vector<8x32xf32>
    %c0_79 = arith.constant 0 : index
    %c0_80 = arith.constant 0 : index
    %111 = vector.load %arg21[%c0_79, %c0_80] : memref<1x32xf32, #tpu.memory_space<vmem>>, vector<1x32xf32>
    %cst_81 = arith.constant dense<0.000000e+00> : vector<1x8xf32>
    %112 = tpu.matmul %111, %110, %cst_81 {dimension_numbers = #tpu.dot_dimension_numbers<[1], [1], [0], [0], [0, 0, 1, 0], [], []>} : vector<1x32xf32>, vector<8x32xf32>, vector<1x8xf32> -> vector<1x8xf32>
    %c0_82 = arith.constant 0 : index
    %c2304 = arith.constant 2304 : index
    %113 = vector.load %arg22[%c0_82, %c2304] : memref<1x2432xf32, #tpu.memory_space<vmem>>, vector<1x1xf32>
    %114 = vector.broadcast %113 : vector<1x1xf32> to vector<1x8xf32>
    %115 = arith.addf %112, %114 : vector<1x8xf32>
    %116 = arith.negf %115 : vector<1x8xf32>
    %117 = math.exp %116 : vector<1x8xf32>
    %cst_83 = arith.constant 1.000000e+00 : f32
    %118 = vector.broadcast %cst_83 : f32 to vector<1x8xf32>
    %119 = arith.addf %118, %117 : vector<1x8xf32>
    %120 = arith.divf %118, %119 : vector<1x8xf32>
    %c0_84 = arith.constant 0 : index
    %c0_85 = arith.constant 0 : index
    %121 = vector.load %arg23[%c0_84, %c0_85] : memref<1x8xf32, #tpu.memory_space<vmem>>, vector<1x8xf32>
    tpu.vector_store %arg23[%c0_84, %c0_85], %120 {strides = array<i32>} : memref<1x8xf32, #tpu.memory_space<vmem>>, vector<1x8xf32>,
    return
  }
  func.func @transform_0(%arg0: i32) -> (i32, i32) {
    %c0_i32 = arith.constant 0 : i32
    %c0_i32_0 = arith.constant 0 : i32
    return %arg0, %c0_i32 : i32, i32
  }
  func.func @transform_1(%arg0: i32) -> (i32, i32) {
    %c0_i32 = arith.constant 0 : i32
    %c0_i32_0 = arith.constant 0 : i32
    return %arg0, %c0_i32 : i32, i32
  }
  func.func @transform_2(%arg0: i32) -> (i32, i32) {
    %c0_i32 = arith.constant 0 : i32
    %c0_i32_0 = arith.constant 0 : i32
    %c0_i32_1 = arith.constant 0 : i32
    return %c0_i32, %c0_i32_0 : i32, i32
  }
  func.func @transform_3(%arg0: i32) -> (i32, i32) {
    %c0_i32 = arith.constant 0 : i32
    %c0_i32_0 = arith.constant 0 : i32
    %c0_i32_1 = arith.constant 0 : i32
    return %c0_i32, %c0_i32_0 : i32, i32
  }
  func.func @transform_4(%arg0: i32) -> (i32, i32) {
    %c0_i32 = arith.constant 0 : i32
    %c0_i32_0 = arith.constant 0 : i32
    %c0_i32_1 = arith.constant 0 : i32
    return %c0_i32, %c0_i32_0 : i32, i32
  }
  func.func @transform_5(%arg0: i32) -> (i32, i32) {
    %c0_i32 = arith.constant 0 : i32
    %c0_i32_0 = arith.constant 0 : i32
    %c0_i32_1 = arith.constant 0 : i32
    return %c0_i32, %c0_i32_0 : i32, i32
  }
  func.func @transform_6(%arg0: i32) -> (i32, i32) {
    %c0_i32 = arith.constant 0 : i32
    %c0_i32_0 = arith.constant 0 : i32
    %c0_i32_1 = arith.constant 0 : i32
    return %c0_i32, %c0_i32_0 : i32, i32
  }
  func.func @transform_7(%arg0: i32) -> (i32, i32) {
    %c0_i32 = arith.constant 0 : i32
    %c0_i32_0 = arith.constant 0 : i32
    %c0_i32_1 = arith.constant 0 : i32
    return %c0_i32, %c0_i32_0 : i32, i32
  }
  func.func @transform_8(%arg0: i32) -> (i32, i32) {
    %c0_i32 = arith.constant 0 : i32
    %c0_i32_0 = arith.constant 0 : i32
    %c0_i32_1 = arith.constant 0 : i32
    return %c0_i32, %c0_i32_0 : i32, i32
  }
  func.func @transform_9(%arg0: i32) -> (i32, i32) {
    %c0_i32 = arith.constant 0 : i32
    %c0_i32_0 = arith.constant 0 : i32
    %c0_i32_1 = arith.constant 0 : i32
    return %c0_i32, %c0_i32_0 : i32, i32
  }
  func.func @transform_10(%arg0: i32) -> (i32, i32) {
    %c0_i32 = arith.constant 0 : i32
    %c0_i32_0 = arith.constant 0 : i32
    %c0_i32_1 = arith.constant 0 : i32
    return %c0_i32, %c0_i32_0 : i32, i32
  }
  func.func @transform_11(%arg0: i32) -> (i32, i32) {
    %c0_i32 = arith.constant 0 : i32
    %c0_i32_0 = arith.constant 0 : i32
    %c0_i32_1 = arith.constant 0 : i32
    return %c0_i32, %c0_i32_0 : i32, i32
  }
  func.func @transform_12(%arg0: i32) -> (i32, i32) {
    %c0_i32 = arith.constant 0 : i32
    %c0_i32_0 = arith.constant 0 : i32
    %c0_i32_1 = arith.constant 0 : i32
    return %c0_i32, %c0_i32_0 : i32, i32
  }
  func.func @transform_13(%arg0: i32) -> (i32, i32) {
    %c0_i32 = arith.constant 0 : i32
    %c0_i32_0 = arith.constant 0 : i32
    %c0_i32_1 = arith.constant 0 : i32
    return %c0_i32, %c0_i32_0 : i32, i32
  }
  func.func @transform_14(%arg0: i32) -> (i32, i32) {
    %c0_i32 = arith.constant 0 : i32
    %c0_i32_0 = arith.constant 0 : i32
    %c0_i32_1 = arith.constant 0 : i32
    return %c0_i32, %c0_i32_0 : i32, i32
  }
  func.func @transform_15(%arg0: i32) -> (i32, i32) {
    %c0_i32 = arith.constant 0 : i32
    %c0_i32_0 = arith.constant 0 : i32
    %c0_i32_1 = arith.constant 0 : i32
    return %c0_i32, %c0_i32_0 : i32, i32
  }
  func.func @transform_16(%arg0: i32) -> (i32, i32) {
    %c0_i32 = arith.constant 0 : i32
    %c0_i32_0 = arith.constant 0 : i32
    %c0_i32_1 = arith.constant 0 : i32
    return %c0_i32, %c0_i32_0 : i32, i32
  }
  func.func @transform_17(%arg0: i32) -> (i32, i32) {
    %c0_i32 = arith.constant 0 : i32
    %c0_i32_0 = arith.constant 0 : i32
    %c0_i32_1 = arith.constant 0 : i32
    return %c0_i32, %c0_i32_0 : i32, i32
  }
  func.func @transform_18(%arg0: i32) -> (i32, i32) {
    %c0_i32 = arith.constant 0 : i32
    %c0_i32_0 = arith.constant 0 : i32
    %c0_i32_1 = arith.constant 0 : i32
    return %c0_i32, %c0_i32_0 : i32, i32
  }
  func.func @transform_19(%arg0: i32) -> (i32, i32) {
    %c0_i32 = arith.constant 0 : i32
    %c0_i32_0 = arith.constant 0 : i32
    %c0_i32_1 = arith.constant 0 : i32
    return %c0_i32, %c0_i32_0 : i32, i32
  }
  func.func @transform_20(%arg0: i32) -> (i32, i32) {
    %c0_i32 = arith.constant 0 : i32
    %c0_i32_0 = arith.constant 0 : i32
    %c0_i32_1 = arith.constant 0 : i32
    return %c0_i32, %c0_i32_0 : i32, i32
  }
  func.func @transform_21(%arg0: i32) -> (i32, i32) {
    %c0_i32 = arith.constant 0 : i32
    %c0_i32_0 = arith.constant 0 : i32
    %c0_i32_1 = arith.constant 0 : i32
    return %c0_i32, %c0_i32_0 : i32, i32
  }
  func.func @transform_22(%arg0: i32) -> (i32, i32) {
    %c0_i32 = arith.constant 0 : i32
    %c0_i32_0 = arith.constant 0 : i32
    return %arg0, %c0_i32 : i32, i32
  }
}

</mosaic_0001>

<bundles_post_ra>
// kernel: hazard_forward_pallas.1
= control target key start
LH: loop header
LB: loop body
LE: loop exit
PB: predicated region body
PF: predicated region fallthrough
CT: control target
= control target key end

     0   :  { %s6954_s0 = inlined_call_operand.vmem [shape: f32[8,56], index: 0, kind: input, shape index: {}]   ;;  %s6955_s1 = inlined_call_operand.vmem [shape: f32[8,448], index: 1, kind: input, shape index: {}]   ;;  %s6956_s2 = inlined_call_operand.hbm [shape: bf16[56,256], index: 2, kind: input, shape index: {}]   ;;  %s6957_s3 = inlined_call_operand.vmem [shape: bf16[256,512], index: 3, kind: input, shape index: {}]   ;;  %s6958_s4 = inlined_call_operand.vmem [shape: bf16[512,32], index: 4, kind: input, shape index: {}]   ;;  %s6959_s5 = inlined_call_operand.hbm [shape: bf16[32,256], index: 5, kind: input, shape index: {}]   ;;  %s6960_s6 = inlined_call_operand.hbm [shape: bf16[56,128], index: 6, kind: input, shape index: {}]   ;;  %s6961_s7 = inlined_call_operand.vmem [shape: bf16[128,256], index: 7, kind: input, shape index: {}]   ;;  %s6962_s8 = inlined_call_operand.vmem [shape: bf16[448,256], index: 8, kind: input, shape index: {}]   ;;  %s6963_s9 = inlined_call_operand.hbm [shape: bf16[448,256], index: 9, kind: input, shape index: {}]   ;;  %s6964_s10 = inlined_call_operand.vmem [shape: bf16[256,128], index: 10, kind: input, shape index: {}]   ;;  %s6965_s11 = inlined_call_operand.hbm [shape: bf16[256,128], index: 11, kind: input, shape index: {}]   ;;  %s6966_s12 = inlined_call_operand.hbm [shape: bf16[128,256], index: 12, kind: input, shape index: {}]   ;;  %s6967_s13 = inlined_call_operand.hbm [shape: bf16[256,128], index: 13, kind: input, shape index: {}]   ;;  %s6968_s14 = inlined_call_operand.vmem [shape: bf16[256,64], index: 14, kind: input, shape index: {}]   ;;  %s6969_s15 = inlined_call_operand.vmem [shape: bf16[256,64], index: 15, kind: input, shape index: {}]   ;;  %s6970_s16 = inlined_call_operand.vmem [shape: bf16[128,128], index: 16, kind: input, shape index: {}]   ;;  %s6971_s17 = inlined_call_operand.hbm [shape: bf16[64,128], index: 17, kind: input, shape index: {}]   ;;  %s6972_s18 = inlined_call_operand.hbm [shape: bf16[64,128], index: 18, kind: input, shape index: {}]   ;;  %s6973_s19 = inlined_call_operand.vmem [shape: f32[128,32], index: 19, kind: input, shape index: {}]   ;;  %s6974_s20 = inlined_call_operand.vmem [shape: f32[1,32], index: 20, kind: input, shape index: {}]   ;;  %s6975_s21 = inlined_call_operand.hbm [shape: f32[1,2432], index: 21, kind: input, shape index: {}]   ;;  %s6976_s22 = inlined_call_operand.vmem [shape: f32[1,8], index: 22, kind: output, shape index: {}]  }
   0x1   :  { %6980 = sst [smem:[#allocation24_spill]] %s6954_s0 }
   0x2   :  { %6981 = sst [smem:[#allocation25_spill]] %s6955_s1 }
   0x3   :  { %6982 = sst [smem:[#allocation26_spill]] %s6956_s2 }
   0x4   :  { %6983 = sst [smem:[#allocation27_spill]] %s6957_s3 }
   0x5   :  { %6984 = sst [smem:[#allocation28_spill]] %s6958_s4 }
   0x6   :  { %6985 = sst [smem:[#allocation29_spill]] %s6959_s5 }
   0x7   :  { %6986 = sst [smem:[#allocation30_spill]] %s6960_s6 }
   0x8   :  { %27 = vsyncpa [#allocation3], 0 }
   0x9   :  { %28 = vsyncpa [#allocation5], 0 }
   0xa   :  { %29 = vsyncpa [#allocation8], 0 }
   0xb   :  { %30 = vsyncpa [#allocation11], 0 }
   0xc   :  { %31 = vsyncpa [#allocation14], 0 }
   0xd   :  { %32 = vsyncpa [#allocation17], 0  ;;  %s6987_s29 = sld [smem:[#allocation29_spill]]  ;;  %s5521_s4 = smov [#allocation4]  }
   0xe   :  { %s60_s0 = sshll.u32 %s5521_s4, 4  ;;  %s88_s5 = sshll.u32 %s6963_s9, 4  ;;  %s61_s0 = int_to_ptr.vmem [resolvable:$true] %s60_s0  ;;  %s89_s5 = int_to_ptr.hbm [resolvable:$true] %s88_s5 }
   0xf   :  { %s5522_s24 = smov 128   ;;  %s5523_s6 = smov 8  }
  0x10   :  { %s5524_s25 = smov [#allocation7]   ;;  %s116_s3 = sshll.u32 %s6966_s12, 4  ;;  %s117_s3 = int_to_ptr.hbm [resolvable:$true] %s116_s3 }
  0x11   :  { %s90_s26 = sshll.u32 %s5524_s25, 4  ;;  %s5525_s9 = smov [#allocation10]   ;;  %s91_s26 = int_to_ptr.vmem [resolvable:$true] %s90_s26 }
  0x12   :  { %96 = dma.hbm_to_vmem [thread:$0]  %s89_s5, 7168, %s91_s26, [#allocation8], %s5522_s24, %s5522_s24, %s5523_s6  }
  0x13   :  { %s58_s30 = sshll.u32 %s6987_s29, 4  ;;  %s118_s28 = sshll.u32 %s5525_s9, 4  ;;  %s59_s30 = int_to_ptr.hbm [resolvable:$true] %s58_s30  ;;  %s119_s28 = int_to_ptr.vmem [resolvable:$true] %s118_s28 }
  0x14   :  { %66 = dma.hbm_to_vmem [thread:$0]  %s59_s30, 512, %s61_s0, [#allocation5], %s5522_s24, %s5522_s24, %s5523_s6  }
  0x15   :  { %s148_s30 = sshll.u32 %s6971_s17, 4  ;;  %s5526_s0 = smov [#allocation13]   ;;  %s149_s30 = int_to_ptr.hbm [resolvable:$true] %s148_s30 }
  0x16   :  { %124 = dma.hbm_to_vmem [thread:$0]  %s117_s3, 2048, %s119_s28, [#allocation11], %s5522_s24, %s5522_s24, %s5523_s6  }
  0x17   :  { %s150_s12 = sshll.u32 %s5526_s0, 4  ;;  %s6988_s25 = sld [smem:[#allocation26_spill]]  ;;  %s151_s12 = int_to_ptr.vmem [resolvable:$true] %s150_s12 }
  0x18   :  { %s5527_s5 = smov 64   ;;  %s5528_s26 = smov 4  }
  0x19   :  { %156 = dma.hbm_to_vmem [thread:$0]  %s149_s30, 512, %s151_s12, [#allocation14], %s5527_s5, %s5527_s5, %s5528_s26  }
  0x1a   :  { %s6989_s9 = sld [smem:[#allocation30_spill]]  ;;  %s5529_s3 = smov [#allocation2]  }
  0x1b   :  { %s43_s28 = sshll.u32 %s5529_s3, 4  ;;  %s5530_s4 = smov [#allocation6]   ;;  %s44_s28 = int_to_ptr.vmem [resolvable:$true] %s43_s28 }
  0x1c   :  { %s73_s0 = sshll.u32 %s5530_s4, 4  ;;  %s129_s17 = sshll.u32 %s6967_s13, 4  ;;  %s74_s0 = int_to_ptr.vmem [resolvable:$true] %s73_s0  ;;  %s130_s17 = int_to_ptr.hbm [resolvable:$true] %s129_s17 }
  0x1d   :  { %s41_s2 = sshll.u32 %s6988_s25, 4  ;;  %s103_s25 = sshll.u32 %s6965_s11, 4  ;;  %s42_s2 = int_to_ptr.hbm [resolvable:$true] %s41_s2  ;;  %s104_s25 = int_to_ptr.hbm [resolvable:$true] %s103_s25 }
  0x1e   :  { %49 = dma.hbm_to_vmem [thread:$0]  %s42_s2, 896, %s44_s28, [#allocation3], %s5522_s24, %s5522_s24, %s5523_s6  }
  0x1f   :  { %s5531_s27 = smov [#allocation9]   ;;  %s5532_s24 = smov [#allocation12]  }
  0x20   :  { %s71_s29 = sshll.u32 %s6989_s9, 4  ;;  %s105_s9 = sshll.u32 %s5531_s27, 4  ;;  %s72_s29 = int_to_ptr.hbm [resolvable:$true] %s71_s29  ;;  %s106_s9 = int_to_ptr.vmem [resolvable:$true] %s105_s9 }
  0x21   :  { %79 = dma.hbm_to_vmem [thread:$0]  %s72_s29, 448, %s74_s0, [#allocation5], %s5527_s5, %s5527_s5, %s5528_s26  }
  0x22   :  { %111 = dma.hbm_to_vmem [thread:$0]  %s104_s25, 2048, %s106_s9, [#allocation8], %s5527_s5, %s5527_s5, %s5528_s26  }
  0x23   :  { %s131_s11 = sshll.u32 %s5532_s24, 4  ;;  %s161_s3 = sshll.u32 %s6972_s18, 4  ;;  %s132_s11 = int_to_ptr.vmem [resolvable:$true] %s131_s11  ;;  %s162_s3 = int_to_ptr.hbm [resolvable:$true] %s161_s3 }
  0x24   :  { %137 = dma.hbm_to_vmem [thread:$0]  %s130_s17, 2048, %s132_s11, [#allocation11], %s5527_s5, %s5527_s5, %s5528_s26  }
  0x25   :  { %s179_s28 = sshll.u32 %s6975_s21, 4  ;;  %s5533_s4 = smov [#allocation15]   ;;  %s180_s28 = int_to_ptr.hbm [resolvable:$true] %s179_s28 }
  0x26   :  { %s163_s0 = sshll.u32 %s5533_s4, 4  ;;  %s5534_s23 = smov [#allocation16]   ;;  %s164_s0 = int_to_ptr.vmem [resolvable:$true] %s163_s0 }
  0x27   :  { %169 = dma.hbm_to_vmem [thread:$0]  %s162_s3, 512, %s164_s0, [#allocation14], %s5527_s5, %s5527_s5, %s5528_s26  }
  0x28   :  { %s181_s18 = sshll.u32 %s5534_s23, 4  ;;  %s182_s18 = int_to_ptr.vmem [resolvable:$true] %s181_s18 }
  0x29   :  { %184 = dma.hbm_to_vmem [thread:$0]  %s180_s28, 304, %s182_s18, [#allocation17]  }
  0x2a   :  { %5509 = dma.done.wait [#allocation3], 896  }
  0x2b   :  { %5510 = vsyncadd [#allocation3], 4294966400 }
  0x2c   :  { %5511 = dma.done.wait [#allocation5], 960  }
  0x2d   :  { %5512 = vsyncadd [#allocation5], 4294966336 }
  0x2e   :  { %5513 = dma.done.wait [#allocation8], 9216  }
  0x2f   :  { %5514 = vsyncadd [#allocation8], 4294958080 }
  0x30   :  { %5515 = dma.done.wait [#allocation11], 4096  }
  0x31   :  { %5516 = vsyncadd [#allocation11], 4294963200 }
  0x32   :  { %5517 = dma.done.wait [#allocation14], 1024  }
  0x33   :  { %5518 = vsyncadd [#allocation14], 4294966272 }
  0x34   :  { %5519 = dma.done.wait [#allocation17], 304  }
  0x35   :  { %5520 = vsyncadd [#allocation17], 4294966992  ;;  %v242_v0 = vld [vmem:[#allocation2 + $0x30] sm:$0xff]  ;;  %vm282_vm0 = vcmask 1043456   ;;  %v3502_v3 = vld [vmem:[#allocation2 + $0x20] sm:$0xf] }
  0x36   :  { %v262_v1 = vunpack.c.l.b16 %v242_v0  ;;  %v263_v2 = vunpack.c.h.b16 %v242_v0  ;;  %v4899_v6 = vld [vmem:[#allocation2 + $0x24] sm:$0xf0]  ;;  %v4898_v7 = vld [vmem:[#allocation2 + $0x24] sm:$0xf]  ;;  %v3504_v8 = vld [vmem:[#allocation2 + $0x28] sm:$0xf0] }
  0x37   :  { %v3503_v11 = vor.u32 %v4899_v6, %v3502_v3  ;;  %v3507_v12 = vor.u32 %v4898_v7, %v3504_v8  ;;  %v3494_v13 = vld [vmem:[#allocation2 + $0x10] sm:$0xf]  ;;  %v4897_v14 = vld [vmem:[#allocation2 + $0x14] sm:$0xf0]  ;;  %v4896_v15 = vld [vmem:[#allocation2 + $0x14] sm:$0xf] }
  0x38   :  { %v270_v4 = vpack.c.b16 %v262_v1, %v262_v1  ;;  %v271_v5 = vpack.c.b16 %v263_v2, %v263_v2  ;;  %v3496_v16 = vld [vmem:[#allocation2 + $0x18] sm:$0xf0]  ;;  %s6990_s26 = sld [smem:[#allocation27_spill]]  ;;  %v3486_v21 = vld [vmem:[#allocation2] sm:$0xf]  ;;  %v3495_v26 = vor.u32 %v4897_v14, %v3494_v13  ;;  %vm278_vm1 = vcmask 457728  }
  0x39   :  { %v4895_v22 = vld [vmem:[#allocation2 + $0x4] sm:$0xf0]  ;;  %v4894_v23 = vld [vmem:[#allocation2 + $0x4] sm:$0xf]  ;;  %v3499_v27 = vor.u32 %v4896_v15, %v3496_v16  ;;  %v3488_v28 = vld [vmem:[#allocation2 + $0x8] sm:$0xf0] }
  0x3a   :  { %v284_v9 = vsel %vm282_vm0, %v270_v4, 0  ;;  %v287_v10 = vsel %vm282_vm0, %v271_v5, 0  ;;  %v3487_v42 = vor.u32 %v4895_v22, %v3486_v21  ;;  %v3491_v43 = vor.u32 %v4894_v23, %v3488_v28  ;;  %s6991_s6 = sld [smem:[#allocation24_spill]] }
  0x3b   :  { %293 = vmatpush.bf16.msra.mxu3 %v284_v9  ;;  %306 = vmatpush.bf16.msra.mxu1 %v287_v10  ;;  %s6992_s24 = sld [smem:[#allocation28_spill]]  ;;  %vm1164_vm2 = vcmask 261120   ;;  %vm1706_vm3 = vcmask 523264   ;;  %vm3472_vm7 = vcmask 57344  }
  0x3c   :  { %s6993_s9 = sld [smem:[#allocation25_spill]] }
  0x3e   :  { %v3624_v17 = vld [vmem:[%s6990_s26 + $0xe0] sm:$0xf]  ;;  %v4930_v18 = vld [vmem:[%s6990_s26 + $0xec] sm:$0xf0]  ;;  %v4928_v19 = vld [vmem:[%s6990_s26 + $0xe4] sm:$0xf] }
  0x3f   :  { %v3626_v20 = vld [vmem:[%s6990_s26 + $0xf0] sm:$0xf0]  ;;  %v3625_v24 = vor.u32 %v4930_v18, %v3624_v17  ;;  %294 = vmatpush.bf16.msra.mxu3 %v3503_v11  ;;  %307 = vmatpush.bf16.msra.mxu1 %v3507_v12  ;;  %v3608_v29 = vld [vmem:[%s6990_s26 + $0xc0] sm:$0xf]  ;;  %v4926_v30 = vld [vmem:[%s6990_s26 + $0xcc] sm:$0xf0] }
  0x40   :  { %v3629_v25 = vor.u32 %v4928_v19, %v3626_v20  ;;  %v3752_v31 = vld [vmem:[%s6990_s26 + $0x1e0] sm:$0xf]  ;;  %v3609_v32 = vor.u32 %v4926_v30, %v3608_v29  ;;  %v4924_v33 = vld [vmem:[%s6990_s26 + $0xc4] sm:$0xf]  ;;  %v3610_v34 = vld [vmem:[%s6990_s26 + $0xd0] sm:$0xf0] }
  0x41   :  { %713 = vmatpush.bf16.msra.mxu2 %v3625_v24  ;;  %v4962_v35 = vld [vmem:[%s6990_s26 + $0x1ec] sm:$0xf0]  ;;  %v4960_v36 = vld [vmem:[%s6990_s26 + $0x1e4] sm:$0xf]  ;;  %v3754_v37 = vld [vmem:[%s6990_s26 + $0x1f0] sm:$0xf0]  ;;  %v3613_v38 = vor.u32 %v4924_v33, %v3610_v34 }
  0x42   :  { %739 = vmatpush.bf16.msra.mxu0 %v3629_v25  ;;  %v3592_v39 = vld [vmem:[%s6990_s26 + $0xa0] sm:$0xf]  ;;  %v4922_v40 = vld [vmem:[%s6990_s26 + $0xac] sm:$0xf0]  ;;  %v4920_v41 = vld [vmem:[%s6990_s26 + $0xa4] sm:$0xf]  ;;  %v3753_v46 = vor.u32 %v4962_v35, %v3752_v31  ;;  %v3757_v47 = vor.u32 %v4960_v36, %v3754_v37 }
  0x43   :  { %295 = vmatpush.bf16.msra.mxu3 %v3495_v26  ;;  %308 = vmatpush.bf16.msra.mxu1 %v3499_v27  ;;  %v226_v44 = vld [vmem:[%s6991_s6] sm:$0xff]  ;;  %v3594_v45 = vld [vmem:[%s6990_s26 + $0xb0] sm:$0xf0]  ;;  %v4958_v49 = vld [vmem:[%s6990_s26 + $0x1cc] sm:$0xf0]  ;;  %v3593_v52 = vor.u32 %v4922_v40, %v3592_v39 }
  0x44   :  { %v3736_v48 = vld [vmem:[%s6990_s26 + $0x1c0] sm:$0xf]  ;;  %v4956_v50 = vld [vmem:[%s6990_s26 + $0x1c4] sm:$0xf]  ;;  %v3738_v51 = vld [vmem:[%s6990_s26 + $0x1d0] sm:$0xf0]  ;;  %v3597_v53 = vor.u32 %v4920_v41, %v3594_v45  ;;  %v5776_v55 = vpack.c.bf16 %v226_v44, %v226_v44 }
  0x45   :  { %714 = vmatpush.bf16.msra.mxu2 %v3609_v32  ;;  %v3576_v54 = vld [vmem:[%s6990_s26 + $0x80] sm:$0xf]  ;;  %v4918_v56 = vld [vmem:[%s6990_s26 + $0x8c] sm:$0xf0]  ;;  %v4916_v57 = vld [vmem:[%s6990_s26 + $0x84] sm:$0xf]  ;;  %v3737_v59 = vor.u32 %v4958_v49, %v3736_v48  ;;  %v3741_v60 = vor.u32 %v4956_v50, %v3738_v51 }
  0x46   :  { %740 = vmatpush.bf16.msra.mxu0 %v3613_v38  ;;  %v3578_v58 = vld [vmem:[%s6990_s26 + $0x90] sm:$0xf0]  ;;  %v3720_v61 = vld [vmem:[%s6990_s26 + $0x1a0] sm:$0xf]  ;;  %v4954_v62 = vld [vmem:[%s6990_s26 + $0x1ac] sm:$0xf0]  ;;  %v3577_v1 = vor.u32 %v4918_v56, %v3576_v54 }
  0x47   :  { %296 = vmatpush.bf16.msra.mxu3 %v3487_v42  ;;  %309 = vmatpush.bf16.msra.mxu1 %v3491_v43  ;;  %v4952_v63 = vld [vmem:[%s6990_s26 + $0x1a4] sm:$0xf]  ;;  %v3722_v0 = vld [vmem:[%s6990_s26 + $0x1b0] sm:$0xf0]  ;;  %v3581_v2 = vor.u32 %v4916_v57, %v3578_v58  ;;  %v3560_v3 = vld [vmem:[%s6990_s26 + $0x60] sm:$0xf]  ;;  %v3721_v7 = vor.u32 %v4954_v62, %v3720_v61 }
  0x48   :  { %v4914_v4 = vld [vmem:[%s6990_s26 + $0x6c] sm:$0xf0]  ;;  %v4912_v5 = vld [vmem:[%s6990_s26 + $0x64] sm:$0xf]  ;;  %v3562_v6 = vld [vmem:[%s6990_s26 + $0x70] sm:$0xf0]  ;;  %v3725_v8 = vor.u32 %v4952_v63, %v3722_v0 }
  0x49   :  { %715 = vmatpush.bf16.msra.mxu2 %v3593_v52  ;;  %v3704_v9 = vld [vmem:[%s6990_s26 + $0x180] sm:$0xf]  ;;  %v4950_v10 = vld [vmem:[%s6990_s26 + $0x18c] sm:$0xf0]  ;;  %v4948_v11 = vld [vmem:[%s6990_s26 + $0x184] sm:$0xf]  ;;  %v3561_v13 = vor.u32 %v4914_v4, %v3560_v3  ;;  %v3565_v14 = vor.u32 %v4912_v5, %v3562_v6 }
  0x4a   :  { %741 = vmatpush.bf16.msra.mxu0 %v3597_v53  ;;  %3508 = vmatmul.msk.bf16.vlgmr.msra.gmra.mxu3 %vm278_vm1, %v5776_v55  ;;  %v3706_v12 = vld [vmem:[%s6990_s26 + $0x190] sm:$0xf0]  ;;  %v3544_v15 = vld [vmem:[%s6990_s26 + $0x40] sm:$0xf]  ;;  %v4910_v16 = vld [vmem:[%s6990_s26 + $0x4c] sm:$0xf0]  ;;  %v3705_v19 = vor.u32 %v4950_v10, %v3704_v9 }
  0x4b   :  { %726 = vmatpush.bf16.msrb.mxu3 %v3753_v46  ;;  %752 = vmatpush.bf16.msrb.mxu1 %v3757_v47  ;;  %v4908_v17 = vld [vmem:[%s6990_s26 + $0x44] sm:$0xf]  ;;  %v3546_v18 = vld [vmem:[%s6990_s26 + $0x50] sm:$0xf0]  ;;  %v3709_v20 = vor.u32 %v4948_v11, %v3706_v12  ;;  %v3688_v21 = vld [vmem:[%s6990_s26 + $0x160] sm:$0xf]  ;;  %v3545_v25 = vor.u32 %v4910_v16, %v3544_v15 }
  0x4c   :  { %3509 = vmatmul.msk.bf16.vlgmr.msra.gmra.mxu1 %vm278_vm1, %v5776_v55  ;;  %v4946_v22 = vld [vmem:[%s6990_s26 + $0x16c] sm:$0xf0]  ;;  %v4944_v23 = vld [vmem:[%s6990_s26 + $0x164] sm:$0xf]  ;;  %v3690_v24 = vld [vmem:[%s6990_s26 + $0x170] sm:$0xf0]  ;;  %v3549_v26 = vor.u32 %v4908_v17, %v3546_v18 }
  0x4d   :  { %716 = vmatpush.bf16.msra.mxu2 %v3577_v1  ;;  %v3528_v27 = vld [vmem:[%s6990_s26 + $0x20] sm:$0xf]  ;;  %v4906_v28 = vld [vmem:[%s6990_s26 + $0x2c] sm:$0xf0]  ;;  %v4904_v29 = vld [vmem:[%s6990_s26 + $0x24] sm:$0xf]  ;;  %v3689_v35 = vor.u32 %v4946_v22, %v3688_v21  ;;  %v3693_v36 = vor.u32 %v4944_v23, %v3690_v24 }
  0x4e   :  { %742 = vmatpush.bf16.msra.mxu0 %v3581_v2  ;;  %v3530_v30 = vld [vmem:[%s6990_s26 + $0x30] sm:$0xf0]  ;;  %v3672_v31 = vld [vmem:[%s6990_s26 + $0x140] sm:$0xf]  ;;  %v4942_v32 = vld [vmem:[%s6990_s26 + $0x14c] sm:$0xf0]  ;;  %v3529_v41 = vor.u32 %v4906_v28, %v3528_v27 }
  0x4f   :  { %727 = vmatpush.bf16.msrb.mxu3 %v3737_v59  ;;  %753 = vmatpush.bf16.msrb.mxu1 %v3741_v60  ;;  %v4940_v33 = vld [vmem:[%s6990_s26 + $0x144] sm:$0xf]  ;;  %v3674_v34 = vld [vmem:[%s6990_s26 + $0x150] sm:$0xf0]  ;;  %v3512_v37 = vld [vmem:[%s6990_s26] sm:$0xf]  ;;  %v3533_v42 = vor.u32 %v4904_v29, %v3530_v30  ;;  %v3673_v47 = vor.u32 %v4942_v32, %v3672_v31 }
  0x50   :  { %v4902_v38 = vld [vmem:[%s6990_s26 + $0xc] sm:$0xf0]  ;;  %v4900_v39 = vld [vmem:[%s6990_s26 + $0x4] sm:$0xf]  ;;  %v3514_v40 = vld [vmem:[%s6990_s26 + $0x10] sm:$0xf0]  ;;  %v3677_v48 = vor.u32 %v4940_v33, %v3674_v34 }
  0x51   :  { %717 = vmatpush.bf16.msra.mxu2 %v3561_v13  ;;  %v3632_v43 = vld [vmem:[%s6990_s26 + $0xe8] sm:$0xf]  ;;  %v4931_v44 = vld [vmem:[%s6990_s26 + $0xf4] sm:$0xf0]  ;;  %v4929_v45 = vld [vmem:[%s6990_s26 + $0xec] sm:$0xf]  ;;  %v3513_v53 = vor.u32 %v4902_v38, %v3512_v37  ;;  %v3517_v54 = vor.u32 %v4900_v39, %v3514_v40 }
  0x52   :  { %743 = vmatpush.bf16.msra.mxu0 %v3565_v14  ;;  %v3634_v46 = vld [vmem:[%s6990_s26 + $0xf8] sm:$0xf0]  ;;  %v3656_v49 = vld [vmem:[%s6990_s26 + $0x120] sm:$0xf]  ;;  %v4938_v50 = vld [vmem:[%s6990_s26 + $0x12c] sm:$0xf0]  ;;  %v3633_v56 = vor.u32 %v4931_v44, %v3632_v43 }
  0x53   :  { %728 = vmatpush.bf16.msrb.mxu3 %v3721_v7  ;;  %754 = vmatpush.bf16.msrb.mxu1 %v3725_v8  ;;  %v4936_v51 = vld [vmem:[%s6990_s26 + $0x124] sm:$0xf]  ;;  %v3658_v52 = vld [vmem:[%s6990_s26 + $0x130] sm:$0xf0]  ;;  %v3637_v57 = vor.u32 %v4929_v45, %v3634_v46  ;;  %v3657_v58 = vor.u32 %v4938_v50, %v3656_v49  ;;  %v3640_v60 = vld [vmem:[%s6990_s26 + $0x100] sm:$0xf] }
  0x54   :  { %v3661_v59 = vor.u32 %v4936_v51, %v3658_v52  ;;  %v4934_v61 = vld [vmem:[%s6990_s26 + $0x10c] sm:$0xf0]  ;;  %v4932_v62 = vld [vmem:[%s6990_s26 + $0x104] sm:$0xf]  ;;  %v3642_v63 = vld [vmem:[%s6990_s26 + $0x110] sm:$0xf0] }
  0x55   :  { %718 = vmatpush.bf16.msra.mxu2 %v3545_v25  ;;  %v3760_v0 = vld [vmem:[%s6990_s26 + $0x1e8] sm:$0xf]  ;;  %v4963_v1 = vld [vmem:[%s6990_s26 + $0x1f4] sm:$0xf0]  ;;  %v4961_v2 = vld [vmem:[%s6990_s26 + $0x1ec] sm:$0xf]  ;;  %v3641_v4 = vor.u32 %v4934_v61, %v3640_v60  ;;  %v3645_v5 = vor.u32 %v4932_v62, %v3642_v63 }
  0x56   :  { %744 = vmatpush.bf16.msra.mxu0 %v3549_v26  ;;  %v3762_v3 = vld [vmem:[%s6990_s26 + $0x1f8] sm:$0xf0]  ;;  %v3761_v6 = vor.u32 %v4963_v1, %v3760_v0  ;;  %v3744_v8 = vld [vmem:[%s6990_s26 + $0x1c8] sm:$0xf]  ;;  %v4959_v9 = vld [vmem:[%s6990_s26 + $0x1d4] sm:$0xf0] }
  0x57   :  { %729 = vmatpush.bf16.msrb.mxu3 %v3705_v19  ;;  %755 = vmatpush.bf16.msrb.mxu1 %v3709_v20  ;;  %v3765_v7 = vor.u32 %v4961_v2, %v3762_v3  ;;  %v4957_v10 = vld [vmem:[%s6990_s26 + $0x1cc] sm:$0xf]  ;;  %v3746_v11 = vld [vmem:[%s6990_s26 + $0x1d8] sm:$0xf0]  ;;  %v3745_v12 = vor.u32 %v4959_v9, %v3744_v8  ;;  %v3728_v14 = vld [vmem:[%s6990_s26 + $0x1a8] sm:$0xf] }
  0x58   :  { %v3749_v13 = vor.u32 %v4957_v10, %v3746_v11  ;;  %v4955_v15 = vld [vmem:[%s6990_s26 + $0x1b4] sm:$0xf0]  ;;  %v4953_v16 = vld [vmem:[%s6990_s26 + $0x1ac] sm:$0xf]  ;;  %v3730_v17 = vld [vmem:[%s6990_s26 + $0x1b8] sm:$0xf0] }
  0x59   :  { %719 = vmatpush.bf16.msra.mxu2 %v3529_v41  ;;  %v3729_v18 = vor.u32 %v4955_v15, %v3728_v14  ;;  %v3733_v19 = vor.u32 %v4953_v16, %v3730_v17  ;;  %v3616_v20 = vld [vmem:[%s6990_s26 + $0xc8] sm:$0xf]  ;;  %v4927_v21 = vld [vmem:[%s6990_s26 + $0xd4] sm:$0xf0]  ;;  %v4925_v22 = vld [vmem:[%s6990_s26 + $0xcc] sm:$0xf] }
  0x5a   :  { %745 = vmatpush.bf16.msra.mxu0 %v3533_v42  ;;  %v3617_v23 = vor.u32 %v4927_v21, %v3616_v20  ;;  %v3618_v24 = vld [vmem:[%s6990_s26 + $0xd8] sm:$0xf0]  ;;  %v3712_v26 = vld [vmem:[%s6990_s26 + $0x188] sm:$0xf]  ;;  %v4951_v27 = vld [vmem:[%s6990_s26 + $0x194] sm:$0xf0] }
  0x5b   :  { %730 = vmatpush.bf16.msrb.mxu3 %v3689_v35  ;;  %756 = vmatpush.bf16.msrb.mxu1 %v3693_v36  ;;  %v3621_v25 = vor.u32 %v4925_v22, %v3618_v24  ;;  %v4949_v28 = vld [vmem:[%s6990_s26 + $0x18c] sm:$0xf]  ;;  %v3713_v29 = vor.u32 %v4951_v27, %v3712_v26  ;;  %v3714_v30 = vld [vmem:[%s6990_s26 + $0x198] sm:$0xf0]  ;;  %v3600_v32 = vld [vmem:[%s6990_s26 + $0xa8] sm:$0xf] }
  0x5c   :  { %v3717_v31 = vor.u32 %v4949_v28, %v3714_v30  ;;  %v4923_v33 = vld [vmem:[%s6990_s26 + $0xb4] sm:$0xf0]  ;;  %v4921_v34 = vld [vmem:[%s6990_s26 + $0xac] sm:$0xf]  ;;  %v3602_v36 = vld [vmem:[%s6990_s26 + $0xb8] sm:$0xf0] }
  0x5d   :  { %720 = vmatpush.bf16.msra.mxu2 %v3513_v53  ;;  %v3601_v35 = vor.u32 %v4923_v33, %v3600_v32  ;;  %v3605_v37 = vor.u32 %v4921_v34, %v3602_v36  ;;  %v3696_v38 = vld [vmem:[%s6990_s26 + $0x168] sm:$0xf]  ;;  %v4947_v39 = vld [vmem:[%s6990_s26 + $0x174] sm:$0xf0]  ;;  %v4945_v40 = vld [vmem:[%s6990_s26 + $0x16c] sm:$0xf] }
  0x5e   :  { %746 = vmatpush.bf16.msra.mxu0 %v3517_v54  ;;  %v3697_v41 = vor.u32 %v4947_v39, %v3696_v38  ;;  %v3698_v42 = vld [vmem:[%s6990_s26 + $0x178] sm:$0xf0]  ;;  %v3584_v44 = vld [vmem:[%s6990_s26 + $0x88] sm:$0xf]  ;;  %v4919_v45 = vld [vmem:[%s6990_s26 + $0x94] sm:$0xf0] }
  0x5f   :  { %731 = vmatpush.bf16.msrb.mxu3 %v3673_v47  ;;  %757 = vmatpush.bf16.msrb.mxu1 %v3677_v48  ;;  %v3701_v43 = vor.u32 %v4945_v40, %v3698_v42  ;;  %v4917_v46 = vld [vmem:[%s6990_s26 + $0x8c] sm:$0xf]  ;;  %v3585_v47 = vor.u32 %v4919_v45, %v3584_v44  ;;  %v3586_v48 = vld [vmem:[%s6990_s26 + $0x98] sm:$0xf0]  ;;  %v3680_v50 = vld [vmem:[%s6990_s26 + $0x148] sm:$0xf] }
  0x60   :  { %v3589_v49 = vor.u32 %v4917_v46, %v3586_v48  ;;  %v4943_v51 = vld [vmem:[%s6990_s26 + $0x154] sm:$0xf0]  ;;  %v4941_v52 = vld [vmem:[%s6990_s26 + $0x14c] sm:$0xf]  ;;  %v3682_v54 = vld [vmem:[%s6990_s26 + $0x158] sm:$0xf0] }
  0x61   :  { %765 = vmatpush.bf16.msrb.mxu2 %v3633_v56  ;;  %v3681_v53 = vor.u32 %v4943_v51, %v3680_v50  ;;  %v3685_v56 = vor.u32 %v4941_v52, %v3682_v54  ;;  %v3570_v61 = vld [vmem:[%s6990_s26 + $0x78] sm:$0xf0]  ;;  %v3664_v63 = vld [vmem:[%s6990_s26 + $0x128] sm:$0xf]  ;;  %v4939_v0 = vld [vmem:[%s6990_s26 + $0x134] sm:$0xf0] }
  0x62   :  { %791 = vmatpush.bf16.msrb.mxu0 %v3637_v57  ;;  %v3568_v57 = vld [vmem:[%s6990_s26 + $0x68] sm:$0xf]  ;;  %v4937_v1 = vld [vmem:[%s6990_s26 + $0x12c] sm:$0xf]  ;;  %v3665_v2 = vor.u32 %v4939_v0, %v3664_v63  ;;  %v3666_v3 = vld [vmem:[%s6990_s26 + $0x138] sm:$0xf0] }
  0x63   :  { %732 = vmatpush.bf16.msrb.mxu3 %v3657_v58  ;;  %758 = vmatpush.bf16.msrb.mxu1 %v3661_v59  ;;  %v4915_v58 = vld [vmem:[%s6990_s26 + $0x74] sm:$0xf0]  ;;  %v4913_v59 = vld [vmem:[%s6990_s26 + $0x6c] sm:$0xf]  ;;  %v3554_v9 = vld [vmem:[%s6990_s26 + $0x58] sm:$0xf0] }
  0x64   :  { %v3569_v60 = vor.u32 %v4915_v58, %v3568_v57  ;;  %v3573_v62 = vor.u32 %v4913_v59, %v3570_v61  ;;  %v3648_v10 = vld [vmem:[%s6990_s26 + $0x108] sm:$0xf]  ;;  %v4935_v11 = vld [vmem:[%s6990_s26 + $0x114] sm:$0xf0]  ;;  %v4933_v14 = vld [vmem:[%s6990_s26 + $0x10c] sm:$0xf] }
  0x65   :  { %766 = vmatpush.bf16.msrb.mxu2 %v3617_v23  ;;  %v3650_v15 = vld [vmem:[%s6990_s26 + $0x118] sm:$0xf0]  ;;  %v3536_v16 = vld [vmem:[%s6990_s26 + $0x28] sm:$0xf]  ;;  %v4903_v24 = vld [vmem:[%s6990_s26 + $0x14] sm:$0xf0] }
  0x66   :  { %792 = vmatpush.bf16.msrb.mxu0 %v3621_v25  ;;  %v3653_v17 = vor.u32 %v4933_v14, %v3650_v15  ;;  %v3538_v20 = vld [vmem:[%s6990_s26 + $0x38] sm:$0xf0]  ;;  %v3520_v23 = vld [vmem:[%s6990_s26 + $0x8] sm:$0xf]  ;;  %v4901_v25 = vld [vmem:[%s6990_s26 + $0xc] sm:$0xf] }
  0x67   :  { %733 = vmatpush.bf16.msrb.mxu3 %v3641_v4  ;;  %759 = vmatpush.bf16.msrb.mxu1 %v3645_v5  ;;  %v3669_v4 = vor.u32 %v4937_v1, %v3666_v3  ;;  %v3552_v5 = vld [vmem:[%s6990_s26 + $0x48] sm:$0xf]  ;;  %v3521_v26 = vor.u32 %v4903_v24, %v3520_v23  ;;  %v3522_v27 = vld [vmem:[%s6990_s26 + $0x18] sm:$0xf0]  ;;  %v4978_v34 = vld [vmem:[%s6992_s24 + $0x70] sm:$0xff] }
  0x68   :  { %v3525_v28 = vor.u32 %v4901_v25, %v3522_v27  ;;  %v4977_v39 = vld [vmem:[%s6992_s24 + $0x68] sm:$0xff]  ;;  %v4970_v40 = vld [vmem:[%s6992_s24 + $0x30] sm:$0xff]  ;;  %v4976_v42 = vld [vmem:[%s6992_s24 + $0x60] sm:$0xff] }
  0x69   :  { %767 = vmatpush.bf16.msrb.mxu2 %v3601_v35  ;;  %v4975_v44 = vld [vmem:[%s6992_s24 + $0x58] sm:$0xff]  ;;  %v4968_v46 = vld [vmem:[%s6992_s24 + $0x20] sm:$0xff]  ;;  %v4994_v48 = vld [vmem:[%s6992_s24 + $0xf0] sm:$0xff] }
  0x6a   :  { %793 = vmatpush.bf16.msrb.mxu0 %v3605_v37  ;;  %v4971_v37 = vld [vmem:[%s6992_s24 + $0x38] sm:$0xff]  ;;  %v4973_v51 = vld [vmem:[%s6992_s24 + $0x48] sm:$0xff]  ;;  %v4986_v54 = vld [vmem:[%s6992_s24 + $0xb0] sm:$0xff] }
  0x6b   :  { %778 = vmatpush.bf16.msra.mxu3 %v3761_v6  ;;  %804 = vmatpush.bf16.msra.mxu1 %v3765_v7  ;;  %v4911_v6 = vld [vmem:[%s6990_s26 + $0x54] sm:$0xf0]  ;;  %v4909_v7 = vld [vmem:[%s6990_s26 + $0x4c] sm:$0xf]  ;;  %v4992_v57 = vld [vmem:[%s6992_s24 + $0xe0] sm:$0xff] }
  0x6c   :  { %v3553_v8 = vor.u32 %v4911_v6, %v3552_v5  ;;  %v4995_v45 = vld [vmem:[%s6992_s24 + $0xf8] sm:$0xff]  ;;  %v4993_v52 = vld [vmem:[%s6992_s24 + $0xe8] sm:$0xff]  ;;  %v4964_v61 = vld [vmem:[%s6992_s24] sm:$0xff] }
  0x6d   :  { %768 = vmatpush.bf16.msrb.mxu2 %v3585_v47  ;;  %v4974_v47 = vld [vmem:[%s6992_s24 + $0x50] sm:$0xff]  ;;  %v4987_v50 = vld [vmem:[%s6992_s24 + $0xb8] sm:$0xff]  ;;  %v4965_v58 = vld [vmem:[%s6992_s24 + $0x8] sm:$0xff] }
  0x6e   :  { %794 = vmatpush.bf16.msrb.mxu0 %v3589_v49  ;;  %v4967_v49 = vld [vmem:[%s6992_s24 + $0x18] sm:$0xff]  ;;  %v4985_v59 = vld [vmem:[%s6992_s24 + $0xa8] sm:$0xff]  ;;  %v4990_v63 = vld [vmem:[%s6992_s24 + $0xd0] sm:$0xff] }
  0x6f   :  { %779 = vmatpush.bf16.msra.mxu3 %v3745_v12  ;;  %805 = vmatpush.bf16.msra.mxu1 %v3749_v13  ;;  %v3557_v12 = vor.u32 %v4909_v7, %v3554_v9  ;;  %v3649_v13 = vor.u32 %v4935_v11, %v3648_v10  ;;  %v4983_v0 = vld [vmem:[%s6992_s24 + $0x98] sm:$0xff]  ;;  %v4989_v1 = vld [vmem:[%s6992_s24 + $0xc8] sm:$0xff]  ;;  %v4988_v3 = vld [vmem:[%s6992_s24 + $0xc0] sm:$0xff] }
  0x70   :  { %v6196_v6 = vld [vmem:[#allocation16] sm:$0xf]  ;;  %v4980_v7 = vld [vmem:[%s6992_s24 + $0x80] sm:$0xff]  ;;  %v5002_v15 = vld [vmem:[#allocation6 + $0x10] sm:$0xff] }
  0x71   :  { %769 = vmatpush.bf16.msrb.mxu2 %v3569_v60  ;;  %v4991_v60 = vld [vmem:[%s6992_s24 + $0xd8] sm:$0xff]  ;;  %v386_v10 = vperm.slane %v6196_v6, 1 }
  0x72   :  { %795 = vmatpush.bf16.msrb.mxu0 %v3573_v62  ;;  %v4984_v62 = vld [vmem:[%s6992_s24 + $0xa0] sm:$0xff]  ;;  %v5000_v27 = vld [vmem:[#allocation6] sm:$0xff] }
  0x73   :  { %780 = vmatpush.bf16.msra.mxu3 %v3729_v18  ;;  %806 = vmatpush.bf16.msra.mxu1 %v3733_v19  ;;  %v4907_v18 = vld [vmem:[%s6990_s26 + $0x34] sm:$0xf0]  ;;  %v4905_v19 = vld [vmem:[%s6990_s26 + $0x2c] sm:$0xf] }
  0x74   :  { %v3537_v21 = vor.u32 %v4907_v18, %v3536_v16  ;;  %v3541_v22 = vor.u32 %v4905_v19, %v3538_v20  ;;  %v385_v19 = vperm.slane %v6196_v6, 0  ;;  %v5001_v20 = vld [vmem:[#allocation6 + $0x8] sm:$0xff] }
  0x75   :  { %770 = vmatpush.bf16.msrb.mxu2 %v3553_v8  ;;  %v1200_v8 = vld [vmem:[#allocation6 + $0x18] sm:$0xf] }
  0x76   :  { %796 = vmatpush.bf16.msrb.mxu0 %v3557_v12  ;;  %v1214_v9 = vunpack.c.l.b16 %v1200_v8 }
  0x77   :  { %781 = vmatpush.bf16.msra.mxu3 %v3713_v29  ;;  %807 = vmatpush.bf16.msra.mxu1 %v3717_v31  ;;  %v4979_v31 = vld [vmem:[%s6992_s24 + $0x78] sm:$0xff] }
  0x78   :  { %v1218_v11 = vpack.c.b16 %v1214_v9, %v1214_v9 }
  0x79   :  { %771 = vmatpush.bf16.msrb.mxu2 %v3537_v21 }
  0x7a   :  { %797 = vmatpush.bf16.msrb.mxu0 %v3541_v22  ;;  %v1223_v12 = vsel %vm282_vm0, %v1218_v11, 0 }
  0x7b   :  { %782 = vmatpush.bf16.msra.mxu3 %v3697_v41  ;;  %808 = vmatpush.bf16.msra.mxu1 %v3701_v43  ;;  %v4969_v43 = vld [vmem:[%s6992_s24 + $0x28] sm:$0xff] }
  0x7d   :  { %772 = vmatpush.bf16.msrb.mxu2 %v3521_v26 }
  0x7e   :  { %798 = vmatpush.bf16.msrb.mxu0 %v3525_v28 }
  0x7f   :  { %783 = vmatpush.bf16.msra.mxu3 %v3681_v53  ;;  %809 = vmatpush.bf16.msra.mxu1 %v3685_v56  ;;  %v4966_v53 = vld [vmem:[%s6992_s24 + $0x10] sm:$0xff]  ;;  %v4972_v56 = vld [vmem:[%s6992_s24 + $0x40] sm:$0xff] }
  0x83   :  { %784 = vmatpush.bf16.msra.mxu3 %v3665_v2  ;;  %810 = vmatpush.bf16.msra.mxu1 %v3669_v4  ;;  %v4982_v2 = vld [vmem:[%s6992_s24 + $0x90] sm:$0xff]  ;;  %v4981_v4 = vld [vmem:[%s6992_s24 + $0x88] sm:$0xff] }
  0x87   :  { %785 = vmatpush.bf16.msra.mxu3 %v3649_v13  ;;  %811 = vmatpush.bf16.msra.mxu1 %v3653_v17 }
  0xc9   :  { %v311_v29 = vpop.f32.mrf.mxu1 }
  0xca   :  { %v316_v30 = vmax.f32 %v311_v29, 0.0 }
  0xcc   :  { %v318_v32 = vpack.c.bf16 %v316_v30, %v316_v30 }
  0xcd   :  { %v298_v33 = vpop.f32.mrf.mxu3 }
  0xce   :  { %734 = vmatmul.bf16.vlgmr.msrb.gmra.mxu3 %v318_v32  ;;  %760 = vmatmul.bf16.vlgmr.msrb.gmra.mxu1 %v318_v32  ;;  %v315_v35 = vmax.f32 %v298_v33, 0.0 }
  0xcf   :  { %1094 = vmatpush.bf16.msrb.mxu3 %v4979_v31  ;;  %1120 = vmatpush.bf16.msrb.mxu1 %v4995_v45 }
  0xd0   :  { %v317_v38 = vpack.c.bf16 %v315_v35, %v315_v35  ;;  %v3906_v35 = vld [vmem:[#allocation4 + $0x18] sm:$0xf0] }
  0xd1   :  { %v313_v36 = vpop.f32.mrf.mxu1 }
  0xd2   :  { %721 = vmatmul.bf16.vlgmr.msra.gmra.mxu2 %v317_v38  ;;  %747 = vmatmul.bf16.vlgmr.msra.gmra.mxu0 %v317_v38  ;;  %v3983_v36 = vld [vmem:[%s6961_s7 + $0x70] sm:$0xf] }
  0xd3   :  { %1095 = vmatpush.bf16.msrb.mxu3 %v4978_v34  ;;  %1081 = vmatpush.bf16.msra.mxu2 %v4971_v37  ;;  %v4998_v34 = vld [vmem:[#allocation4 + $0x14] sm:$0xf] }
  0xd4   :  { %1121 = vmatpush.bf16.msrb.mxu1 %v4994_v48  ;;  %1107 = vmatpush.bf16.msra.mxu0 %v4987_v50  ;;  %v3975_v48 = vld [vmem:[%s6961_s7 + $0x60] sm:$0xf] }
  0xd5   :  { %v300_v41 = vpop.f32.mrf.mxu3 }
  0xd6   :  { %v3904_v41 = vld [vmem:[#allocation4 + $0x10] sm:$0xf] }
  0xd7   :  { %1096 = vmatpush.bf16.msrb.mxu3 %v4977_v39  ;;  %1082 = vmatpush.bf16.msra.mxu2 %v4970_v40  ;;  %v3909_v39 = vor.u32 %v4998_v34, %v3906_v35  ;;  %v5018_v40 = vld [vmem:[%s6961_s7 + $0x74] sm:$0xf0] }
  0xd8   :  { %1122 = vmatpush.bf16.msrb.mxu1 %v4993_v52  ;;  %1108 = vmatpush.bf16.msra.mxu0 %v4986_v54  ;;  %v4047_v52 = vld [vmem:[%s6962_s8 + $0x70] sm:$0xf]  ;;  %v5010_v35 = vld [vmem:[%s6961_s7 + $0x34] sm:$0xf0] }
  0xdb   :  { %1097 = vmatpush.bf16.msrb.mxu3 %v4976_v42  ;;  %1083 = vmatpush.bf16.msra.mxu2 %v4969_v43  ;;  %v4999_v42 = vld [vmem:[#allocation4 + $0x14] sm:$0xf0] }
  0xdc   :  { %1123 = vmatpush.bf16.msrb.mxu1 %v4992_v57  ;;  %1109 = vmatpush.bf16.msra.mxu0 %v4985_v59  ;;  %v3905_v45 = vor.u32 %v4999_v42, %v3904_v41  ;;  %v3896_v59 = vld [vmem:[#allocation4] sm:$0xf]  ;;  %v5028_v41 = vld [vmem:[%s6962_s8 + $0x44] sm:$0xf0]  ;;  %v4087_v42 = vld [vmem:[%s6962_s8 + $0xc0] sm:$0xf] }
  0xde   :  { %786 = vmatmul.bf16.vlgmr.msra.gmra.mxu3 %v318_v32  ;;  %812 = vmatmul.bf16.vlgmr.msra.gmra.mxu1 %v318_v32  ;;  %v388_v32 = vperm.slane %v6196_v6, 3 }
  0xdf   :  { %1098 = vmatpush.bf16.msrb.mxu3 %v4975_v44  ;;  %1084 = vmatpush.bf16.msra.mxu2 %v4968_v46  ;;  %v3984_v44 = vor.u32 %v5018_v40, %v3983_v36  ;;  %v4996_v46 = vld [vmem:[#allocation4 + $0x4] sm:$0xf]  ;;  %v5013_v36 = vld [vmem:[%s6961_s7 + $0x54] sm:$0xf]  ;;  %v4023_v40 = vld [vmem:[%s6962_s8 + $0x40] sm:$0xf] }
  0xe0   :  { %1124 = vmatpush.bf16.msrb.mxu1 %v4991_v60  ;;  %1110 = vmatpush.bf16.msra.mxu0 %v4984_v62  ;;  %v4997_v60 = vld [vmem:[#allocation4 + $0x4] sm:$0xf0]  ;;  %v5014_v62 = vld [vmem:[%s6961_s7 + $0x54] sm:$0xf0] }
  0xe2   :  { %773 = vmatmul.bf16.vlgmr.msrb.gmra.mxu2 %v317_v38  ;;  %799 = vmatmul.bf16.vlgmr.msrb.gmra.mxu0 %v317_v38 }
  0xe3   :  { %1099 = vmatpush.bf16.msrb.mxu3 %v4974_v47  ;;  %1085 = vmatpush.bf16.msra.mxu2 %v4967_v49  ;;  %v3898_v47 = vld [vmem:[#allocation4 + $0x8] sm:$0xf0] }
  0xe4   :  { %1125 = vmatpush.bf16.msrb.mxu1 %v4990_v63  ;;  %1111 = vmatpush.bf16.msra.mxu0 %v4983_v0  ;;  %v3901_v50 = vor.u32 %v4996_v46, %v3898_v47  ;;  %v3897_v0 = vor.u32 %v4997_v60, %v3896_v59  ;;  %v3943_v46 = vld [vmem:[%s6961_s7 + $0x20] sm:$0xf]  ;;  %v5008_v47 = vld [vmem:[%s6961_s7 + $0x24] sm:$0xf0]  ;;  %v3935_v59 = vld [vmem:[%s6961_s7 + $0x10] sm:$0xf] }
  0xe5   :  { %v5006_v60 = vld [vmem:[%s6961_s7 + $0x14] sm:$0xf0] }
  0xe7   :  { %1100 = vmatpush.bf16.msrb.mxu3 %v4973_v51  ;;  %1086 = vmatpush.bf16.msra.mxu2 %v4966_v53  ;;  %v5016_v51 = vld [vmem:[%s6961_s7 + $0x64] sm:$0xf0]  ;;  %v5034_v53 = vld [vmem:[%s6962_s8 + $0x74] sm:$0xf0] }
  0xe8   :  { %1126 = vmatpush.bf16.msrb.mxu1 %v4989_v1  ;;  %1112 = vmatpush.bf16.msra.mxu0 %v4982_v2  ;;  %v3976_v57 = vor.u32 %v5016_v51, %v3975_v48  ;;  %v5017_v1 = vld [vmem:[%s6961_s7 + $0x74] sm:$0xf]  ;;  %v3985_v2 = vld [vmem:[%s6961_s7 + $0x78] sm:$0xf0]  ;;  %v5011_v48 = vld [vmem:[%s6961_s7 + $0x44] sm:$0xf] }
  0xe9   :  { %v4015_v51 = vld [vmem:[%s6962_s8 + $0x30] sm:$0xf] }
  0xeb   :  { %1101 = vmatpush.bf16.msrb.mxu3 %v4972_v56  ;;  %1087 = vmatpush.bf16.msra.mxu2 %v4965_v58  ;;  %v387_v56 = vperm.slane %v6196_v6, 2  ;;  %v4048_v58 = vor.u32 %v5034_v53, %v4047_v52  ;;  %v4039_v6 = vld [vmem:[%s6962_s8 + $0x60] sm:$0xf]  ;;  %v5026_v52 = vld [vmem:[%s6962_s8 + $0x34] sm:$0xf0] }
  0xec   :  { %1127 = vmatpush.bf16.msrb.mxu1 %v4988_v3  ;;  %1113 = vmatpush.bf16.msra.mxu0 %v4981_v4 }
  0xef   :  { %1088 = vmatpush.bf16.msra.mxu2 %v4964_v61  ;;  %1187 = vmatpush.bf16.msra.mxu3 %v3909_v39  ;;  %v3967_v61 = vld [vmem:[%s6961_s7 + $0x50] sm:$0xf] }
  0xf0   :  { %1114 = vmatpush.bf16.msra.mxu0 %v4980_v7  ;;  %1342 = vmatpush.bf16.msra.mxu1 %v3984_v44  ;;  %v3968_v4 = vor.u32 %v5014_v62, %v3967_v61  ;;  %v5032_v7 = vld [vmem:[%s6962_s8 + $0x64] sm:$0xf0]  ;;  %v5009_v61 = vld [vmem:[%s6961_s7 + $0x34] sm:$0xf]  ;;  %v3936_v62 = vor.u32 %v5006_v60, %v3935_v59  ;;  %v4135_v59 = vld [vmem:[%s6962_s8 + $0x120] sm:$0xf] }
  0xf1   :  { %v5044_v44 = vld [vmem:[%s6962_s8 + $0xc4] sm:$0xf0] }
  0xf2   :  { %v5056_v60 = vld [vmem:[%s6962_s8 + $0x124] sm:$0xf0] }
  0xf3   :  { %1174 = vmatpush.bf16.msrb.mxu2 %v3905_v45  ;;  %1188 = vmatpush.bf16.msra.mxu3 %v3901_v50  ;;  %v4088_v45 = vor.u32 %v5044_v44, %v4087_v42  ;;  %v3961_v50 = vld [vmem:[%s6961_s7 + $0x48] sm:$0xf0]  ;;  %v5047_v42 = vld [vmem:[%s6962_s8 + $0xe4] sm:$0xf] }
  0xf4   :  { %1229 = vmatpush.bf16.msrb.mxu0 %v1223_v12  ;;  %1343 = vmatpush.bf16.msra.mxu1 %v3976_v57  ;;  %v3964_v53 = vor.u32 %v5011_v48, %v3961_v50  ;;  %v5042_v57 = vld [vmem:[%s6962_s8 + $0xb4] sm:$0xf0]  ;;  %v5045_v48 = vld [vmem:[%s6962_s8 + $0xd4] sm:$0xf] }
  0xf7   :  { %1175 = vmatpush.bf16.msrb.mxu2 %v3897_v0  ;;  %v4007_v0 = vld [vmem:[%s6962_s8 + $0x20] sm:$0xf] }
  0xf8   :  { %1230 = vmatpush.bf16.msrb.mxu0 %v5002_v15  ;;  %v5050_v15 = vld [vmem:[%s6962_s8 + $0xf4] sm:$0xf0]  ;;  %1344 = vmatpush.bf16.msra.mxu1 %v3968_v4  ;;  %v4071_v4 = vld [vmem:[%s6962_s8 + $0xa0] sm:$0xf] }
  0xfc   :  { %1231 = vmatpush.bf16.msrb.mxu0 %v5001_v20  ;;  %v5048_v20 = vld [vmem:[%s6962_s8 + $0xe4] sm:$0xf0] }
 0x100   :  { %1232 = vmatpush.bf16.msrb.mxu0 %v5000_v27  ;;  %v3977_v27 = vld [vmem:[%s6961_s7 + $0x68] sm:$0xf0] }
 0x14b   :  { %v761_v5 = vpop.f32.mrf.mxu1 }
 0x14f   :  { %v748_v14 = vpop.f32.mrf.mxu0 }
 0x150   :  { %v749_v16 = vadd.f32 %v748_v14, %v386_v10  ;;  %v4040_v10 = vor.u32 %v5032_v7, %v4039_v6  ;;  %v4111_v14 = vld [vmem:[%s6962_s8 + $0xf0] sm:$0xf]  ;;  %v3927_v7 = vld [vmem:[%s6961_s7] sm:$0xf] }
 0x151   :  { %v735_v13 = vpop.f32.mrf.mxu3 }
 0x152   :  { %v762_v18 = vadd.f32 %v761_v5, %v749_v16  ;;  %v3988_v5 = vor.u32 %v5017_v1, %v3985_v2  ;;  %v5024_v1 = vld [vmem:[%s6962_s8 + $0x24] sm:$0xf0] }
 0x153   :  { %v763_v17 = vpop.f32.mrf.mxu1 }
 0x154   :  { %v818_v21 = vmax.f32 %v762_v18, 0.0  ;;  %v4112_v17 = vor.u32 %v5050_v15, %v4111_v14 }
 0x155   :  { %v722_v22 = vpop.f32.mrf.mxu2 }
 0x156   :  { %v822_v23 = vpack.c.bf16 %v818_v21, %v818_v21  ;;  %v723_v24 = vadd.f32 %v722_v22, %v385_v19  ;;  %v4103_v19 = vld [vmem:[%s6962_s8 + $0xe0] sm:$0xf] }
 0x157   :  { %v750_v26 = vpop.f32.mrf.mxu0  ;;  %v4104_v22 = vor.u32 %v5048_v20, %v4103_v19  ;;  %v5066_v20 = vld [vmem:[%s6962_s8 + $0x174] sm:$0xf0] }
 0x158   :  { %v736_v28 = vadd.f32 %v735_v13, %v723_v24  ;;  %1102 = vmatmul.bf16.vlgmr.msrb.gmra.mxu3 %v822_v23  ;;  %v3959_v23 = vld [vmem:[%s6961_s7 + $0x40] sm:$0xf]  ;;  %v5012_v24 = vld [vmem:[%s6961_s7 + $0x44] sm:$0xf0] }
 0x159   :  { %v737_v25 = vpop.f32.mrf.mxu3  ;;  %1710 = vmatpush.bf16.msrb.mxu3 %v4048_v58  ;;  %v3960_v26 = vor.u32 %v5012_v24, %v3959_v23  ;;  %v3937_v23 = vld [vmem:[%s6961_s7 + $0x18] sm:$0xf0] }
 0x15a   :  { %v817_v30 = vmax.f32 %v736_v28, 0.0  ;;  %v5015_v25 = vld [vmem:[%s6961_s7 + $0x64] sm:$0xf]  ;;  %v5030_v28 = vld [vmem:[%s6962_s8 + $0x54] sm:$0xf0] }
 0x15b   :  { %v813_v29 = vpop.f32.mrf.mxu1  ;;  %1345 = vmatpush.bf16.msra.mxu1 %v3960_v26  ;;  %v5020_v26 = vld [vmem:[%s6962_s8 + $0x4] sm:$0xf0] }
 0x15c   :  { %v821_v31 = vpack.c.bf16 %v817_v30, %v817_v30 }
 0x15d   :  { %v724_v33 = vpop.f32.mrf.mxu2  ;;  %1711 = vmatpush.bf16.msrb.mxu3 %v4040_v10 }
 0x15e   :  { %1089 = vmatmul.bf16.vlgmr.msra.gmra.mxu2 %v821_v31  ;;  %v4095_v31 = vld [vmem:[%s6962_s8 + $0xd0] sm:$0xf] }
 0x15f   :  { %v800_v38 = vpop.f32.mrf.mxu0  ;;  %1355 = vmatpush.bf16.msra.mxu2 %v3988_v5  ;;  %v3951_v33 = vld [vmem:[%s6961_s7 + $0x30] sm:$0xf]  ;;  %v5040_v5 = vld [vmem:[%s6962_s8 + $0xa4] sm:$0xf0] }
 0x160   :  { %v801_v43 = vadd.f32 %v800_v38, %v388_v32  ;;  %v5046_v32 = vld [vmem:[%s6962_s8 + $0xd4] sm:$0xf0]  ;;  %v3952_v38 = vor.u32 %v5010_v35, %v3951_v33  ;;  %v4072_v6 = vor.u32 %v5040_v5, %v4071_v4  ;;  %v5049_v33 = vld [vmem:[%s6962_s8 + $0xf4] sm:$0xf] }
 0x161   :  { %v787_v37 = vpop.f32.mrf.mxu3  ;;  %v4096_v34 = vor.u32 %v5046_v32, %v4095_v31  ;;  %v5054_v4 = vld [vmem:[%s6962_s8 + $0x114] sm:$0xf0] }
 0x162   :  { %v814_v54 = vadd.f32 %v813_v29, %v801_v43  ;;  %v3980_v29 = vor.u32 %v5015_v25, %v3977_v27  ;;  %v4024_v43 = vor.u32 %v5028_v41, %v4023_v40  ;;  %1346 = vmatpush.bf16.msra.mxu1 %v3952_v38  ;;  %v3991_v25 = vld [vmem:[%s6962_s8] sm:$0xf]  ;;  %v5062_v40 = vld [vmem:[%s6962_s8 + $0x154] sm:$0xf0] }
 0x163   :  { %v815_v49 = vpop.f32.mrf.mxu1  ;;  %v4055_v27 = vld [vmem:[%s6962_s8 + $0x80] sm:$0xf] }
 0x164   :  { %v820_v63 = vmax.f32 %v814_v54, 0.0  ;;  %1356 = vmatpush.bf16.msra.mxu2 %v3980_v29  ;;  %v3944_v49 = vor.u32 %v5008_v47, %v3943_v46  ;;  %v4016_v54 = vor.u32 %v5026_v52, %v4015_v51  ;;  %v4167_v29 = vld [vmem:[%s6962_s8 + $0x160] sm:$0xf]  ;;  %v5060_v46 = vld [vmem:[%s6962_s8 + $0x144] sm:$0xf0] }
 0x165   :  { %v774_v3 = vpop.f32.mrf.mxu2  ;;  %v4143_v52 = vld [vmem:[%s6962_s8 + $0x130] sm:$0xf] }
 0x166   :  { %v824_v8 = vpack.c.bf16 %v820_v63, %v820_v63  ;;  %v775_v9 = vadd.f32 %v774_v3, %v387_v56  ;;  %v4079_v56 = vld [vmem:[%s6962_s8 + $0xb0] sm:$0xf]  ;;  %1347 = vmatpush.bf16.msra.mxu1 %v3944_v49  ;;  %v3953_v63 = vld [vmem:[%s6961_s7 + $0x38] sm:$0xf0]  ;;  %v4008_v3 = vor.u32 %v5024_v1, %v4007_v0 }
 0x167   :  { %v802_v12 = vpop.f32.mrf.mxu0  ;;  %v4080_v58 = vor.u32 %v5042_v57, %v4079_v56  ;;  %v3956_v2 = vor.u32 %v5009_v61, %v3953_v63  ;;  %v4097_v49 = vld [vmem:[%s6962_s8 + $0xd8] sm:$0xf0]  ;;  %v5043_v56 = vld [vmem:[%s6962_s8 + $0xc4] sm:$0xf]  ;;  %v4089_v57 = vld [vmem:[%s6962_s8 + $0xc8] sm:$0xf0]  ;;  %v4136_v61 = vor.u32 %v5056_v60, %v4135_v59 }
 0x168   :  { %v788_v13 = vadd.f32 %v787_v37, %v775_v9  ;;  %1128 = vmatmul.bf16.vlgmr.msrb.gmra.mxu1 %v824_v8  ;;  %v3969_v37 = vld [vmem:[%s6961_s7 + $0x58] sm:$0xf0]  ;;  %v5004_v8 = vld [vmem:[%s6961_s7 + $0x4] sm:$0xf0]  ;;  %v5007_v9 = vld [vmem:[%s6961_s7 + $0x24] sm:$0xf]  ;;  %v4100_v50 = vor.u32 %v5045_v48, %v4097_v49 }
 0x169   :  { %v789_v11 = vpop.f32.mrf.mxu3  ;;  %v3972_v39 = vor.u32 %v5013_v36, %v3969_v37  ;;  %v3928_v10 = vor.u32 %v5004_v8, %v3927_v7  ;;  %v3999_v12 = vld [vmem:[%s6962_s8 + $0x10] sm:$0xf]  ;;  %v5003_v36 = vld [vmem:[%s6961_s7 + $0x4] sm:$0xf]  ;;  %v3929_v37 = vld [vmem:[%s6961_s7 + $0x8] sm:$0xf0] }
 0x16a   :  { %v819_v16 = vmax.f32 %v788_v13, 0.0  ;;  %1348 = vmatpush.bf16.msra.mxu1 %v3936_v62  ;;  %v3945_v11 = vld [vmem:[%s6961_s7 + $0x28] sm:$0xf0]  ;;  %v5022_v13 = vld [vmem:[%s6962_s8 + $0x14] sm:$0xf0]  ;;  %v3932_v38 = vor.u32 %v5003_v36, %v3929_v37 }
 0x16b   :  { %1357 = vmatpush.bf16.msra.mxu2 %v3972_v39  ;;  %v3948_v14 = vor.u32 %v5007_v9, %v3945_v11  ;;  %v4000_v15 = vor.u32 %v5022_v13, %v3999_v12  ;;  %v4159_v39 = vld [vmem:[%s6962_s8 + $0x150] sm:$0xf]  ;;  %v5041_v63 = vld [vmem:[%s6962_s8 + $0xb4] sm:$0xf]  ;;  %v4081_v0 = vld [vmem:[%s6962_s8 + $0xb8] sm:$0xf0] }
 0x16c   :  { %v823_v18 = vpack.c.bf16 %v819_v16, %v819_v16  ;;  %v4063_v16 = vld [vmem:[%s6962_s8 + $0x90] sm:$0xf]  ;;  %v4160_v41 = vor.u32 %v5062_v40, %v4159_v39  ;;  %v4084_v1 = vor.u32 %v5041_v63, %v4081_v0  ;;  %v4073_v7 = vld [vmem:[%s6962_s8 + $0xa8] sm:$0xf0]  ;;  %v5052_v11 = vld [vmem:[%s6962_s8 + $0x104] sm:$0xf0] }
 0x16d   :  { %v776_v21 = vpop.f32.mrf.mxu2  ;;  %v5037_v13 = vld [vmem:[%s6962_s8 + $0x94] sm:$0xf]  ;;  %v4041_v36 = vld [vmem:[%s6962_s8 + $0x68] sm:$0xf0]  ;;  %v4199_v37 = vld [vmem:[%s6962_s8 + $0x1a0] sm:$0xf] }
 0x16e   :  { %1115 = vmatmul.bf16.vlgmr.msra.gmra.mxu0 %v823_v18  ;;  %v4175_v18 = vld [vmem:[%s6962_s8 + $0x170] sm:$0xf]  ;;  %1349 = vmatpush.bf16.msra.mxu1 %v3928_v10  ;;  %v4119_v10 = vld [vmem:[%s6962_s8 + $0x100] sm:$0xf]  ;;  %v4329_v40 = vld [vmem:[#allocation7 + $0xe0] sm:$0xf] }
 0x16f   :  { %1723 = vmatpush.bf16.msra.mxu0 %v4112_v17  ;;  %1358 = vmatpush.bf16.msra.mxu2 %v3964_v53  ;;  %v5038_v17 = vld [vmem:[%s6962_s8 + $0x94] sm:$0xf0]  ;;  %v4176_v21 = vor.u32 %v5066_v20, %v4175_v18  ;;  %v4120_v12 = vor.u32 %v5052_v11, %v4119_v10  ;;  %v4049_v20 = vld [vmem:[%s6962_s8 + $0x78] sm:$0xf0]  ;;  %v4313_v60 = vld [vmem:[#allocation7 + $0xc0] sm:$0xf] }
 0x170   :  { %v4064_v19 = vor.u32 %v5038_v17, %v4063_v16  ;;  %v5058_v53 = vld [vmem:[%s6962_s8 + $0x134] sm:$0xf0]  ;;  %v5100_v63 = vld [vmem:[#allocation7 + $0xc4] sm:$0xf0]  ;;  %v4305_v11 = vld [vmem:[#allocation7 + $0xb0] sm:$0xf] }
 0x171   :  { %v5070_v48 = vld [vmem:[%s6962_s8 + $0x194] sm:$0xf0] }
 0x172   :  { %1736 = vmatpush.bf16.msrb.mxu1 %v4176_v21  ;;  %v4207_v21 = vld [vmem:[%s6962_s8 + $0x1b0] sm:$0xf] }
 0x173   :  { %1724 = vmatpush.bf16.msra.mxu0 %v4104_v22  ;;  %1359 = vmatpush.bf16.msra.mxu2 %v3956_v2  ;;  %v5005_v22 = vld [vmem:[%s6961_s7 + $0x14] sm:$0xf] }
 0x174   :  { %v3940_v24 = vor.u32 %v5005_v22, %v3937_v23  ;;  %v5074_v23 = vld [vmem:[%s6962_s8 + $0x1b4] sm:$0xf0] }
 0x177   :  { %1725 = vmatpush.bf16.msra.mxu0 %v4096_v34  ;;  %1360 = vmatpush.bf16.msra.mxu2 %v3948_v14  ;;  %v4113_v34 = vld [vmem:[%s6962_s8 + $0xf8] sm:$0xf0] }
 0x178   :  { %v4116_v35 = vor.u32 %v5049_v33, %v4113_v34  ;;  %v4065_v14 = vld [vmem:[%s6962_s8 + $0x98] sm:$0xf0]  ;;  %v4337_v33 = vld [vmem:[#allocation7 + $0xf0] sm:$0xf]  ;;  %v5106_v34 = vld [vmem:[#allocation7 + $0xf4] sm:$0xf0] }
 0x179   :  { %v4068_v16 = vor.u32 %v5037_v13, %v4065_v14  ;;  %v4338_v39 = vor.u32 %v5106_v34, %v4337_v33  ;;  %v5071_v14 = vld [vmem:[%s6962_s8 + $0x1a4] sm:$0xf]  ;;  %v4001_v33 = vld [vmem:[%s6962_s8 + $0x18] sm:$0xf0]  ;;  %v5061_v34 = vld [vmem:[%s6962_s8 + $0x154] sm:$0xf] }
 0x17b   :  { %1726 = vmatpush.bf16.msra.mxu0 %v4088_v45  ;;  %1361 = vmatpush.bf16.msra.mxu2 %v3940_v24  ;;  %v4151_v45 = vld [vmem:[%s6962_s8 + $0x140] sm:$0xf]  ;;  %v5035_v24 = vld [vmem:[%s6962_s8 + $0x84] sm:$0xf] }
 0x17c   :  { %v4152_v47 = vor.u32 %v5060_v46, %v4151_v45  ;;  %v5029_v45 = vld [vmem:[%s6962_s8 + $0x54] sm:$0xf]  ;;  %v4033_v46 = vld [vmem:[%s6962_s8 + $0x58] sm:$0xf0] }
 0x17e   :  { %3924 = vmatmul.msk.bf16.vlgmr.msrb.gmra.mxu0 %vm278_vm1, %v5776_v55  ;;  %v4031_v55 = vld [vmem:[%s6962_s8 + $0x50] sm:$0xf] }
 0x17f   :  { %v4032_v30 = vor.u32 %v5030_v28, %v4031_v55  ;;  %1727 = vmatpush.bf16.msra.mxu0 %v4080_v58  ;;  %v3992_v55 = vor.u32 %v5020_v26, %v3991_v25  ;;  %v5036_v28 = vld [vmem:[%s6962_s8 + $0x84] sm:$0xf0]  ;;  %1362 = vmatpush.bf16.msra.mxu2 %v3932_v38  ;;  %v4092_v58 = vor.u32 %v5043_v56, %v4089_v57  ;;  %v4057_v25 = vld [vmem:[%s6962_s8 + $0x88] sm:$0xf0]  ;;  %v4183_v57 = vld [vmem:[%s6962_s8 + $0x180] sm:$0xf] }
 0x180   :  { %v4056_v31 = vor.u32 %v5036_v28, %v4055_v27  ;;  %v4060_v27 = vor.u32 %v5035_v24, %v4057_v25  ;;  %v229_v28 = vld [vmem:[%s6993_s9 + $0x8] sm:$0xff]  ;;  %v4297_v25 = vld [vmem:[#allocation7 + $0xa0] sm:$0xf] }
 0x181   :  { %1712 = vmatpush.bf16.msrb.mxu3 %v4032_v30  ;;  %v5064_v30 = vld [vmem:[%s6962_s8 + $0x164] sm:$0xf0]  ;;  %v4025_v56 = vld [vmem:[%s6962_s8 + $0x48] sm:$0xf0] }
 0x182   :  { %v4168_v32 = vor.u32 %v5064_v30, %v4167_v29  ;;  %v4208_v30 = vor.u32 %v5074_v23, %v4207_v21  ;;  %v5072_v38 = vld [vmem:[%s6962_s8 + $0x1a4] sm:$0xf0]  ;;  %v5063_v21 = vld [vmem:[%s6962_s8 + $0x164] sm:$0xf] }
 0x183   :  { %1728 = vmatpush.bf16.msra.mxu0 %v4072_v6  ;;  %v5039_v6 = vld [vmem:[%s6962_s8 + $0xa4] sm:$0xf] }
 0x184   :  { %1737 = vmatpush.bf16.msrb.mxu1 %v4168_v32  ;;  %v4076_v9 = vor.u32 %v5039_v6, %v4073_v7  ;;  %v6514_v32 = vpack.c.bf16 %v229_v28, %v229_v28  ;;  %v5065_v7 = vld [vmem:[%s6962_s8 + $0x174] sm:$0xf] }
 0x185   :  { %1713 = vmatpush.bf16.msrb.mxu3 %v4024_v43  ;;  %v4105_v43 = vld [vmem:[%s6962_s8 + $0xe8] sm:$0xf0] }
 0x186   :  { %v4108_v44 = vor.u32 %v5047_v42, %v4105_v43 }
 0x187   :  { %1729 = vmatpush.bf16.msra.mxu0 %v4064_v19  ;;  %v5033_v19 = vld [vmem:[%s6962_s8 + $0x74] sm:$0xf] }
 0x188   :  { %1738 = vmatpush.bf16.msrb.mxu1 %v4160_v41  ;;  %v4052_v29 = vor.u32 %v5033_v19, %v4049_v20  ;;  %v5104_v41 = vld [vmem:[#allocation7 + $0xe4] sm:$0xf0]  ;;  %v5023_v19 = vld [vmem:[%s6962_s8 + $0x24] sm:$0xf]  ;;  %v4009_v20 = vld [vmem:[%s6962_s8 + $0x28] sm:$0xf0] }
 0x189   :  { %1714 = vmatpush.bf16.msrb.mxu3 %v4016_v54  ;;  %v4144_v54 = vor.u32 %v5058_v53, %v4143_v52  ;;  %v4330_v49 = vor.u32 %v5104_v41, %v4329_v40  ;;  %v4036_v52 = vor.u32 %v5029_v45, %v4033_v46  ;;  %v5067_v40 = vld [vmem:[%s6962_s8 + $0x184] sm:$0xf]  ;;  %v4185_v41 = vld [vmem:[%s6962_s8 + $0x188] sm:$0xf0] }
 0x18a   :  { %v3993_v45 = vld [vmem:[%s6962_s8 + $0x8] sm:$0xf0]  ;;  %v5059_v46 = vld [vmem:[%s6962_s8 + $0x144] sm:$0xf] }
 0x18b   :  { %1730 = vmatpush.bf16.msra.mxu0 %v4056_v31  ;;  %v5031_v31 = vld [vmem:[%s6962_s8 + $0x64] sm:$0xf] }
 0x18c   :  { %1739 = vmatpush.bf16.msrb.mxu1 %v4152_v47  ;;  %v4044_v43 = vor.u32 %v5031_v31, %v4041_v36  ;;  %v4191_v47 = vld [vmem:[%s6962_s8 + $0x190] sm:$0xf]  ;;  %v5021_v31 = vld [vmem:[%s6962_s8 + $0x14] sm:$0xf] }
 0x18d   :  { %1715 = vmatpush.bf16.msrb.mxu3 %v4008_v3  ;;  %v4127_v3 = vld [vmem:[%s6962_s8 + $0x110] sm:$0xf]  ;;  %v4192_v53 = vor.u32 %v5070_v48, %v4191_v47  ;;  %v4153_v47 = vld [vmem:[%s6962_s8 + $0x148] sm:$0xf0]  ;;  %v4273_v48 = vld [vmem:[#allocation7 + $0x70] sm:$0xf] }
 0x18e   :  { %v4128_v5 = vor.u32 %v5054_v4, %v4127_v3  ;;  %1731 = vmatmul.bf16.vlgmr.msra.gmra.mxu0 %v6514_v32  ;;  %v5025_v3 = vld [vmem:[%s6962_s8 + $0x34] sm:$0xf]  ;;  %v4017_v4 = vld [vmem:[%s6962_s8 + $0x38] sm:$0xf0] }
 0x18f   :  { %1775 = vmatpush.bf16.msrb.mxu0 %v4116_v35 }
 0x190   :  { %1740 = vmatpush.bf16.msrb.mxu1 %v4144_v54  ;;  %v5027_v54 = vld [vmem:[%s6962_s8 + $0x44] sm:$0xf] }
 0x191   :  { %1716 = vmatpush.bf16.msrb.mxu3 %v4000_v15 }
 0x193   :  { %1776 = vmatpush.bf16.msrb.mxu0 %v4108_v44  ;;  %v4200_v44 = vor.u32 %v5072_v38, %v4199_v37  ;;  %v4289_v38 = vld [vmem:[#allocation7 + $0x90] sm:$0xf] }
 0x194   :  { %1741 = vmatpush.bf16.msrb.mxu1 %v4136_v61  ;;  %v5073_v61 = vld [vmem:[%s6962_s8 + $0x1b4] sm:$0xf] }
 0x195   :  { %1717 = vmatpush.bf16.msrb.mxu3 %v3992_v55 }
 0x197   :  { %1777 = vmatpush.bf16.msrb.mxu0 %v4100_v50  ;;  %v4321_v50 = vld [vmem:[#allocation7 + $0xd0] sm:$0xf] }
 0x198   :  { %1742 = vmatpush.bf16.msrb.mxu1 %v4128_v5  ;;  %v228_v5 = vld [vmem:[%s6993_s9] sm:$0xff] }
 0x199   :  { %v6573_v13 = vpack.c.bf16 %v228_v5, %v228_v5 }
 0x19b   :  { %1778 = vmatpush.bf16.msrb.mxu0 %v4092_v58  ;;  %v5068_v58 = vld [vmem:[%s6962_s8 + $0x184] sm:$0xf0] }
 0x19c   :  { %1743 = vmatpush.bf16.msrb.mxu1 %v4120_v12 }
 0x19f   :  { %1779 = vmatpush.bf16.msrb.mxu0 %v4084_v1  ;;  %v4028_v1 = vor.u32 %v5027_v54, %v4025_v56  ;;  %v5122_v54 = vld [vmem:[#allocation7 + $0x174] sm:$0xf0]  ;;  %v4281_v56 = vld [vmem:[#allocation7 + $0x80] sm:$0xf] }
 0x1a3   :  { %1780 = vmatpush.bf16.msrb.mxu0 %v4076_v9  ;;  %v4314_v9 = vor.u32 %v5100_v63, %v4313_v60  ;;  %v231_v60 = vld [vmem:[%s6993_s9 + $0x18] sm:$0xff] }
 0x1a4   :  { %v4145_v63 = vld [vmem:[%s6962_s8 + $0x138] sm:$0xf0] }
 0x1a7   :  { %1781 = vmatpush.bf16.msrb.mxu0 %v4068_v16  ;;  %v5098_v16 = vld [vmem:[#allocation7 + $0xb4] sm:$0xf0] }
 0x1a8   :  { %v4306_v23 = vor.u32 %v5098_v16, %v4305_v11  ;;  %v5055_v11 = vld [vmem:[%s6962_s8 + $0x124] sm:$0xf]  ;;  %v5119_v16 = vld [vmem:[#allocation7 + $0x164] sm:$0xf] }
 0x1ab   :  { %1782 = vmatpush.bf16.msrb.mxu0 %v4060_v27  ;;  %v4193_v27 = vld [vmem:[%s6962_s8 + $0x198] sm:$0xf0] }
 0x1ae   :  { %1783 = vmatmul.bf16.vlgmr.msrb.gmra.mxu0 %v6514_v32 }
 0x1af   :  { %2163 = vmatpush.bf16.msra.mxu0 %v4338_v39  ;;  %v5094_v39 = vld [vmem:[#allocation7 + $0x94] sm:$0xf0] }
 0x1b3   :  { %2164 = vmatpush.bf16.msra.mxu0 %v4330_v49  ;;  %v4290_v49 = vor.u32 %v5094_v39, %v4289_v38 }
 0x1db   :  { %v1103_v51 = vpop.f32.mrf.mxu3 }
 0x1e1   :  { %v1090_v62 = vpop.f32.mrf.mxu2 }
 0x1e2   :  { %v1104_v17 = vadd.f32 %v1103_v51, %v1090_v62  ;;  %v5102_v51 = vld [vmem:[#allocation7 + $0xd4] sm:$0xf0]  ;;  %v4209_v62 = vld [vmem:[%s6962_s8 + $0x1b8] sm:$0xf0] }
 0x1e3   :  { %v1105_v2 = vpop.f32.mrf.mxu3  ;;  %v4322_v59 = vor.u32 %v5102_v51, %v4321_v50  ;;  %v4212_v10 = vor.u32 %v5073_v61, %v4209_v62  ;;  %v5090_v50 = vld [vmem:[#allocation7 + $0x74] sm:$0xf0]  ;;  %v230_v51 = vld [vmem:[%s6993_s9 + $0x10] sm:$0xff] }
 0x1e4   :  { %v4184_v2 = vor.u32 %v5068_v58, %v4183_v57  ;;  %v5092_v57 = vld [vmem:[#allocation7 + $0x84] sm:$0xf0]  ;;  %v5057_v61 = vld [vmem:[%s6962_s8 + $0x134] sm:$0xf]  ;;  %v4274_v62 = vor.u32 %v5090_v50, %v4273_v48  ;;  %v4369_v48 = vld [vmem:[#allocation7 + $0x130] sm:$0xf] }
 0x1e5   :  { %v1129_v8 = vpop.f32.mrf.mxu1  ;;  %2165 = vmatpush.bf16.msra.mxu0 %v4322_v59  ;;  %v4156_v59 = vor.u32 %v5059_v46, %v4153_v47 }
 0x1e9   :  { %v1092_v15 = vpop.f32.mrf.mxu2  ;;  %2166 = vmatpush.bf16.msra.mxu0 %v4314_v9  ;;  %v5120_v9 = vld [vmem:[#allocation7 + $0x164] sm:$0xf0] }
 0x1ea   :  { %v4201_v15 = vld [vmem:[%s6962_s8 + $0x1a8] sm:$0xf0] }
 0x1eb   :  { %v1116_v18 = vpop.f32.mrf.mxu0  ;;  %v4204_v24 = vor.u32 %v5071_v14, %v4201_v15  ;;  %v4137_v15 = vld [vmem:[%s6962_s8 + $0x128] sm:$0xf0] }
 0x1ec   :  { %v1117_v22 = vadd.f32 %v1116_v18, %v1104_v17  ;;  %v4020_v17 = vor.u32 %v5025_v3, %v4017_v4  ;;  %v4265_v3 = vld [vmem:[#allocation7 + $0x60] sm:$0xf]  ;;  %v5088_v4 = vld [vmem:[#allocation7 + $0x64] sm:$0xf0] }
 0x1ed   :  { %v1131_v26 = vpop.f32.mrf.mxu1  ;;  %2167 = vmatpush.bf16.msra.mxu0 %v4306_v23  ;;  %v4266_v14 = vor.u32 %v5088_v4, %v4265_v3  ;;  %v4140_v23 = vor.u32 %v5055_v11, %v4137_v15  ;;  %v4225_v3 = vld [vmem:[#allocation7 + $0x10] sm:$0xf]  ;;  %v5111_v4 = vld [vmem:[#allocation7 + $0x124] sm:$0xf]  ;;  %v4217_v11 = vld [vmem:[#allocation7] sm:$0xf] }
 0x1ee   :  { %v1130_v55 = vadd.f32 %v1129_v8, %v1117_v22  ;;  %v4177_v8 = vld [vmem:[%s6962_s8 + $0x178] sm:$0xf0]  ;;  %v4169_v22 = vld [vmem:[%s6962_s8 + $0x168] sm:$0xf0]  ;;  %v5069_v26 = vld [vmem:[%s6962_s8 + $0x194] sm:$0xf] }
 0x1ef   :  { %v4180_v18 = vor.u32 %v5065_v7, %v4177_v8  ;;  %v4196_v37 = vor.u32 %v5069_v26, %v4193_v27  ;;  %v6645_v7 = vpack.c.bf16 %v231_v60, %v231_v60  ;;  %v4393_v8 = vld [vmem:[#allocation7 + $0x160] sm:$0xf]  ;;  %v4129_v27 = vld [vmem:[%s6962_s8 + $0x118] sm:$0xf0] }
 0x1f0   :  { %v1133_v35 = vpack.c.bf16 %v1130_v55, %v1130_v55  ;;  %v5096_v55 = vld [vmem:[#allocation7 + $0xa4] sm:$0xf0] }
 0x1f1   :  { %v4298_v36 = vor.u32 %v5096_v55, %v4297_v25  ;;  %v5117_v55 = vld [vmem:[#allocation7 + $0x154] sm:$0xf] }
 0x1f2   :  { %3910 = vmatmul.msk.bf16.vlgmr.msrb.gmra.mxu2 %vm1164_vm2, %v1133_v35  ;;  %3911 = vmatmul.msk.bf16.vlgmr.msra.gmra.mxu3 %vm1164_vm2, %v1133_v35  ;;  %v4161_v35 = vld [vmem:[%s6962_s8 + $0x158] sm:$0xf0] }
 0x1f3   :  { %1762 = vmatpush.bf16.msra.mxu3 %v4052_v29  ;;  %v1118_v42 = vpop.f32.mrf.mxu0  ;;  %1753 = vmatpush.bf16.msrb.mxu2 %v4208_v30  ;;  %v4012_v29 = vor.u32 %v5023_v19, %v4009_v20  ;;  %v4172_v30 = vor.u32 %v5063_v21, %v4169_v22  ;;  %v5086_v19 = vld [vmem:[#allocation7 + $0x54] sm:$0xf0]  ;;  %v4394_v20 = vor.u32 %v5120_v9, %v4393_v8  ;;  %v4385_v21 = vld [vmem:[#allocation7 + $0x150] sm:$0xf] }
 0x1f4   :  { %v4004_v42 = vor.u32 %v5021_v31, %v4001_v33  ;;  %2168 = vmatpush.bf16.msra.mxu0 %v4298_v36  ;;  %v5118_v22 = vld [vmem:[#allocation7 + $0x154] sm:$0xf0]  ;;  %v4377_v33 = vld [vmem:[#allocation7 + $0x140] sm:$0xf]  ;;  %v5051_v36 = vld [vmem:[%s6962_s8 + $0x104] sm:$0xf] }
 0x1f5   :  { %v4386_v31 = vor.u32 %v5118_v22, %v4385_v21  ;;  %v4417_v8 = vld [vmem:[#allocation7 + $0x190] sm:$0xf]  ;;  %v5126_v9 = vld [vmem:[#allocation7 + $0x194] sm:$0xf0]  ;;  %v4409_v21 = vld [vmem:[#allocation7 + $0x180] sm:$0xf] }
 0x1f6   :  { %v5124_v22 = vld [vmem:[#allocation7 + $0x184] sm:$0xf0] }
 0x1f7   :  { %1763 = vmatpush.bf16.msra.mxu3 %v4044_v43  ;;  %1754 = vmatpush.bf16.msrb.mxu2 %v4200_v44  ;;  %v4164_v43 = vor.u32 %v5061_v34, %v4161_v35  ;;  %v5019_v44 = vld [vmem:[%s6962_s8 + $0x4] sm:$0xf]  ;;  %v5116_v34 = vld [vmem:[#allocation7 + $0x144] sm:$0xf0] }
 0x1f8   :  { %v3996_v58 = vor.u32 %v5019_v44, %v3993_v45  ;;  %2169 = vmatpush.bf16.msra.mxu0 %v4290_v49  ;;  %v4433_v44 = vld [vmem:[#allocation7 + $0x1b0] sm:$0xf]  ;;  %v5130_v45 = vld [vmem:[#allocation7 + $0x1b4] sm:$0xf0]  ;;  %v4378_v46 = vor.u32 %v5116_v34, %v4377_v33  ;;  %v5129_v33 = vld [vmem:[#allocation7 + $0x1b4] sm:$0xf] }
 0x1f9   :  { %v5114_v49 = vld [vmem:[#allocation7 + $0x134] sm:$0xf0]  ;;  %v4435_v34 = vld [vmem:[#allocation7 + $0x1b8] sm:$0xf0] }
 0x1fa   :  { %v4370_v60 = vor.u32 %v5114_v49, %v4369_v48 }
 0x1fb   :  { %1764 = vmatpush.bf16.msra.mxu3 %v4036_v52  ;;  %v1234_v0 = vpop.f32.mrf.mxu0  ;;  %1755 = vmatpush.bf16.msrb.mxu2 %v4192_v53  ;;  %v4188_v52 = vor.u32 %v5067_v40, %v4185_v41  ;;  %v4401_v53 = vld [vmem:[#allocation7 + $0x170] sm:$0xf]  ;;  %v5115_v41 = vld [vmem:[#allocation7 + $0x144] sm:$0xf] }
 0x1fc   :  { %v1238_v6 = vmax.f32 %v1234_v0, 0.0  ;;  %v6643_v0 = vpack.c.bf16 %v230_v51, %v230_v51  ;;  %v4402_v5 = vor.u32 %v5122_v54, %v4401_v53  ;;  %v4241_v40 = vld [vmem:[#allocation7 + $0x30] sm:$0xf]  ;;  %v4233_v53 = vld [vmem:[#allocation7 + $0x20] sm:$0xf] }
 0x1fd   :  { %v5113_v54 = vld [vmem:[#allocation7 + $0x134] sm:$0xf] }
 0x1fe   :  { %v1239_v12 = vpack.c.bf16 %v1238_v6, %v1238_v6  ;;  %v4282_v6 = vor.u32 %v5092_v57, %v4281_v56  ;;  %v4371_v56 = vld [vmem:[#allocation7 + $0x138] sm:$0xf0]  ;;  %v5080_v57 = vld [vmem:[#allocation7 + $0x24] sm:$0xf0] }
 0x1ff   :  { %1765 = vmatpush.bf16.msra.mxu3 %v4028_v1  ;;  %1756 = vmatpush.bf16.msrb.mxu2 %v4184_v2  ;;  %v5121_v1 = vld [vmem:[#allocation7 + $0x174] sm:$0xf]  ;;  %v4403_v2 = vld [vmem:[#allocation7 + $0x178] sm:$0xf0] }
 0x200   :  { %1350 = vmatmul.bf16.vlgmr.msra.gmra.mxu1 %v1239_v12  ;;  %2170 = vmatpush.bf16.msra.mxu0 %v4282_v6  ;;  %v5078_v6 = vld [vmem:[#allocation7 + $0x14] sm:$0xf0] }
 0x201   :  { %1805 = vmatpush.bf16.msra.mxu1 %v4212_v10  ;;  %v4148_v10 = vor.u32 %v5057_v61, %v4145_v63  ;;  %v4361_v61 = vld [vmem:[#allocation7 + $0x120] sm:$0xf]  ;;  %v4374_v63 = vor.u32 %v5113_v54, %v4371_v56  ;;  %v5125_v56 = vld [vmem:[#allocation7 + $0x194] sm:$0xf] }
 0x202   :  { %1363 = vmatmul.bf16.vlgmr.msra.gmra.mxu2 %v1239_v12  ;;  %1718 = vmatmul.bf16.vlgmr.msrb.gmra.mxu3 %v6573_v13  ;;  %v4406_v12 = vor.u32 %v5121_v1, %v4403_v2  ;;  %v4234_v1 = vor.u32 %v5080_v57, %v4233_v53  ;;  %v4323_v53 = vld [vmem:[#allocation7 + $0xd8] sm:$0xf0] }
 0x203   :  { %1766 = vmatpush.bf16.msra.mxu3 %v4020_v17  ;;  %1788 = vmatpush.bf16.msra.mxu2 %v4180_v18  ;;  %v1236_v28 = vpop.f32.mrf.mxu0  ;;  %v4395_v17 = vld [vmem:[#allocation7 + $0x168] sm:$0xf0]  ;;  %v4257_v18 = vld [vmem:[#allocation7 + $0x50] sm:$0xf]  ;;  %v4419_v57 = vld [vmem:[#allocation7 + $0x198] sm:$0xf0] }
 0x204   :  { %2228 = vmatpush.bf16.msrb.mxu0 %v4406_v12  ;;  %v4398_v25 = vor.u32 %v5119_v16, %v4395_v17  ;;  %v4258_v26 = vor.u32 %v5086_v19, %v4257_v18  ;;  %v4387_v28 = vld [vmem:[#allocation7 + $0x158] sm:$0xf0]  ;;  %v4353_v12 = vld [vmem:[#allocation7 + $0x110] sm:$0xf]  ;;  %v4226_v16 = vor.u32 %v5078_v6, %v4225_v3  ;;  %v4418_v17 = vor.u32 %v5126_v9, %v4417_v8  ;;  %v5076_v18 = vld [vmem:[#allocation7 + $0x4] sm:$0xf0] }
 0x205   :  { %1806 = vmatpush.bf16.msra.mxu1 %v4204_v24  ;;  %v5053_v24 = vld [vmem:[%s6962_s8 + $0x114] sm:$0xf]  ;;  %2171 = vmatmul.bf16.vlgmr.msra.gmra.mxu0 %v6514_v32  ;;  %v4390_v38 = vor.u32 %v5117_v55, %v4387_v28  ;;  %v5109_v19 = vld [vmem:[#allocation7 + $0x114] sm:$0xf]  ;;  %v5108_v28 = vld [vmem:[#allocation7 + $0x104] sm:$0xf0] }
 0x206   :  { %v4132_v35 = vor.u32 %v5053_v24, %v4129_v27  ;;  %v4275_v24 = vld [vmem:[#allocation7 + $0x78] sm:$0xf0]  ;;  %v4345_v55 = vld [vmem:[#allocation7 + $0x100] sm:$0xf]  ;;  %v4411_v3 = vld [vmem:[#allocation7 + $0x188] sm:$0xf0] }
 0x207   :  { %1767 = vmatpush.bf16.msra.mxu3 %v4012_v29  ;;  %1789 = vmatpush.bf16.msra.mxu2 %v4172_v30  ;;  %v4249_v29 = vld [vmem:[#allocation7 + $0x40] sm:$0xf]  ;;  %v5084_v30 = vld [vmem:[#allocation7 + $0x44] sm:$0xf0]  ;;  %v5081_v6 = vld [vmem:[#allocation7 + $0x34] sm:$0xf] }
 0x208   :  { %2229 = vmatpush.bf16.msrb.mxu0 %v4398_v25  ;;  %v4250_v39 = vor.u32 %v5084_v30, %v4249_v29  ;;  %v5105_v25 = vld [vmem:[#allocation7 + $0xf4] sm:$0xf]  ;;  %v4218_v30 = vor.u32 %v5076_v18, %v4217_v11  ;;  %v4243_v8 = vld [vmem:[#allocation7 + $0x38] sm:$0xf0] }
 0x209   :  { %1807 = vmatpush.bf16.msra.mxu1 %v4196_v37  ;;  %v4121_v37 = vld [vmem:[%s6962_s8 + $0x108] sm:$0xf0]  ;;  %v5097_v9 = vld [vmem:[#allocation7 + $0xb4] sm:$0xf] }
 0x20a   :  { %v4124_v47 = vor.u32 %v5051_v36, %v4121_v37  ;;  %v5087_v37 = vld [vmem:[#allocation7 + $0x64] sm:$0xf] }
 0x20b   :  { %1768 = vmatpush.bf16.msra.mxu3 %v4004_v42  ;;  %1790 = vmatpush.bf16.msra.mxu2 %v4164_v43  ;;  %v4379_v42 = vld [vmem:[#allocation7 + $0x148] sm:$0xf0]  ;;  %v5082_v43 = vld [vmem:[#allocation7 + $0x34] sm:$0xf0] }
 0x20c   :  { %2230 = vmatpush.bf16.msrb.mxu0 %v4390_v38  ;;  %v4382_v50 = vor.u32 %v5115_v41, %v4379_v42  ;;  %v4242_v51 = vor.u32 %v5082_v43, %v4241_v40  ;;  %v5107_v38 = vld [vmem:[#allocation7 + $0x104] sm:$0xf]  ;;  %v4267_v40 = vld [vmem:[#allocation7 + $0x68] sm:$0xf0]  ;;  %v4346_v43 = vor.u32 %v5108_v28, %v4345_v55 }
 0x20d   :  { %1808 = vmatpush.bf16.msra.mxu1 %v4188_v52  ;;  %v4434_v52 = vor.u32 %v5130_v45, %v4433_v44  ;;  %v5103_v41 = vld [vmem:[#allocation7 + $0xe4] sm:$0xf]  ;;  %v4331_v42 = vld [vmem:[#allocation7 + $0xe8] sm:$0xf0]  ;;  %v4438_v44 = vor.u32 %v5129_v33, %v4435_v34  ;;  %v4270_v48 = vor.u32 %v5087_v37, %v4267_v40  ;;  %v5154_v33 = vld [vmem:[#allocation9 + $0x38] sm:$0xff] }
 0x20e   :  { %v5127_v45 = vld [vmem:[#allocation7 + $0x1a4] sm:$0xf]  ;;  %v4334_v49 = vor.u32 %v5103_v41, %v4331_v42  ;;  %v4283_v28 = vld [vmem:[#allocation7 + $0x88] sm:$0xf0]  ;;  %v5150_v42 = vld [vmem:[#allocation9 + $0x18] sm:$0xff] }
 0x20f   :  { %1769 = vmatpush.bf16.msra.mxu3 %v3996_v58  ;;  %1791 = vmatpush.bf16.msra.mxu2 %v4156_v59  ;;  %v4425_v58 = vld [vmem:[#allocation7 + $0x1a0] sm:$0xf]  ;;  %v5128_v59 = vld [vmem:[#allocation7 + $0x1a4] sm:$0xf0]  ;;  %v5091_v55 = vld [vmem:[#allocation7 + $0x84] sm:$0xf] }
 0x210   :  { %1744 = vmatmul.bf16.vlgmr.msrb.gmra.mxu1 %v6643_v0  ;;  %2231 = vmatpush.bf16.msrb.mxu0 %v4382_v50  ;;  %v4426_v2 = vor.u32 %v5128_v59, %v4425_v58  ;;  %v5085_v50 = vld [vmem:[#allocation7 + $0x54] sm:$0xf]  ;;  %v5152_v37 = vld [vmem:[#allocation9 + $0x28] sm:$0xff]  ;;  %v5151_v40 = vld [vmem:[#allocation9 + $0x20] sm:$0xff] }
 0x211   :  { %2176 = vmatpush.bf16.msrb.mxu1 %v4402_v5  ;;  %v4363_v5 = vld [vmem:[#allocation7 + $0x128] sm:$0xf0] }
 0x212   :  { %4213 = vmatmul.msk.bf16.vlgmr.msrb.gmra.mxu2 %vm1706_vm3, %v6645_v7  ;;  %1770 = vmatmul.bf16.vlgmr.msra.gmra.mxu3 %v6573_v13  ;;  %v4366_v15 = vor.u32 %v5111_v4, %v4363_v5 }
 0x213   :  { %2150 = vmatpush.bf16.msrb.mxu3 %v4274_v62  ;;  %1792 = vmatpush.bf16.msra.mxu2 %v4148_v10  ;;  %v5112_v62 = vld [vmem:[#allocation7 + $0x124] sm:$0xf0] }
 0x214   :  { %v4362_v10 = vor.u32 %v5112_v62, %v4361_v61  ;;  %2232 = vmatpush.bf16.msrb.mxu0 %v4374_v63  ;;  %v4251_v61 = vld [vmem:[#allocation7 + $0x48] sm:$0xf0]  ;;  %v5099_v62 = vld [vmem:[#allocation7 + $0xc4] sm:$0xf] }
 0x215   :  { %2177 = vmatpush.bf16.msrb.mxu1 %v4394_v20  ;;  %v4355_v20 = vld [vmem:[#allocation7 + $0x118] sm:$0xf0]  ;;  %v4315_v63 = vld [vmem:[#allocation7 + $0xc8] sm:$0xf0] }
 0x216   :  { %v4358_v29 = vor.u32 %v5109_v19, %v4355_v20  ;;  %v4318_v5 = vor.u32 %v5099_v62, %v4315_v63  ;;  %v5077_v20 = vld [vmem:[#allocation7 + $0x14] sm:$0xf] }
 0x217   :  { %2151 = vmatpush.bf16.msrb.mxu3 %v4266_v14  ;;  %1793 = vmatpush.bf16.msra.mxu2 %v4140_v23  ;;  %v5110_v14 = vld [vmem:[#allocation7 + $0x114] sm:$0xf0]  ;;  %v5089_v23 = vld [vmem:[#allocation7 + $0x74] sm:$0xf] }
 0x218   :  { %v4354_v27 = vor.u32 %v5110_v14, %v4353_v12  ;;  %2233 = vmatpush.bf16.msrb.mxu0 %v4366_v15  ;;  %v4246_v12 = vor.u32 %v5081_v6, %v4243_v8  ;;  %v5079_v15 = vld [vmem:[#allocation7 + $0x24] sm:$0xf]  ;;  %v5161_v62 = vld [vmem:[#allocation9 + $0x70] sm:$0xff]  ;;  %v5184_v6 = vld [vmem:[#allocation12 + $0x28] sm:$0xff] }
 0x219   :  { %2178 = vmatpush.bf16.msrb.mxu1 %v4386_v31  ;;  %v4410_v31 = vor.u32 %v5124_v22, %v4409_v21  ;;  %v4227_v21 = vld [vmem:[#allocation7 + $0x18] sm:$0xf0]  ;;  %v5093_v22 = vld [vmem:[#allocation7 + $0x94] sm:$0xf] }
 0x21a   :  { %v5185_v63 = vld [vmem:[#allocation12 + $0x30] sm:$0xff] }
 0x21b   :  { %2152 = vmatpush.bf16.msrb.mxu3 %v4258_v26  ;;  %1794 = vmatpush.bf16.msra.mxu2 %v4132_v35  ;;  %v4339_v26 = vld [vmem:[#allocation7 + $0xf8] sm:$0xf0]  ;;  %v4278_v35 = vor.u32 %v5089_v23, %v4275_v24  ;;  %v4230_v24 = vor.u32 %v5077_v20, %v4227_v21  ;;  %v5181_v20 = vld [vmem:[#allocation12 + $0x10] sm:$0xff] }
 0x21c   :  { %v4342_v36 = vor.u32 %v5105_v25, %v4339_v26  ;;  %2234 = vmatpush.bf16.msrb.mxu0 %v4358_v29  ;;  %v4291_v23 = vld [vmem:[#allocation7 + $0x98] sm:$0xf0]  ;;  %v5075_v26 = vld [vmem:[#allocation7 + $0x4] sm:$0xf]  ;;  %v5144_v21 = vld [vmem:[%s6964_s10 + $0x68] sm:$0xff] }
 0x21d   :  { %2179 = vmatpush.bf16.msrb.mxu1 %v4378_v46  ;;  %v4427_v46 = vld [vmem:[#allocation7 + $0x1a8] sm:$0xf0]  ;;  %v4294_v25 = vor.u32 %v5093_v22, %v4291_v23 }
 0x21e   :  { %v4430_v54 = vor.u32 %v5127_v45, %v4427_v46 }
 0x21f   :  { %2153 = vmatpush.bf16.msrb.mxu3 %v4250_v39  ;;  %1795 = vmatpush.bf16.msra.mxu2 %v4124_v47  ;;  %v4347_v39 = vld [vmem:[#allocation7 + $0x108] sm:$0xf0] }
 0x220   :  { %4214 = vmatmul.msk.bf16.vlgmr.msra.gmra.mxu1 %vm1706_vm3, %v6645_v7  ;;  %v4350_v47 = vor.u32 %v5107_v38, %v4347_v39 }
 0x221   :  { %2180 = vmatpush.bf16.msrb.mxu1 %v4370_v60  ;;  %v5083_v60 = vld [vmem:[#allocation7 + $0x44] sm:$0xf] }
 0x222   :  { %1796 = vmatmul.bf16.vlgmr.msra.gmra.mxu2 %v6643_v0  ;;  %2235 = vmatpush.bf16.msrb.mxu0 %v4350_v47  ;;  %v4254_v4 = vor.u32 %v5083_v60, %v4251_v61  ;;  %v5133_v61 = vld [vmem:[%s6964_s10 + $0x10] sm:$0xff] }
 0x223   :  { %2154 = vmatpush.bf16.msrb.mxu3 %v4242_v51  ;;  %2193 = vmatpush.bf16.msrb.mxu2 %v4434_v52  ;;  %v4259_v51 = vld [vmem:[#allocation7 + $0x58] sm:$0xf0]  ;;  %v5101_v52 = vld [vmem:[#allocation7 + $0xd4] sm:$0xf] }
 0x224   :  { %v4262_v58 = vor.u32 %v5085_v50, %v4259_v51  ;;  %v4326_v59 = vor.u32 %v5101_v52, %v4323_v53  ;;  %v5148_v50 = vld [vmem:[#allocation9 + $0x8] sm:$0xff] }
 0x225   :  { %2181 = vmatpush.bf16.msrb.mxu1 %v4362_v10  ;;  %2236 = vmatmul.bf16.vlgmr.msrb.gmra.mxu0 %v6643_v0  ;;  %v4307_v10 = vld [vmem:[#allocation7 + $0xb8] sm:$0xf0]  ;;  %v5135_v51 = vld [vmem:[%s6964_s10 + $0x20] sm:$0xff] }
 0x226   :  { %v4310_v14 = vor.u32 %v5097_v9, %v4307_v10  ;;  %v5131_v9 = vld [vmem:[%s6964_s10] sm:$0xff]  ;;  %v5159_v10 = vld [vmem:[#allocation9 + $0x60] sm:$0xff] }
 0x227   :  { %2155 = vmatpush.bf16.msrb.mxu3 %v4234_v1  ;;  %2194 = vmatpush.bf16.msrb.mxu2 %v4426_v2  ;;  %v4422_v1 = vor.u32 %v5125_v56, %v4419_v57  ;;  %v5123_v2 = vld [vmem:[#allocation7 + $0x184] sm:$0xf] }
 0x228   :  { %v4414_v11 = vor.u32 %v5123_v2, %v4411_v3  ;;  %v5134_v57 = vld [vmem:[%s6964_s10 + $0x18] sm:$0xff] }
 0x229   :  { %2182 = vmatpush.bf16.msrb.mxu1 %v4354_v27  ;;  %v4219_v27 = vld [vmem:[#allocation7 + $0x8] sm:$0xf0] }
 0x22a   :  { %v4222_v29 = vor.u32 %v5075_v26, %v4219_v27  ;;  %v5143_v26 = vld [vmem:[%s6964_s10 + $0x60] sm:$0xff]  ;;  %v5155_v27 = vld [vmem:[#allocation9 + $0x40] sm:$0xff] }
 0x22b   :  { %2156 = vmatpush.bf16.msrb.mxu3 %v4226_v16  ;;  %2195 = vmatpush.bf16.msrb.mxu2 %v4418_v17  ;;  %v4235_v16 = vld [vmem:[#allocation7 + $0x28] sm:$0xf0]  ;;  %v5095_v17 = vld [vmem:[#allocation7 + $0xa4] sm:$0xf] }
 0x22c   :  { %v4238_v18 = vor.u32 %v5079_v15, %v4235_v16  ;;  %v5146_v15 = vld [vmem:[%s6964_s10 + $0x78] sm:$0xff] }
 0x22d   :  { %2183 = vmatpush.bf16.msrb.mxu1 %v4346_v43  ;;  %v5137_v43 = vld [vmem:[%s6964_s10 + $0x30] sm:$0xff] }
 0x22f   :  { %2157 = vmatpush.bf16.msrb.mxu3 %v4218_v30  ;;  %2196 = vmatpush.bf16.msrb.mxu2 %v4410_v31  ;;  %v4286_v30 = vor.u32 %v5091_v55, %v4283_v28  ;;  %v6682_v31 = vpop.f32.mrf.mxu0  ;;  %v5179_v55 = vld [vmem:[#allocation12] sm:$0xff] }
 0x230   :  { %2184 = vmatmul.bf16.vlgmr.msrb.gmra.mxu1 %v6643_v0  ;;  %v4299_v0 = vld [vmem:[#allocation7 + $0xa8] sm:$0xf0] }
 0x231   :  { %2245 = vmatpush.bf16.msra.mxu1 %v4438_v44  ;;  %v4302_v19 = vor.u32 %v5095_v17, %v4299_v0  ;;  %v5158_v17 = vld [vmem:[#allocation9 + $0x58] sm:$0xff] }
 0x232   :  { %2158 = vmatmul.bf16.vlgmr.msrb.gmra.mxu3 %v6573_v13  ;;  %4439 = vmatmul.msk.bf16.vlgmr.msrb.gmra.mxu2 %vm1706_vm3, %v6645_v7  ;;  %v5182_v0 = vld [vmem:[#allocation12 + $0x18] sm:$0xff] }
 0x233   :  { %2202 = vmatpush.bf16.msra.mxu2 %v4278_v35  ;;  %2215 = vmatpush.bf16.msra.mxu3 %v4342_v36 }
 0x235   :  { %2246 = vmatpush.bf16.msra.mxu1 %v4430_v54  ;;  %v5147_v54 = vld [vmem:[#allocation9] sm:$0xff] }
 0x237   :  { %2203 = vmatpush.bf16.msra.mxu2 %v4270_v48  ;;  %2216 = vmatpush.bf16.msra.mxu3 %v4334_v49  ;;  %v1734_v36 = vpop.f32.mrf.mxu0  ;;  %v5149_v48 = vld [vmem:[#allocation9 + $0x10] sm:$0xff] }
 0x238   :  { %v5136_v49 = vld [vmem:[%s6964_s10 + $0x28] sm:$0xff] }
 0x239   :  { %2247 = vmatpush.bf16.msra.mxu1 %v4422_v1 }
 0x23b   :  { %2204 = vmatpush.bf16.msra.mxu2 %v4262_v58  ;;  %2217 = vmatpush.bf16.msra.mxu3 %v4326_v59  ;;  %v5162_v58 = vld [vmem:[#allocation9 + $0x78] sm:$0xff] }
 0x23c   :  { %v5186_v59 = vld [vmem:[#allocation12 + $0x38] sm:$0xff]  ;;  %2563 = vmatpush.bf16.msra.mxu0 %v5162_v58 }
 0x23d   :  { %2248 = vmatpush.bf16.msra.mxu1 %v4414_v11  ;;  %v5183_v11 = vld [vmem:[#allocation12 + $0x20] sm:$0xff] }
 0x23f   :  { %2205 = vmatpush.bf16.msra.mxu2 %v4254_v4  ;;  %2218 = vmatpush.bf16.msra.mxu3 %v4318_v5  ;;  %v6693_v41 = vpop.f32.mrf.mxu0  ;;  %v5132_v4 = vld [vmem:[%s6964_s10 + $0x8] sm:$0xff]  ;;  %v5160_v5 = vld [vmem:[#allocation9 + $0x68] sm:$0xff] }
 0x240   :  { %4440 = vmatmul.msk.bf16.vlgmr.msra.gmra.mxu1 %vm1706_vm3, %v6645_v7  ;;  %v5153_v7 = vld [vmem:[#allocation9 + $0x30] sm:$0xff]  ;;  %2564 = vmatpush.bf16.msra.mxu0 %v5161_v62 }
 0x243   :  { %2206 = vmatpush.bf16.msra.mxu2 %v4246_v12  ;;  %2219 = vmatpush.bf16.msra.mxu3 %v4310_v14 }
 0x244   :  { %2565 = vmatpush.bf16.msra.mxu0 %v5160_v5 }
 0x247   :  { %2207 = vmatpush.bf16.msra.mxu2 %v4238_v18  ;;  %2220 = vmatpush.bf16.msra.mxu3 %v4302_v19  ;;  %v1786_v47 = vpop.f32.mrf.mxu0  ;;  %v5145_v18 = vld [vmem:[%s6964_s10 + $0x70] sm:$0xff]  ;;  %v5157_v19 = vld [vmem:[#allocation9 + $0x50] sm:$0xff] }
 0x248   :  { %2566 = vmatpush.bf16.msra.mxu0 %v5159_v10  ;;  %v5177_v10 = vld [vmem:[#allocation10 + $0x74] sm:$0xf] }
 0x24b   :  { %2208 = vmatpush.bf16.msra.mxu2 %v4230_v24  ;;  %2221 = vmatpush.bf16.msra.mxu3 %v4294_v25  ;;  %v5156_v24 = vld [vmem:[#allocation9 + $0x48] sm:$0xff] }
 0x24c   :  { %2567 = vmatpush.bf16.msra.mxu0 %v5158_v17  ;;  %v5180_v25 = vld [vmem:[#allocation12 + $0x8] sm:$0xff] }
 0x24f   :  { %2209 = vmatpush.bf16.msra.mxu2 %v4222_v29  ;;  %2222 = vmatpush.bf16.msra.mxu3 %v4286_v30  ;;  %v5142_v29 = vld [vmem:[%s6964_s10 + $0x58] sm:$0xff]  ;;  %v5194_v30 = vld [vmem:[#allocation12 + $0x78] sm:$0xff] }
 0x250   :  { %2568 = vmatpush.bf16.msra.mxu0 %v5157_v19 }
 0x252   :  { %2210 = vmatmul.bf16.vlgmr.msra.gmra.mxu2 %v6573_v13  ;;  %2223 = vmatmul.bf16.vlgmr.msra.gmra.mxu3 %v6514_v32  ;;  %v5138_v32 = vld [vmem:[%s6964_s10 + $0x38] sm:$0xff] }
 0x253   :  { %2550 = vmatpush.bf16.msrb.mxu3 %v5154_v33  ;;  %2396 = vmatpush.bf16.msrb.mxu1 %v5138_v32 }
 0x254   :  { %2409 = vmatpush.bf16.msrb.mxu2 %v5146_v15  ;;  %2569 = vmatpush.bf16.msra.mxu0 %v5156_v24  ;;  %v4613_v24 = vld [vmem:[#allocation10 + $0x58] sm:$0xf0] }
 0x257   :  { %2551 = vmatpush.bf16.msrb.mxu3 %v5153_v7  ;;  %2397 = vmatpush.bf16.msrb.mxu1 %v5137_v43 }
 0x258   :  { %2410 = vmatpush.bf16.msrb.mxu2 %v5145_v18  ;;  %2570 = vmatpush.bf16.msra.mxu0 %v5155_v27  ;;  %v4621_v18 = vld [vmem:[#allocation10 + $0x68] sm:$0xf0] }
 0x25b   :  { %2552 = vmatpush.bf16.msrb.mxu3 %v5152_v37  ;;  %2398 = vmatpush.bf16.msrb.mxu1 %v5136_v49  ;;  %v5141_v37 = vld [vmem:[%s6964_s10 + $0x50] sm:$0xff] }
 0x25c   :  { %2411 = vmatpush.bf16.msrb.mxu2 %v5144_v21  ;;  %2859 = vmatpush.bf16.msrb.mxu0 %v5194_v30 }
 0x25f   :  { %2553 = vmatpush.bf16.msrb.mxu3 %v5151_v40  ;;  %2399 = vmatpush.bf16.msrb.mxu1 %v5135_v51  ;;  %v5139_v51 = vld [vmem:[%s6964_s10 + $0x40] sm:$0xff] }
 0x260   :  { %2412 = vmatpush.bf16.msrb.mxu2 %v5143_v26 }
 0x263   :  { %2554 = vmatpush.bf16.msrb.mxu3 %v5150_v42  ;;  %2400 = vmatpush.bf16.msrb.mxu1 %v5134_v57  ;;  %v6754_v42 = vld [vmem:[#allocation16 + $0x8] sm:$0x3] }
 0x264   :  { %2413 = vmatpush.bf16.msrb.mxu2 %v5142_v29  ;;  %v2258_v49 = vperm.slane %v6754_v42, 0 }
 0x267   :  { %2555 = vmatpush.bf16.msrb.mxu3 %v5149_v48  ;;  %2401 = vmatpush.bf16.msrb.mxu1 %v5133_v61 }
 0x268   :  { %2414 = vmatpush.bf16.msrb.mxu2 %v5141_v37  ;;  %v4605_v37 = vld [vmem:[#allocation10 + $0x48] sm:$0xf0] }
 0x26b   :  { %2556 = vmatpush.bf16.msrb.mxu3 %v5148_v50  ;;  %2402 = vmatpush.bf16.msrb.mxu1 %v5132_v4 }
 0x26f   :  { %2557 = vmatpush.bf16.msrb.mxu3 %v5147_v54  ;;  %2403 = vmatpush.bf16.msrb.mxu1 %v5131_v9 }
 0x273   :  { %2846 = vmatpush.bf16.msra.mxu3 %v5186_v59 }
 0x275   :  { %v6684_v34 = vpop.f32.mrf.mxu2  ;;  %v6686_v35 = vpop.f32.mrf.mxu3 }
 0x277   :  { %2847 = vmatpush.bf16.msra.mxu3 %v5185_v63  ;;  %v5189_v63 = vld [vmem:[#allocation12 + $0x50] sm:$0xff] }
 0x27b   :  { %2848 = vmatpush.bf16.msra.mxu3 %v5184_v6  ;;  %v5187_v6 = vld [vmem:[#allocation12 + $0x40] sm:$0xff] }
 0x27d   :  { %v1179_v38 = vpop.f32.mrf.mxu2  ;;  %v1192_v39 = vpop.f32.mrf.mxu3 }
 0x27e   :  { %v6691_v13 = vpop.f32.mrf.mxu1  ;;  %v5193_v38 = vld [vmem:[#allocation12 + $0x70] sm:$0xff] }
 0x27f   :  { %2849 = vmatpush.bf16.msra.mxu3 %v5183_v11  ;;  %2860 = vmatpush.bf16.msrb.mxu0 %v5193_v38  ;;  %v4629_v11 = vld [vmem:[#allocation10 + $0x78] sm:$0xf0] }
 0x282   :  { %v6713_v60 = vpop.f32.mrf.mxu0 }
 0x283   :  { %2850 = vmatpush.bf16.msra.mxu3 %v5182_v0  ;;  %v4632_v0 = vor.u32 %v5177_v10, %v4629_v11  ;;  %v4579_v10 = vld [vmem:[#allocation10 + $0x10] sm:$0xf]  ;;  %v5166_v11 = vld [vmem:[#allocation10 + $0x14] sm:$0xf0] }
 0x285   :  { %v6698_v44 = vpop.f32.mrf.mxu2  ;;  %v6700_v45 = vpop.f32.mrf.mxu3 }
 0x286   :  { %v1353_v46 = vpop.f32.mrf.mxu1  ;;  %v1733_v33 = vadd.f32 %v6682_v31, %v6700_v45  ;;  %v5140_v45 = vld [vmem:[%s6964_s10 + $0x48] sm:$0xff] }
 0x287   :  { %2851 = vmatpush.bf16.msra.mxu3 %v5181_v20  ;;  %v5192_v46 = vld [vmem:[#allocation12 + $0x68] sm:$0xff]  ;;  %2415 = vmatpush.bf16.msrb.mxu2 %v5140_v45  ;;  %v4619_v45 = vld [vmem:[#allocation10 + $0x60] sm:$0xf] }
 0x288   :  { %2861 = vmatpush.bf16.msrb.mxu0 %v5192_v46  ;;  %v5176_v46 = vld [vmem:[#allocation10 + $0x64] sm:$0xf0] }
 0x28a   :  { %v2174_v8 = vpop.f32.mrf.mxu0 }
 0x28b   :  { %2852 = vmatpush.bf16.msra.mxu3 %v5180_v25  ;;  %2416 = vmatpush.bf16.msrb.mxu2 %v5139_v51  ;;  %v5174_v51 = vld [vmem:[#allocation10 + $0x54] sm:$0xf0] }
 0x28d   :  { %v1366_v52 = vpop.f32.mrf.mxu2  ;;  %v1721_v53 = vpop.f32.mrf.mxu3 }
 0x28e   :  { %v6708_v56 = vpop.f32.mrf.mxu1  ;;  %v5191_v53 = vld [vmem:[#allocation12 + $0x60] sm:$0xff] }
 0x28f   :  { %2853 = vmatpush.bf16.msra.mxu3 %v5179_v55  ;;  %v1746_v40 = vadd.f32 %v6708_v56, %v1733_v33  ;;  %2862 = vmatpush.bf16.msrb.mxu0 %v5191_v53  ;;  %v5165_v53 = vld [vmem:[#allocation10 + $0x14] sm:$0xf] }
 0x290   :  { %2699 = vmatpush.bf16.msra.mxu2 %v4632_v0 }
 0x295   :  { %v6718_v1 = vpop.f32.mrf.mxu2  ;;  %v6720_v2 = vpop.f32.mrf.mxu3 }
 0x296   :  { %v1747_v3 = vpop.f32.mrf.mxu1  ;;  %v1759_v47 = vadd.f32 %v6718_v1, %v1746_v40  ;;  %v1138_v1 = vld [vmem:[#allocation16 + $0x4] sm:$0x3]  ;;  %v1785_v9 = vadd.f32 %v6693_v41, %v6720_v2  ;;  %v2259_v2 = vperm.slane %v6754_v42, 1  ;;  %v5178_v40 = vld [vmem:[#allocation10 + $0x74] sm:$0xf0] }
 0x297   :  { %v5188_v3 = vld [vmem:[#allocation12 + $0x48] sm:$0xff]  ;;  %v1140_v4 = vperm.slane %v1138_v1, 0  ;;  %v1141_v33 = vperm.slane %v1138_v1, 1  ;;  %v5169_v42 = vld [vmem:[#allocation10 + $0x34] sm:$0xf] }
 0x298   :  { %v5170_v1 = vld [vmem:[#allocation10 + $0x34] sm:$0xf0] }
 0x299   :  { %v1178_v8 = vadd.f32 %v6684_v34, %v1140_v4  ;;  %v5173_v34 = vld [vmem:[#allocation10 + $0x54] sm:$0xf]  ;;  %v4587_v4 = vld [vmem:[#allocation10 + $0x20] sm:$0xf] }
 0x29a   :  { %v4616_v26 = vor.u32 %v5173_v34, %v4613_v24  ;;  %v5205_v34 = vld [vmem:[%s6968_s14 + $0x50] sm:$0xff]  ;;  %v5200_v24 = vld [vmem:[%s6968_s14 + $0x28] sm:$0xff] }
 0x29d   :  { %v1760_v12 = vpop.f32.mrf.mxu2  ;;  %v1773_v14 = vpop.f32.mrf.mxu3 }
 0x29e   :  { %v6731_v16 = vpop.f32.mrf.mxu1  ;;  %v5175_v12 = vld [vmem:[#allocation10 + $0x64] sm:$0xf]  ;;  %v2712_v14 = vpack.c.bf16 %v1178_v8, %v1178_v8 }
 0x29f   :  { %v4624_v21 = vor.u32 %v5175_v12, %v4621_v18  ;;  %v5208_v12 = vld [vmem:[%s6968_s14 + $0x68] sm:$0xff]  ;;  %v5207_v18 = vld [vmem:[%s6968_s14 + $0x60] sm:$0xff] }
 0x2a1   :  { %2700 = vmatpush.bf16.msra.mxu2 %v4624_v21 }
 0x2a2   :  { %v2237_v7 = vpop.f32.mrf.mxu0 }
 0x2a5   :  { %v6739_v22 = vpop.f32.mrf.mxu2  ;;  %2701 = vmatpush.bf16.msra.mxu2 %v4616_v26  ;;  %v5199_v26 = vld [vmem:[%s6968_s14 + $0x20] sm:$0xff] }
 0x2a6   :  { %v1812_v23 = vpop.f32.mrf.mxu1  ;;  %v1798_v19 = vadd.f32 %v6739_v22, %v1785_v9  ;;  %v5209_v9 = vld [vmem:[%s6968_s14 + $0x70] sm:$0xff] }
 0x2a8   :  { %v1811_v41 = vadd.f32 %v6731_v16, %v1798_v19  ;;  %v5171_v16 = vld [vmem:[#allocation10 + $0x44] sm:$0xf] }
 0x2a9   :  { %v4608_v38 = vor.u32 %v5171_v16, %v4605_v37  ;;  %v5202_v19 = vld [vmem:[%s6968_s14 + $0x38] sm:$0xff] }
 0x2aa   :  { %v2239_v52 = vpop.f32.mrf.mxu0 }
 0x2ab   :  { %2702 = vmatpush.bf16.msra.mxu2 %v4608_v38 }
 0x2ad   :  { %v1799_v28 = vpop.f32.mrf.mxu2 }
 0x2ae   :  { %v2185_v36 = vpop.f32.mrf.mxu1 }
 0x2b5   :  { %v2159_v39 = vpop.f32.mrf.mxu3  ;;  %v2198_v43 = vpop.f32.mrf.mxu2 }
 0x2b6   :  { %v2173_v32 = vadd.f32 %v6713_v60, %v2159_v39  ;;  %v2187_v50 = vpop.f32.mrf.mxu1  ;;  %v5190_v60 = vld [vmem:[#allocation12 + $0x58] sm:$0xff]  ;;  %v4627_v39 = vld [vmem:[#allocation10 + $0x70] sm:$0xf] }
 0x2b7   :  { %2863 = vmatpush.bf16.msrb.mxu0 %v5190_v60  ;;  %v4611_v50 = vld [vmem:[#allocation10 + $0x50] sm:$0xf]  ;;  %v5163_v60 = vld [vmem:[#allocation10 + $0x4] sm:$0xf] }
 0x2b8   :  { %v2186_v31 = vadd.f32 %v2185_v36, %v2173_v32  ;;  %v1191_v36 = vadd.f32 %v6686_v35, %v1141_v33  ;;  %v4628_v32 = vor.u32 %v5178_v40, %v4627_v39  ;;  %v4589_v35 = vld [vmem:[#allocation10 + $0x28] sm:$0xf0]  ;;  %v4612_v52 = vor.u32 %v5174_v51, %v4611_v50  ;;  %v5260_v39 = vld [vmem:[#allocation16 + $0xa] ss:$0 sm:$0xff]  ;;  %v5233_v50 = vld [vmem:[%s6970_s16 + $0x30] sm:$0xff] }
 0x2b9   :  { %v5195_v33 = vld [vmem:[%s6968_s14] sm:$0xff] }
 0x2ba   :  { %v2199_v48 = vadd.f32 %v2198_v43, %v2186_v31  ;;  %v4597_v31 = vld [vmem:[#allocation10 + $0x38] sm:$0xf0]  ;;  %2686 = vmatpush.bf16.msra.mxu1 %v4628_v32 }
 0x2bb   :  { %2864 = vmatpush.bf16.msrb.mxu0 %v5189_v63  ;;  %v4600_v43 = vor.u32 %v5169_v42, %v4597_v31 }
 0x2bc   :  { %v2254_v54 = vmax.f32 %v1759_v47, %v2199_v48  ;;  %v4620_v47 = vor.u32 %v5176_v46, %v4619_v45  ;;  %v5167_v48 = vld [vmem:[#allocation10 + $0x24] sm:$0xf] }
 0x2bd   :  { %v2161_v56 = vpop.f32.mrf.mxu3  ;;  %v2200_v59 = vpop.f32.mrf.mxu2  ;;  %2703 = vmatpush.bf16.msra.mxu2 %v4600_v43  ;;  %v5234_v45 = vld [vmem:[%s6970_s16 + $0x38] sm:$0xff] }
 0x2be   :  { %v2262_v57 = vadd.f32 %v2258_v49, %v2254_v54  ;;  %v2250_v62 = vpop.f32.mrf.mxu1  ;;  %2687 = vmatpush.bf16.msra.mxu1 %v4620_v47  ;;  %v4592_v49 = vor.u32 %v5167_v48, %v4589_v35  ;;  %v4581_v54 = vld [vmem:[#allocation10 + $0x18] sm:$0xf0]  ;;  %v1256_v47 = vld [vmem:[#allocation16 + $0x6] sm:$0x3] }
 0x2bf   :  { %2865 = vmatpush.bf16.msrb.mxu0 %v5188_v3  ;;  %v4584_v56 = vor.u32 %v5165_v53, %v4581_v54  ;;  %v5210_v3 = vld [vmem:[%s6968_s14 + $0x78] sm:$0xff]  ;;  %v1258_v51 = vperm.slane %v1256_v47, 0  ;;  %v5217_v53 = vld [vmem:[%s6969_s15 + $0x30] sm:$0xff] }
 0x2c0   :  { %v2264_v58 = vmax.f32 %v2262_v57, 0.0  ;;  %v4603_v57 = vld [vmem:[#allocation10 + $0x40] sm:$0xf]  ;;  %v5218_v35 = vld [vmem:[%s6969_s15 + $0x38] sm:$0xff] }
 0x2c1   :  { %2704 = vmatpush.bf16.msra.mxu2 %v4592_v49  ;;  %v5226_v49 = vld [vmem:[%s6969_s15 + $0x78] sm:$0xff]  ;;  %v5225_v54 = vld [vmem:[%s6969_s15 + $0x70] sm:$0xff] }
 0x2c2   :  { %v2266_v61 = vpack.c.bf16 %v2264_v58, %v2264_v58  ;;  %2688 = vmatpush.bf16.msra.mxu1 %v4612_v52  ;;  %v5172_v58 = vld [vmem:[#allocation10 + $0x44] sm:$0xf0]  ;;  %v1259_v52 = vperm.slane %v1256_v47, 1 }
 0x2c3   :  { %2866 = vmatpush.bf16.msrb.mxu0 %v5187_v6  ;;  %v4604_v59 = vor.u32 %v5172_v58, %v4603_v57  ;;  %v5168_v6 = vld [vmem:[#allocation10 + $0x24] sm:$0xf0]  ;;  %v1352_v57 = vadd.f32 %v6691_v13, %v1258_v51 }
 0x2c4   :  { %2404 = vmatmul.bf16.vlgmr.msrb.gmra.mxu1 %v2266_v61  ;;  %2558 = vmatmul.bf16.vlgmr.msrb.gmra.mxu3 %v2266_v61  ;;  %v4573_v61 = vld [vmem:[#allocation10 + $0x8] sm:$0xf0]  ;;  %v4588_v8 = vor.u32 %v5168_v6, %v4587_v4  ;;  %v1365_v58 = vadd.f32 %v6698_v44, %v1259_v52  ;;  %v5214_v6 = vld [vmem:[%s6969_s15 + $0x18] sm:$0xff]  ;;  %v3392_v52 = vld [vmem:[%s6973_s19 + $0x70] sm:$0xff] }
 0x2c5   :  { %2705 = vmatpush.bf16.msra.mxu2 %v4584_v56  ;;  %v4576_v63 = vor.u32 %v5163_v60, %v4573_v61  ;;  %3168 = vmatpush.bf16.msrb.mxu3 %v5218_v35  ;;  %v5232_v56 = vld [vmem:[%s6970_s16 + $0x28] sm:$0xff]  ;;  %v5215_v44 = vld [vmem:[%s6969_s15 + $0x20] sm:$0xff]  ;;  %v3393_v51 = vld [vmem:[%s6973_s19 + $0x78] sm:$0xff] }
 0x2c6   :  { %v2252_v5 = vpop.f32.mrf.mxu1  ;;  %2689 = vmatpush.bf16.msra.mxu1 %v4604_v59  ;;  %v5216_v59 = vld [vmem:[%s6969_s15 + $0x28] sm:$0xff]  ;;  %v1369_v13 = vmax.f32 %v1365_v58, 0.0 }
 0x2c7   :  { %v5224_v60 = vld [vmem:[%s6969_s15 + $0x68] sm:$0xff] }
 0x2c9   :  { %2706 = vmatpush.bf16.msra.mxu2 %v4576_v63  ;;  %3169 = vmatpush.bf16.msrb.mxu3 %v5217_v53  ;;  %v1368_v63 = vmax.f32 %v1352_v57, 0.0  ;;  %v3391_v53 = vld [vmem:[%s6973_s19 + $0x68] sm:$0xff] }
 0x2cb   :  { %v2873_v4 = vpack.c.bf16 %v1368_v63, %v1368_v63  ;;  %v3387_v63 = vld [vmem:[%s6973_s19 + $0x48] sm:$0xff] }
 0x2cd   :  { %3170 = vmatpush.bf16.msrb.mxu3 %v5216_v59  ;;  %v3389_v59 = vld [vmem:[%s6973_s19 + $0x58] sm:$0xff] }
 0x2d1   :  { %3171 = vmatpush.bf16.msrb.mxu3 %v5215_v44  ;;  %v3386_v44 = vld [vmem:[%s6973_s19 + $0x40] sm:$0xff] }
 0x2d4   :  { %2854 = vmatmul.bf16.vlgmr.msra.gmra.mxu3 %v2712_v14  ;;  %v4580_v14 = vor.u32 %v5166_v11, %v4579_v10  ;;  %v5229_v10 = vld [vmem:[%s6970_s16 + $0x10] sm:$0xff] }
 0x2d5   :  { %v2211_v15 = vpop.f32.mrf.mxu2  ;;  %v2224_v17 = vpop.f32.mrf.mxu3  ;;  %3172 = vmatpush.bf16.msrb.mxu3 %v5214_v6  ;;  %v5213_v11 = vld [vmem:[%s6969_s15 + $0x10] sm:$0xff] }
 0x2d6   :  { %v2225_v20 = vadd.f32 %v2224_v17, %v2211_v15  ;;  %v4571_v15 = vld [vmem:[#allocation10] sm:$0xf]  ;;  %v5164_v17 = vld [vmem:[#allocation10 + $0x4] sm:$0xf0] }
 0x2d7   :  { %v4572_v0 = vor.u32 %v5164_v17, %v4571_v15  ;;  %v5212_v17 = vld [vmem:[%s6969_s15 + $0x8] sm:$0xff]  ;;  %v3384_v6 = vld [vmem:[%s6973_s19 + $0x30] sm:$0xff] }
 0x2d8   :  { %v2238_v23 = vadd.f32 %v2237_v7, %v2225_v20  ;;  %v2713_v7 = vpack.c.bf16 %v1191_v36, %v1191_v36  ;;  %v5206_v20 = vld [vmem:[%s6968_s14 + $0x58] sm:$0xff] }
 0x2d9   :  { %3173 = vmatpush.bf16.msrb.mxu3 %v5213_v11 }
 0x2da   :  { %v2251_v25 = vadd.f32 %v2250_v62, %v2238_v23  ;;  %v4595_v62 = vld [vmem:[#allocation10 + $0x30] sm:$0xf]  ;;  %v5201_v23 = vld [vmem:[%s6968_s14 + $0x30] sm:$0xff] }
 0x2db   :  { %v4596_v5 = vor.u32 %v5170_v1, %v4595_v62  ;;  %v5231_v62 = vld [vmem:[%s6970_s16 + $0x20] sm:$0xff] }
 0x2dc   :  { %v2255_v27 = vmax.f32 %v1811_v41, %v2251_v25  ;;  %v5204_v25 = vld [vmem:[%s6968_s14 + $0x48] sm:$0xff]  ;;  %v5223_v1 = vld [vmem:[%s6969_s15 + $0x60] sm:$0xff] }
 0x2dd   :  { %v2213_v55 = vpop.f32.mrf.mxu2  ;;  %v2226_v28 = vpop.f32.mrf.mxu3  ;;  %2690 = vmatpush.bf16.msra.mxu1 %v4596_v5  ;;  %v2874_v5 = vpack.c.bf16 %v1369_v13, %v1369_v13  ;;  %3174 = vmatpush.bf16.msrb.mxu3 %v5212_v17  ;;  %v3378_v17 = vld [vmem:[%s6973_s19] sm:$0xff] }
 0x2de   :  { %v2263_v29 = vadd.f32 %v2259_v2, %v2255_v27  ;;  %v5203_v27 = vld [vmem:[%s6968_s14 + $0x40] sm:$0xff]  ;;  %v5198_v55 = vld [vmem:[%s6968_s14 + $0x18] sm:$0xff] }
 0x2e0   :  { %v2265_v22 = vmax.f32 %v2263_v29, 0.0  ;;  %v5197_v29 = vld [vmem:[%s6968_s14 + $0x10] sm:$0xff] }
 0x2e1   :  { %2691 = vmatpush.bf16.msra.mxu1 %v4588_v8  ;;  %v5222_v8 = vld [vmem:[%s6969_s15 + $0x58] sm:$0xff] }
 0x2e2   :  { %v2267_v30 = vpack.c.bf16 %v2265_v22, %v2265_v22  ;;  %v5196_v22 = vld [vmem:[%s6968_s14 + $0x8] sm:$0xff] }
 0x2e4   :  { %2417 = vmatmul.bf16.vlgmr.msrb.gmra.mxu2 %v2267_v30  ;;  %2571 = vmatmul.bf16.vlgmr.msra.gmra.mxu0 %v2267_v30 }
 0x2e5   :  { %3020 = vmatpush.bf16.msrb.mxu2 %v5210_v3  ;;  %2692 = vmatpush.bf16.msra.mxu1 %v4580_v14  ;;  %v5230_v3 = vld [vmem:[%s6970_s16 + $0x18] sm:$0xff]  ;;  %v5228_v14 = vld [vmem:[%s6970_s16 + $0x8] sm:$0xff] }
 0x2e6   :  { %3181 = vmatpush.bf16.msra.mxu0 %v5226_v49  ;;  %v5240_v49 = vld [vmem:[#allocation15 + $0x8] sm:$0xff] }
 0x2e9   :  { %3021 = vmatpush.bf16.msrb.mxu2 %v5209_v9  ;;  %2693 = vmatpush.bf16.msra.mxu1 %v4572_v0  ;;  %v5259_v9 = vld [vmem:[#allocation16 + $0xd] ss:$0 sm:$0xff] }
 0x2ea   :  { %3182 = vmatpush.bf16.msra.mxu0 %v5225_v54  ;;  %v5227_v0 = vld [vmem:[%s6970_s16] sm:$0xff] }
 0x2eb   :  { %v5262_v54 = vld [vmem:[#allocation16 + $0xf] ss:$0 sm:$0xff] }
 0x2ed   :  { %3022 = vmatpush.bf16.msrb.mxu2 %v5208_v12  ;;  %3007 = vmatpush.bf16.msrb.mxu1 %v5202_v19 }
 0x2ee   :  { %3183 = vmatpush.bf16.msra.mxu0 %v5224_v60 }
 0x2f1   :  { %3023 = vmatpush.bf16.msrb.mxu2 %v5207_v18  ;;  %3008 = vmatpush.bf16.msrb.mxu1 %v5201_v23  ;;  %v5220_v23 = vld [vmem:[%s6969_s15 + $0x48] sm:$0xff] }
 0x2f2   :  { %3184 = vmatpush.bf16.msra.mxu0 %v5223_v1 }
 0x2f4   :  { %2867 = vmatmul.bf16.vlgmr.msrb.gmra.mxu0 %v2713_v7 }
 0x2f5   :  { %3024 = vmatpush.bf16.msrb.mxu2 %v5206_v20  ;;  %3009 = vmatpush.bf16.msrb.mxu1 %v5200_v24  ;;  %v5221_v20 = vld [vmem:[%s6969_s15 + $0x50] sm:$0xff] }
 0x2f6   :  { %3185 = vmatpush.bf16.msra.mxu0 %v5222_v8  ;;  %v5238_v24 = vld [vmem:[#allocation13 + $0x18] sm:$0xff] }
 0x2f7   :  { %v3383_v8 = vld [vmem:[%s6973_s19 + $0x28] sm:$0xff] }
 0x2f9   :  { %3025 = vmatpush.bf16.msrb.mxu2 %v5205_v34  ;;  %3010 = vmatpush.bf16.msrb.mxu1 %v5199_v26  ;;  %v5219_v34 = vld [vmem:[%s6969_s15 + $0x40] sm:$0xff] }
 0x2fa   :  { %3186 = vmatpush.bf16.msra.mxu0 %v5221_v20  ;;  %v2600_v26 = vld [vmem:[#allocation16 + $0xb] sm:$0x3] }
 0x2fd   :  { %3026 = vmatpush.bf16.msrb.mxu2 %v5204_v25  ;;  %3011 = vmatpush.bf16.msrb.mxu1 %v5198_v55  ;;  %v5235_v25 = vld [vmem:[#allocation13] sm:$0xff] }
 0x2fe   :  { %3187 = vmatpush.bf16.msra.mxu0 %v5220_v23 }
 0x301   :  { %3027 = vmatpush.bf16.msrb.mxu2 %v5203_v27  ;;  %3012 = vmatpush.bf16.msrb.mxu1 %v5197_v29  ;;  %v2602_v27 = vperm.slane %v2600_v26, 0 }
 0x302   :  { %3188 = vmatpush.bf16.msra.mxu0 %v5219_v34 }
 0x305   :  { %3013 = vmatpush.bf16.msrb.mxu1 %v5196_v22  ;;  %v2603_v22 = vperm.slane %v2600_v26, 1 }
 0x306   :  { %3398 = vmatpush.msrb.mxu0 %v3393_v51 }
 0x308   :  { %3399 = vmatpush.msrb.mxu0 %v3392_v52 }
 0x309   :  { %3014 = vmatpush.bf16.msrb.mxu1 %v5195_v33 }
 0x30a   :  { %3400 = vmatpush.msrb.mxu0 %v3391_v53 }
 0x341   :  { %v2405_v21 = vpop.f32.mrf.mxu1 }
 0x347   :  { %v2559_v41 = vpop.f32.mrf.mxu3 }
 0x349   :  { %v2407_v2 = vpop.f32.mrf.mxu1 }
 0x34a   :  { %v5236_v2 = vld [vmem:[#allocation13 + $0x8] sm:$0xff] }
 0x34f   :  { %v2561_v28 = vpop.f32.mrf.mxu3 }
 0x357   :  { %v6816_v30 = vpop.f32.mrf.mxu3 }
 0x358   :  { %v2856_v12 = vadd.f32 %v5259_v9, %v6816_v30  ;;  %v3382_v9 = vld [vmem:[%s6973_s19 + $0x20] sm:$0xff] }
 0x35f   :  { %v2857_v7 = vpop.f32.mrf.mxu3 }
 0x361   :  { %v2572_v36 = vpop.f32.mrf.mxu0 }
 0x362   :  { %v2573_v37 = vadd.f32 %v2572_v36, %v2559_v41  ;;  %v5237_v41 = vld [vmem:[#allocation13 + $0x10] sm:$0xff] }
 0x367   :  { %v2418_v16 = vpop.f32.mrf.mxu2 }
 0x368   :  { %v2419_v38 = vadd.f32 %v2418_v16, %v2405_v21  ;;  %v5211_v21 = vld [vmem:[%s6969_s15] sm:$0xff] }
 0x369   :  { %v2574_v40 = vpop.f32.mrf.mxu0  ;;  %3175 = vmatpush.bf16.msrb.mxu3 %v5211_v21 }
 0x36a   :  { %v2576_v32 = vmax.f32 %v2419_v38, %v2573_v37  ;;  %v5242_v37 = vld [vmem:[#allocation15 + $0x18] sm:$0xff]  ;;  %v5261_v40 = vld [vmem:[#allocation16 + $0xe] ss:$0 sm:$0xff] }
 0x36c   :  { %v2581_v42 = vadd.f32 %v5260_v39, %v2576_v32  ;;  %v5241_v39 = vld [vmem:[#allocation15 + $0x10] sm:$0xff] }
 0x36d   :  { %3362 = vmatpush.bf16.msra.mxu3 %v5242_v37 }
 0x36e   :  { %v2582_v31 = vmax.f32 %v2581_v42, 0.0 }
 0x36f   :  { %v2420_v43 = vpop.f32.mrf.mxu2 }
 0x370   :  { %v2583_v46 = vpack.c.bf16 %v2582_v31, %v2582_v31 }
 0x371   :  { %v2868_v48 = vpop.f32.mrf.mxu0  ;;  %3363 = vmatpush.bf16.msra.mxu3 %v5241_v39 }
 0x372   :  { %2694 = vmatmul.bf16.vlgmr.msra.gmra.mxu1 %v2583_v46  ;;  %2707 = vmatmul.bf16.vlgmr.msra.gmra.mxu2 %v2583_v46  ;;  %v2869_v15 = vadd.f32 %v2868_v48, %v2856_v12  ;;  %v3381_v12 = vld [vmem:[%s6973_s19 + $0x18] sm:$0xff] }
 0x373   :  { %3309 = vmatpush.bf16.msra.mxu2 %v5234_v45  ;;  %3252 = vmatpush.bf16.msra.mxu1 %v5238_v24  ;;  %v3420_v24 = vld [vmem:[#allocation16 + $0x12] sm:$0x1] }
 0x374   :  { %v2872_v18 = vmax.f32 %v2869_v15, 0.0  ;;  %v3379_v15 = vld [vmem:[%s6973_s19 + $0x8] sm:$0xff] }
 0x375   :  { %3364 = vmatpush.bf16.msra.mxu3 %v5240_v49 }
 0x376   :  { %v3195_v19 = vpack.c.bf16 %v2872_v18, %v2872_v18  ;;  %v5263_v18 = vld [vmem:[#allocation16 + $0x10] ss:$0 sm:$0xff] }
 0x377   :  { %3310 = vmatpush.bf16.msra.mxu2 %v5233_v50  ;;  %3253 = vmatpush.bf16.msra.mxu1 %v5237_v41  ;;  %v5239_v50 = vld [vmem:[#allocation15] sm:$0xff]  ;;  %v5535_v41 = vmov 0  }
 0x378   :  { %5258 = vset.pattern.permute.xlu0 %v5535_v41 }
 0x379   :  { %v2870_v61 = vpop.f32.mrf.mxu0  ;;  %3365 = vmatpush.bf16.msra.mxu3 %v5239_v50  ;;  %3423 = vperm.xlu0 %5258, %v3420_v24  }
 0x37a   :  { %v3388_v61 = vld [vmem:[%s6973_s19 + $0x50] sm:$0xff] }
 0x37b   :  { %3311 = vmatpush.bf16.msra.mxu2 %v5232_v56  ;;  %3254 = vmatpush.bf16.msra.mxu1 %v5236_v2  ;;  %v3390_v56 = vld [vmem:[%s6973_s19 + $0x60] sm:$0xff] }
 0x37c   :  { %3401 = vmatpush.msrb.mxu0 %v3390_v56  ;;  %v5264_v2 = vld [vmem:[#allocation16 + $0x11] ss:$0 sm:$0xff] }
 0x37e   :  { %3402 = vmatpush.msrb.mxu0 %v3389_v59 }
 0x37f   :  { %3312 = vmatpush.bf16.msra.mxu2 %v5231_v62  ;;  %3255 = vmatpush.bf16.msra.mxu1 %v5235_v25 }
 0x380   :  { %3403 = vmatpush.msrb.mxu0 %v3388_v61 }
 0x382   :  { %3015 = vmatmul.bf16.vlgmr.msrb.gmra.mxu1 %v2873_v4  ;;  %3028 = vmatmul.bf16.vlgmr.msrb.gmra.mxu2 %v2874_v5  ;;  %v3385_v5 = vld [vmem:[%s6973_s19 + $0x38] sm:$0xff] }
 0x383   :  { %3313 = vmatpush.bf16.msra.mxu2 %v5230_v3  ;;  %3404 = vmatpush.msrb.mxu0 %v3387_v63 }
 0x385   :  { %3405 = vmatpush.msrb.mxu0 %v3386_v44 }
 0x387   :  { %3314 = vmatpush.bf16.msra.mxu2 %v5229_v10  ;;  %3406 = vmatpush.msrb.mxu0 %v3385_v5 }
 0x389   :  { %3407 = vmatpush.msrb.mxu0 %v3384_v6 }
 0x38b   :  { %3315 = vmatpush.bf16.msra.mxu2 %v5228_v14  ;;  %3408 = vmatpush.msrb.mxu0 %v3383_v8  ;;  %v3380_v14 = vld [vmem:[%s6973_s19 + $0x10] sm:$0xff] }
 0x38d   :  { %3409 = vmatpush.msrb.mxu0 %v3382_v9 }
 0x38f   :  { %3316 = vmatpush.bf16.msra.mxu2 %v5227_v0  ;;  %3410 = vmatpush.msrb.mxu0 %v3381_v12 }
 0x391   :  { %3411 = vmatpush.msrb.mxu0 %v3380_v14 }
 0x392   :  { %3317 = vmatmul.bf16.vlgmr.msra.gmra.mxu2 %v3195_v19 }
 0x393   :  { %3412 = vmatpush.msrb.mxu0 %v3379_v15 }
 0x395   :  { %3413 = vmatpush.msrb.mxu0 %v3378_v17 }
 0x3ef   :  { %v2695_v55 = vpop.f32.mrf.mxu1 }
 0x3f0   :  { %v2696_v28 = vadd.f32 %v2695_v55, %v2602_v27  ;;  %v3419_v55 = vld [vmem:[%s6974_s20] sm:$0x1] }
 0x3f2   :  { %v3034_v29 = vpack.c.bf16 %v2696_v28, %v2696_v28  ;;  %v3424_v28 = vpop.permute.xlu0 %3423 }
 0x3f4   :  { %3176 = vmatmul.bf16.vlgmr.msrb.gmra.mxu3 %v3034_v29  ;;  %v3426_v29 = vperm.slane %v3424_v28, 0 }
 0x3f5   :  { %v2708_v30 = vpop.f32.mrf.mxu2 }
 0x3f6   :  { %v2709_v33 = vadd.f32 %v2708_v30, %v2603_v22 }
 0x3f7   :  { %v2697_v36 = vpop.f32.mrf.mxu1 }
 0x3f8   :  { %v3035_v7 = vpack.c.bf16 %v2709_v33, %v2709_v33 }
 0x3fa   :  { %3189 = vmatmul.bf16.vlgmr.msra.gmra.mxu0 %v3035_v7 }
 0x3fd   :  { %v2710_v16 = vpop.f32.mrf.mxu2 }
 0x3ff   :  { %v3016_v38 = vpop.f32.mrf.mxu1 }
 0x400   :  { %v3017_v32 = vadd.f32 %v5261_v40, %v3016_v38 }
 0x405   :  { %v3029_v42 = vpop.f32.mrf.mxu2 }
 0x406   :  { %v3030_v31 = vadd.f32 %v3029_v42, %v3017_v32 }
 0x407   :  { %v3018_v43 = vpop.f32.mrf.mxu1 }
 0x408   :  { %v3033_v45 = vmax.f32 %v3030_v31, 0.0 }
 0x40a   :  { %v3212_v46 = vpack.c.bf16 %v3033_v45, %v3033_v45 }
 0x40c   :  { %4841 = vmatmul.msk.bf16.vlgmr.msra.gmra.mxu1 %vm1706_vm3, %v3212_v46 }
 0x40d   :  { %v3031_v47 = vpop.f32.mrf.mxu2 }
 0x415   :  { %v3318_v48 = vpop.f32.mrf.mxu2 }
 0x41d   :  { %v3320_v35 = vpop.f32.mrf.mxu2 }
 0x477   :  { %v3177_v57 = vpop.f32.mrf.mxu3  ;;  %v3190_v58 = vpop.f32.mrf.mxu0 }
 0x478   :  { %v3178_v60 = vadd.f32 %v5262_v54, %v3177_v57 }
 0x47a   :  { %v3191_v62 = vadd.f32 %v3190_v58, %v3178_v60 }
 0x47c   :  { %v3194_v13 = vmax.f32 %v3191_v62, 0.0 }
 0x47e   :  { %v3322_v1 = vpack.c.bf16 %v3194_v13, %v3194_v13 }
 0x47f   :  { %v3179_v3 = vpop.f32.mrf.mxu3  ;;  %v3192_v4 = vpop.f32.mrf.mxu0 }
 0x480   :  { %4890 = vmatmul.msk.bf16.vlgmr.msra.gmra.mxu3 %vm1706_vm3, %v3322_v1 }
 0x489   :  { %v3257_v10 = vpop.f32.mrf.mxu1 }
 0x48a   :  { %v3319_v0 = vadd.f32 %v3318_v48, %v3257_v10 }
 0x491   :  { %v3259_v11 = vpop.f32.mrf.mxu1 }
 0x503   :  { %v3367_v19 = vpop.f32.mrf.mxu3 }
 0x504   :  { %v3371_v20 = vadd.f32 %v3367_v19, %v3319_v0 }
 0x506   :  { %v3376_v21 = vadd.f32 %v5263_v18, %v3371_v20 }
 0x508   :  { %v3377_v23 = vmax.f32 %v3376_v21, 0.0 }
 0x50a   :  { %3414 = vmatmul.f32.vlgmr.msrb.gmra.mxu0 %v3377_v23 }
 0x50b   :  { %v3369_v34 = vpop.f32.mrf.mxu3 }
 0x587   :  { %v3415_v25 = vpop.f32.mrf.mxu0 }
 0x588   :  { %v3416_v26 = vadd.f32 %v5264_v2, %v3415_v25 }
 0x58a   :  { %v3418_v27 = vmax.f32 %v3416_v26, 0.0 }
 0x58c   :  { %4891 = vmatpush.xpose.msk.msrb.mxu1 %vm1164_vm2, %v3418_v27 }
 0x58f   :  { %4892 = vmatmul.msk.f32.vlgmr.msrb.gmra.mxu1 %vm1164_vm2, %v3419_v55 }
 0x60c   :  { %v3450_v22 = vpop.f32.mrf.mxu1 }
 0x60d   :  { %v3451_v30 = vadd.f32 %v3450_v22, %v3426_v29 }
 0x60f   :  { %v4893_v33 = vmul.f32 -1.442695, %v3451_v30 }
 0x611   :  { %5265 = vpow2.f32 %v4893_v33 }
 0x617   :  { %v5266_v36 = vpop.eup %5265 }
 0x618   :  { %v3456_v7 = vadd.f32 1.0, %v5266_v36 }
 0x61a   :  { %5267 = vrcp.f32 %v3456_v7  ;;  %v3468_v39 = vand.u32 2147483648, %v3456_v7  ;;  %v3466_v32 = vand.u32 2147483647, %v3456_v7  ;;  %vm3462_vm5 = vweird.f32 %v3456_v7 }
 0x61c   :  { %v3469_v31 = vor.u32 1.1754944e-38, %v3468_v39  ;;  %vm3467_vm8 = vcmp.eq.f32.partialorder %v3466_v32, 8.507059e+37 }
 0x620   :  { %v5268_v16 = vpop.eup %5267 }
 0x621   :  { %v3458_v37 = vmul.f32 %v5268_v16, %v3456_v7  ;;  %vm3463_vm4 = vweird.f32 %v5268_v16 }
 0x622   :  { %vm3464_vm6 = vmor %vm3462_vm5, %vm3463_vm4 }
 0x623   :  { %v3459_v38 = vsub.f32 1.0, %v3458_v37 }
 0x625   :  { %v3460_v40 = vmul.f32 %v5268_v16, %v3459_v38 }
 0x627   :  { %v3461_v42 = vadd.f32 %v5268_v16, %v3460_v40 }
 0x629   :  { %v3465_v43 = vsel %vm3464_vm6, %v5268_v16, %v3461_v42 }
 0x62a   :  { %v3470_v45 = vsel %vm3467_vm8, %v3469_v31, %v3465_v43 }
 0x62b   :  { %3473 = vst.msk [vmem:[%s6976_s22] sm:$0x1] %vm3472_vm7, %v3470_v45 }
 0x62c   :  { %3478 = vsyncpa [#allocation3], 1 }
 0x62d   :  { %3479 = vsyncpa [#allocation5], 1 }
 0x62e   :  { %3480 = vsyncpa [#allocation8], 1 }
 0x62f   :  { %3481 = vsyncpa [#allocation11], 1 }
 0x630   :  { %3482 = vsyncpa [#allocation14], 1 }
 0x631   :  { %3483 = vsyncpa [#allocation17], 1 }

</bundles_post_ra>
